<compile_context>
chip_gen: v7x
topology: tpu7x:2x2x1
jax: 0.10.0
libtpu: 0.0.40
codegen_flags: <defaults>
</compile_context>

<pallas_src>
import functools

import jax
import jax.numpy as jnp
from jax.experimental import pallas as pl
from jax.experimental.pallas import tpu as pltpu

EPS = 1e-5                      # PyTorch BatchNorm2d default
LANE = 128
_VMEM_LIMIT = 32 * 1024 * 1024  # safe on v5e/v6e (128 MiB) and v7x (64 MiB physical)


def _round_up(x, m):
    return (x + m - 1) // m * m


# ----------------------------- Pallas kernels ---------------------------------

def _down_kernel(x_ee, x_eo, x_oe, x_oo, w_ref, o_ref, *, ho, wo):
    """Fused LeakyReLU(0.2) + Conv2d(k=4, s=2, p=1, bias=False).

    Inputs are the parity split (even/odd rows x even/odd cols) of the zero-padded
    NHWC activation, so every one of the 16 stride-2 taps is an unstrided static
    slice formed in VMEM (no im2col in HBM). bf16 MXU matmuls, f32 accumulation.
    """
    cp = x_ee.shape[-1]
    ip = o_ref.shape[-1]
    xs = []
    for xr in (x_ee, x_eo, x_oe, x_oo):           # parity order (eh, ew)
        v = xr[0].astype(jnp.float32)
        v = jnp.where(v > 0, v, 0.2 * v)          # LeakyReLU(0.2); LReLU(0) == pad value
        xs.append(v.astype(jnp.bfloat16))
    acc = jnp.zeros((ho * wo, ip), jnp.float32)
    for kh in range(4):
        eh, ah = kh % 2, kh // 2
        for kw in range(4):
            ew, aw = kw % 2, kw // 2
            tap = xs[eh * 2 + ew][ah:ah + ho, aw:aw + wo, :].reshape(ho * wo, cp)
            acc = acc + jnp.dot(tap, w_ref[kh * 4 + kw],
                                preferred_element_type=jnp.float32)
    o_ref[0] = acc.astype(o_ref.dtype)


def _up_kernel(u_ref, w_ref, y_ref, s_ref, ss_ref, *, h, w):
    """Fused ReLU + Conv2d(k=3, s=1, bias=False) on the upsampled + reflect-padded
    activation, with per-grid-step partial BatchNorm sums (keeps the grid 'parallel').

    The 9 conv taps are formed as static slices in VMEM (no 9x im2col in HBM).
    """
    ip = u_ref.shape[-1]
    op = y_ref.shape[-1]
    u = jnp.maximum(u_ref[0], 0)                  # ReLU commutes with upsample/reflect-pad
    u = u.astype(jnp.bfloat16)
    acc = jnp.zeros((h * w, op), jnp.float32)
    for a in range(3):
        for b in range(3):
            tap = u[a:a + h, b:b + w, :].reshape(h * w, ip)
            acc = acc + jnp.dot(tap, w_ref[a * 3 + b],
                                preferred_element_type=jnp.float32)
    y_ref[0] = acc
    s = jnp.sum(acc, axis=0, keepdims=True)
    ss = jnp.sum(acc * acc, axis=0, keepdims=True)
    s_ref[0] = jnp.broadcast_to(s, (8, op))       # (8, op) block keeps stores lane/sublane dense
    ss_ref[0] = jnp.broadcast_to(ss, (8, op))


def _bn_kernel(y_ref, scale_ref, shift_ref, o_ref):
    """Apply precomputed BatchNorm (training batch stats) scale/shift, lane-dense tiles."""
    o_ref[...] = y_ref[...] * scale_ref[...] + shift_ref[...]


# ------------------------------ params ------------------------------------------

def init_params(key, input_nc, inner_nc, outer_nc):
    cp = _round_up(input_nc, LANE)
    ip = _round_up(inner_nc, LANE)
    op = _round_up(outer_nc, LANE)
    k1, k2, k3, k4 = jax.random.split(key, 4)
    w_down_pt = jax.random.normal(k1, (inner_nc, input_nc, 4, 4), jnp.float32) * 0.1
    w_up_pt = jax.random.normal(k2, (outer_nc, inner_nc, 3, 3), jnp.float32) * 0.1
    gamma = 1.0 + 0.1 * jax.random.normal(k3, (outer_nc,), jnp.float32)
    beta = 0.1 * jax.random.normal(k4, (outer_nc,), jnp.float32)

    # Per-tap matmul weights, zero-padded to lane-dense 128 multiples, bf16 for the MXU.
    wd = jnp.transpose(w_down_pt, (2, 3, 1, 0)).reshape(16, input_nc, inner_nc)
    wd = jnp.pad(wd, ((0, 0), (0, cp - input_nc), (0, ip - inner_nc)))
    wu = jnp.transpose(w_up_pt, (2, 3, 1, 0)).reshape(9, inner_nc, outer_nc)
    wu = jnp.pad(wu, ((0, 0), (0, ip - inner_nc), (0, op - outer_nc)))
    return {"w_down": wd.astype(jnp.bfloat16),
            "w_up": wu.astype(jnp.bfloat16),
            "gamma": gamma.reshape(1, outer_nc),
            "beta": beta.reshape(1, outer_nc)}


# ------------------------------ forward ------------------------------------------

@jax.jit
def unet_innermost_forward(x_nchw, w_down, w_up, gamma, beta):
    N, C_in, H, W = x_nchw.shape
    Ho, Wo = H // 2, W // 2
    cp = w_down.shape[1]          # padded input channels
    ip = w_down.shape[2]          # padded inner channels
    op = w_up.shape[2]            # padded outer channels
    outer_nc = gamma.shape[-1]

    x_nhwc = jnp.transpose(x_nchw, (0, 2, 3, 1)).astype(jnp.float32)   # skip path (f32)

    # ---- down path: zero-pad 1, parity-split so every stride-2 tap is unstrided ----
    xb = x_nhwc.astype(jnp.bfloat16)
    xb = jnp.pad(xb, ((0, 0), (1, 1), (1, 1), (0, cp - C_in)))         # (N, H+2, W+2, cp)
    x_ee = xb[:, 0::2, 0::2, :]
    x_eo = xb[:, 0::2, 1::2, :]
    x_oe = xb[:, 1::2, 0::2, :]
    x_oo = xb[:, 1::2, 1::2, :]                                        # (N, Ho+1, Wo+1, cp)

    par_spec = pl.BlockSpec((1, Ho + 1, Wo + 1, cp), lambda n: (n, 0, 0, 0))
    d = pl.pallas_call(
        functools.partial(_down_kernel, ho=Ho, wo=Wo),
        out_shape=jax.ShapeDtypeStruct((N, Ho * Wo, ip), jnp.bfloat16),
        grid=(N,),
        in_specs=[par_spec, par_spec, par_spec, par_spec,
                  pl.BlockSpec((16, cp, ip), lambda n: (0, 0, 0))],
        out_specs=pl.BlockSpec((1, Ho * Wo, ip), lambda n: (n, 0, 0)),
        compiler_params=pltpu.CompilerParams(
            dimension_semantics=("parallel",), vmem_limit_bytes=_VMEM_LIMIT),
    )(x_ee, x_eo, x_oe, x_oo, w_down)

    # ---- up path: nearest x2 + reflect pad once (O(output) HBM traffic, no 9x) ----
    d4 = d.reshape(N, Ho, Wo, ip)
    u = jnp.repeat(jnp.repeat(d4, 2, axis=1), 2, axis=2)               # nearest upsample
    u = jnp.pad(u, ((0, 0), (1, 1), (1, 1), (0, 0)), mode="reflect")   # (N, H+2, W+2, ip)

    y, s_part, ss_part = pl.pallas_call(
        functools.partial(_up_kernel, h=H, w=W),
        out_shape=(jax.ShapeDtypeStruct((N, H * W, op), jnp.float32),
                   jax.ShapeDtypeStruct((N, 8, op), jnp.float32),
                   jax.ShapeDtypeStruct((N, 8, op), jnp.float32)),
        grid=(N,),
        in_specs=[pl.BlockSpec((1, H + 2, W + 2, ip), lambda n: (n, 0, 0, 0)),
                  pl.BlockSpec((9, ip, op), lambda n: (0, 0, 0))],
        out_specs=(pl.BlockSpec((1, H * W, op), lambda n: (n, 0, 0)),
                   pl.BlockSpec((1, 8, op), lambda n: (n, 0, 0)),
                   pl.BlockSpec((1, 8, op), lambda n: (n, 0, 0))),
        compiler_params=pltpu.CompilerParams(
            dimension_semantics=("parallel",), vmem_limit_bytes=_VMEM_LIMIT),
    )(u, w_up)

    # ---- BatchNorm (training-mode batch stats) folded into scale/shift ----
    m = float(N * H * W)
    s = jnp.sum(s_part[:, 0, :], axis=0)
    ss = jnp.sum(ss_part[:, 0, :], axis=0)
    mean = s / m
    var = jnp.maximum(ss / m - mean * mean, 0.0)       # clamp: E[x^2]-E[x]^2 can dip <0
    inv = jax.lax.rsqrt(var + EPS)
    gamma_p = jnp.pad(gamma.reshape(-1), (0, op - outer_nc))
    beta_p = jnp.pad(beta.reshape(-1), (0, op - outer_nc))
    scale = (gamma_p * inv).reshape(1, op)
    shift = (beta_p - mean * gamma_p * inv).reshape(1, op)

    M = N * H * W
    rows_tile = 512 if M >= 512 else M
    y_bn = pl.pallas_call(
        _bn_kernel,
        out_shape=jax.ShapeDtypeStruct((M, op), jnp.float32),
        grid=(pl.cdiv(M, rows_tile),),
        in_specs=[pl.BlockSpec((rows_tile, op), lambda i: (i, 0)),
                  pl.BlockSpec((1, op), lambda i: (0, 0)),
                  pl.BlockSpec((1, op), lambda i: (0, 0))],
        out_specs=pl.BlockSpec((rows_tile, op), lambda i: (i, 0)),
        compiler_params=pltpu.CompilerParams(
            dimension_semantics=("parallel",), vmem_limit_bytes=_VMEM_LIMIT),
    )(y.reshape(M, op), scale, shift)

    # ---- skip concat in the wrapper (x never flows through the BN kernel) ----
    y_bn = y_bn.reshape(N, H, W, op)[..., :outer_nc]
    out = jnp.concatenate([x_nhwc, y_bn], axis=-1)
    return jnp.transpose(out, (0, 3, 1, 2))            # back to NCHW


if __name__ == "__main__":
    outer_nc = 4
    inner_nc = 8
    input_nc = outer_nc          # module default: input_nc = outer_nc when None
    N, H, W = 2, 16, 16

    key = jax.random.PRNGKey(0)
    kx, kp = jax.random.split(key)
    x = jax.random.normal(kx, (N, input_nc, H, W), jnp.float32)
    params = init_params(kp, input_nc, inner_nc, outer_nc)

    out = unet_innermost_forward(x, params["w_down"], params["w_up"],
                                 params["gamma"], params["beta"])
    out = jax.block_until_ready(out)
    assert out.shape == (N, input_nc + outer_nc, H, W), out.shape
    print("KERNEL_OK")
</pallas_src>

<mosaic_0001>
module attributes {stable_mosaic.version = 11 : i64} {
  func.func @_up_kernel(%arg0: i32, %arg1: memref<1x18x18x128xbf16, #tpu.memory_space<vmem>>, %arg2: memref<9x128x128xbf16, #tpu.memory_space<vmem>>, %arg3: memref<1x256x128xf32, #tpu.memory_space<vmem>>, %arg4: memref<1x8x128xf32, #tpu.memory_space<vmem>>, %arg5: memref<1x8x128xf32, #tpu.memory_space<vmem>>) attributes {dimension_semantics = [#tpu.dimension_semantics<parallel>], iteration_bounds = array<i64: 2>, scalar_prefetch = 0 : i64, scratch_operands = 0 : i64, tpu.core_type = #tpu.core_type<tc>, window_params = [{transform_indices = @transform_0, window_bounds = array<i64: 1, 18, 18, 128>}, {pipeline_mode = #tpu.pipeline_mode<synchronous>, transform_indices = @transform_1, window_bounds = array<i64: 9, 128, 128>}, {transform_indices = @transform_2, window_bounds = array<i64: 1, 256, 128>}, {transform_indices = @transform_3, window_bounds = array<i64: 1, 8, 128>}, {transform_indices = @transform_4, window_bounds = array<i64: 1, 8, 128>}]} {
    %c0 = arith.constant 0 : index
    %c0_0 = arith.constant 0 : index
    %c0_1 = arith.constant 0 : index
    %c0_2 = arith.constant 0 : index
    %0 = vector.load %arg1[%c0, %c0_0, %c0_1, %c0_2] : memref<1x18x18x128xbf16, #tpu.memory_space<vmem>>, vector<1x18x18x128xbf16>
    %1 = vector.shape_cast %0 : vector<1x18x18x128xbf16> to vector<18x18x128xbf16>
    %cst = arith.constant 0.000000e+00 : bf16
    %2 = vector.broadcast %cst : bf16 to vector<18x18x128xbf16>
    %3 = arith.maximumf %1, %2 : vector<18x18x128xbf16>
    %cst_3 = arith.constant 0.000000e+00 : f32
    %4 = vector.broadcast %cst_3 : f32 to vector<256x128xf32>
    %5 = vector.extract_strided_slice %3 {offsets = [0, 0, 0], sizes = [16, 16, 128], strides = [1, 1, 1]} : vector<18x18x128xbf16> to vector<16x16x128xbf16>
    %6 = vector.shape_cast %5 : vector<16x16x128xbf16> to vector<256x128xbf16>
    %c0_4 = arith.constant 0 : index
    %c0_5 = arith.constant 0 : index
    %c0_6 = arith.constant 0 : index
    %7 = vector.load %arg2[%c0_4, %c0_5, %c0_6] : memref<9x128x128xbf16, #tpu.memory_space<vmem>>, vector<1x128x128xbf16>
    %8 = vector.shape_cast %7 : vector<1x128x128xbf16> to vector<128x128xbf16>
    %cst_7 = arith.constant dense<0.000000e+00> : vector<256x128xf32>
    %9 = tpu.matmul %6, %8, %cst_7 {dimension_numbers = #tpu.dot_dimension_numbers<[1], [0], [0], [1], [0, 0, 1, 1], [], []>} : vector<256x128xbf16>, vector<128x128xbf16>, vector<256x128xf32> -> vector<256x128xf32>
    %10 = arith.addf %4, %9 : vector<256x128xf32>
    %11 = vector.extract_strided_slice %3 {offsets = [0, 1, 0], sizes = [16, 16, 128], strides = [1, 1, 1]} : vector<18x18x128xbf16> to vector<16x16x128xbf16>
    %12 = vector.shape_cast %11 : vector<16x16x128xbf16> to vector<256x128xbf16>
    %c1 = arith.constant 1 : index
    %c0_8 = arith.constant 0 : index
    %c0_9 = arith.constant 0 : index
    %13 = vector.load %arg2[%c1, %c0_8, %c0_9] : memref<9x128x128xbf16, #tpu.memory_space<vmem>>, vector<1x128x128xbf16>
    %14 = vector.shape_cast %13 : vector<1x128x128xbf16> to vector<128x128xbf16>
    %cst_10 = arith.constant dense<0.000000e+00> : vector<256x128xf32>
    %15 = tpu.matmul %12, %14, %cst_10 {dimension_numbers = #tpu.dot_dimension_numbers<[1], [0], [0], [1], [0, 0, 1, 1], [], []>} : vector<256x128xbf16>, vector<128x128xbf16>, vector<256x128xf32> -> vector<256x128xf32>
    %16 = arith.addf %10, %15 : vector<256x128xf32>
    %17 = vector.extract_strided_slice %3 {offsets = [0, 2, 0], sizes = [16, 16, 128], strides = [1, 1, 1]} : vector<18x18x128xbf16> to vector<16x16x128xbf16>
    %18 = vector.shape_cast %17 : vector<16x16x128xbf16> to vector<256x128xbf16>
    %c2 = arith.constant 2 : index
    %c0_11 = arith.constant 0 : index
    %c0_12 = arith.constant 0 : index
    %19 = vector.load %arg2[%c2, %c0_11, %c0_12] : memref<9x128x128xbf16, #tpu.memory_space<vmem>>, vector<1x128x128xbf16>
    %20 = vector.shape_cast %19 : vector<1x128x128xbf16> to vector<128x128xbf16>
    %cst_13 = arith.constant dense<0.000000e+00> : vector<256x128xf32>
    %21 = tpu.matmul %18, %20, %cst_13 {dimension_numbers = #tpu.dot_dimension_numbers<[1], [0], [0], [1], [0, 0, 1, 1], [], []>} : vector<256x128xbf16>, vector<128x128xbf16>, vector<256x128xf32> -> vector<256x128xf32>
    %22 = arith.addf %16, %21 : vector<256x128xf32>
    %23 = vector.extract_strided_slice %3 {offsets = [1, 0, 0], sizes = [16, 16, 128], strides = [1, 1, 1]} : vector<18x18x128xbf16> to vector<16x16x128xbf16>
    %24 = vector.shape_cast %23 : vector<16x16x128xbf16> to vector<256x128xbf16>
    %c3 = arith.constant 3 : index
    %c0_14 = arith.constant 0 : index
    %c0_15 = arith.constant 0 : index
    %25 = vector.load %arg2[%c3, %c0_14, %c0_15] : memref<9x128x128xbf16, #tpu.memory_space<vmem>>, vector<1x128x128xbf16>
    %26 = vector.shape_cast %25 : vector<1x128x128xbf16> to vector<128x128xbf16>
    %cst_16 = arith.constant dense<0.000000e+00> : vector<256x128xf32>
    %27 = tpu.matmul %24, %26, %cst_16 {dimension_numbers = #tpu.dot_dimension_numbers<[1], [0], [0], [1], [0, 0, 1, 1], [], []>} : vector<256x128xbf16>, vector<128x128xbf16>, vector<256x128xf32> -> vector<256x128xf32>
    %28 = arith.addf %22, %27 : vector<256x128xf32>
    %29 = vector.extract_strided_slice %3 {offsets = [1, 1, 0], sizes = [16, 16, 128], strides = [1, 1, 1]} : vector<18x18x128xbf16> to vector<16x16x128xbf16>
    %30 = vector.shape_cast %29 : vector<16x16x128xbf16> to vector<256x128xbf16>
    %c4 = arith.constant 4 : index
    %c0_17 = arith.constant 0 : index
    %c0_18 = arith.constant 0 : index
    %31 = vector.load %arg2[%c4, %c0_17, %c0_18] : memref<9x128x128xbf16, #tpu.memory_space<vmem>>, vector<1x128x128xbf16>
    %32 = vector.shape_cast %31 : vector<1x128x128xbf16> to vector<128x128xbf16>
    %cst_19 = arith.constant dense<0.000000e+00> : vector<256x128xf32>
    %33 = tpu.matmul %30, %32, %cst_19 {dimension_numbers = #tpu.dot_dimension_numbers<[1], [0], [0], [1], [0, 0, 1, 1], [], []>} : vector<256x128xbf16>, vector<128x128xbf16>, vector<256x128xf32> -> vector<256x128xf32>
    %34 = arith.addf %28, %33 : vector<256x128xf32>
    %35 = vector.extract_strided_slice %3 {offsets = [1, 2, 0], sizes = [16, 16, 128], strides = [1, 1, 1]} : vector<18x18x128xbf16> to vector<16x16x128xbf16>
    %36 = vector.shape_cast %35 : vector<16x16x128xbf16> to vector<256x128xbf16>
    %c5 = arith.constant 5 : index
    %c0_20 = arith.constant 0 : index
    %c0_21 = arith.constant 0 : index
    %37 = vector.load %arg2[%c5, %c0_20, %c0_21] : memref<9x128x128xbf16, #tpu.memory_space<vmem>>, vector<1x128x128xbf16>
    %38 = vector.shape_cast %37 : vector<1x128x128xbf16> to vector<128x128xbf16>
    %cst_22 = arith.constant dense<0.000000e+00> : vector<256x128xf32>
    %39 = tpu.matmul %36, %38, %cst_22 {dimension_numbers = #tpu.dot_dimension_numbers<[1], [0], [0], [1], [0, 0, 1, 1], [], []>} : vector<256x128xbf16>, vector<128x128xbf16>, vector<256x128xf32> -> vector<256x128xf32>
    %40 = arith.addf %34, %39 : vector<256x128xf32>
    %41 = vector.extract_strided_slice %3 {offsets = [2, 0, 0], sizes = [16, 16, 128], strides = [1, 1, 1]} : vector<18x18x128xbf16> to vector<16x16x128xbf16>
    %42 = vector.shape_cast %41 : vector<16x16x128xbf16> to vector<256x128xbf16>
    %c6 = arith.constant 6 : index
    %c0_23 = arith.constant 0 : index
    %c0_24 = arith.constant 0 : index
    %43 = vector.load %arg2[%c6, %c0_23, %c0_24] : memref<9x128x128xbf16, #tpu.memory_space<vmem>>, vector<1x128x128xbf16>
    %44 = vector.shape_cast %43 : vector<1x128x128xbf16> to vector<128x128xbf16>
    %cst_25 = arith.constant dense<0.000000e+00> : vector<256x128xf32>
    %45 = tpu.matmul %42, %44, %cst_25 {dimension_numbers = #tpu.dot_dimension_numbers<[1], [0], [0], [1], [0, 0, 1, 1], [], []>} : vector<256x128xbf16>, vector<128x128xbf16>, vector<256x128xf32> -> vector<256x128xf32>
    %46 = arith.addf %40, %45 : vector<256x128xf32>
    %47 = vector.extract_strided_slice %3 {offsets = [2, 1, 0], sizes = [16, 16, 128], strides = [1, 1, 1]} : vector<18x18x128xbf16> to vector<16x16x128xbf16>
    %48 = vector.shape_cast %47 : vector<16x16x128xbf16> to vector<256x128xbf16>
    %c7 = arith.constant 7 : index
    %c0_26 = arith.constant 0 : index
    %c0_27 = arith.constant 0 : index
    %49 = vector.load %arg2[%c7, %c0_26, %c0_27] : memref<9x128x128xbf16, #tpu.memory_space<vmem>>, vector<1x128x128xbf16>
    %50 = vector.shape_cast %49 : vector<1x128x128xbf16> to vector<128x128xbf16>
    %cst_28 = arith.constant dense<0.000000e+00> : vector<256x128xf32>
    %51 = tpu.matmul %48, %50, %cst_28 {dimension_numbers = #tpu.dot_dimension_numbers<[1], [0], [0], [1], [0, 0, 1, 1], [], []>} : vector<256x128xbf16>, vector<128x128xbf16>, vector<256x128xf32> -> vector<256x128xf32>
    %52 = arith.addf %46, %51 : vector<256x128xf32>
    %53 = vector.extract_strided_slice %3 {offsets = [2, 2, 0], sizes = [16, 16, 128], strides = [1, 1, 1]} : vector<18x18x128xbf16> to vector<16x16x128xbf16>
    %54 = vector.shape_cast %53 : vector<16x16x128xbf16> to vector<256x128xbf16>
    %c8 = arith.constant 8 : index
    %c0_29 = arith.constant 0 : index
    %c0_30 = arith.constant 0 : index
    %55 = vector.load %arg2[%c8, %c0_29, %c0_30] : memref<9x128x128xbf16, #tpu.memory_space<vmem>>, vector<1x128x128xbf16>
    %56 = vector.shape_cast %55 : vector<1x128x128xbf16> to vector<128x128xbf16>
    %cst_31 = arith.constant dense<0.000000e+00> : vector<256x128xf32>
    %57 = tpu.matmul %54, %56, %cst_31 {dimension_numbers = #tpu.dot_dimension_numbers<[1], [0], [0], [1], [0, 0, 1, 1], [], []>} : vector<256x128xbf16>, vector<128x128xbf16>, vector<256x128xf32> -> vector<256x128xf32>
    %58 = arith.addf %52, %57 : vector<256x128xf32>
    %c0_32 = arith.constant 0 : index
    %c0_33 = arith.constant 0 : index
    %c0_34 = arith.constant 0 : index
    %59 = vector.load %arg3[%c0_32, %c0_33, %c0_34] : memref<1x256x128xf32, #tpu.memory_space<vmem>>, vector<1x256x128xf32>
    %60 = vector.shape_cast %59 : vector<1x256x128xf32> to vector<256x128xf32>
    %61 = vector.shape_cast %58 : vector<256x128xf32> to vector<1x256x128xf32>
    tpu.vector_store %arg3[%c0_32, %c0_33, %c0_34], %61 {strides = array<i32>} : memref<1x256x128xf32, #tpu.memory_space<vmem>>, vector<1x256x128xf32>,
    %cst_35 = arith.constant dense<0.000000e+00> : vector<128xf32>
    %62 = vector.multi_reduction <add>, %58, %cst_35 [0] : vector<256x128xf32> to vector<128xf32>
    %63 = vector.shape_cast %62 : vector<128xf32> to vector<1x128xf32>
    %64 = arith.mulf %58, %58 : vector<256x128xf32>
    %cst_36 = arith.constant dense<0.000000e+00> : vector<128xf32>
    %65 = vector.multi_reduction <add>, %64, %cst_36 [0] : vector<256x128xf32> to vector<128xf32>
    %66 = vector.shape_cast %65 : vector<128xf32> to vector<1x128xf32>
    %67 = vector.shape_cast %63 : vector<1x128xf32> to vector<1x128xf32>
    %68 = vector.broadcast %67 : vector<1x128xf32> to vector<8x128xf32>
    %c0_37 = arith.constant 0 : index
    %c0_38 = arith.constant 0 : index
    %c0_39 = arith.constant 0 : index
    %69 = vector.load %arg4[%c0_37, %c0_38, %c0_39] : memref<1x8x128xf32, #tpu.memory_space<vmem>>, vector<1x8x128xf32>
    %70 = vector.shape_cast %69 : vector<1x8x128xf32> to vector<8x128xf32>
    %71 = vector.shape_cast %68 : vector<8x128xf32> to vector<1x8x128xf32>
    tpu.vector_store %arg4[%c0_37, %c0_38, %c0_39], %71 {strides = array<i32>} : memref<1x8x128xf32, #tpu.memory_space<vmem>>, vector<1x8x128xf32>,
    %72 = vector.shape_cast %66 : vector<1x128xf32> to vector<1x128xf32>
    %73 = vector.broadcast %72 : vector<1x128xf32> to vector<8x128xf32>
    %c0_40 = arith.constant 0 : index
    %c0_41 = arith.constant 0 : index
    %c0_42 = arith.constant 0 : index
    %74 = vector.load %arg5[%c0_40, %c0_41, %c0_42] : memref<1x8x128xf32, #tpu.memory_space<vmem>>, vector<1x8x128xf32>
    %75 = vector.shape_cast %74 : vector<1x8x128xf32> to vector<8x128xf32>
    %76 = vector.shape_cast %73 : vector<8x128xf32> to vector<1x8x128xf32>
    tpu.vector_store %arg5[%c0_40, %c0_41, %c0_42], %76 {strides = array<i32>} : memref<1x8x128xf32, #tpu.memory_space<vmem>>, vector<1x8x128xf32>,
    return
  }
  func.func @transform_0(%arg0: i32) -> (i32, i32, i32, i32) {
    %c0_i32 = arith.constant 0 : i32
    %c0_i32_0 = arith.constant 0 : i32
    %c0_i32_1 = arith.constant 0 : i32
    %c0_i32_2 = arith.constant 0 : i32
    return %arg0, %c0_i32, %c0_i32_0, %c0_i32_1 : i32, i32, i32, i32
  }
  func.func @transform_1(%arg0: i32) -> (i32, i32, i32) {
    %c0_i32 = arith.constant 0 : i32
    %c0_i32_0 = arith.constant 0 : i32
    %c0_i32_1 = arith.constant 0 : i32
    %c0_i32_2 = arith.constant 0 : i32
    return %c0_i32, %c0_i32_0, %c0_i32_1 : i32, i32, i32
  }
  func.func @transform_2(%arg0: i32) -> (i32, i32, i32) {
    %c0_i32 = arith.constant 0 : i32
    %c0_i32_0 = arith.constant 0 : i32
    %c0_i32_1 = arith.constant 0 : i32
    return %arg0, %c0_i32, %c0_i32_0 : i32, i32, i32
  }
  func.func @transform_3(%arg0: i32) -> (i32, i32, i32) {
    %c0_i32 = arith.constant 0 : i32
    %c0_i32_0 = arith.constant 0 : i32
    %c0_i32_1 = arith.constant 0 : i32
    return %arg0, %c0_i32, %c0_i32_0 : i32, i32, i32
  }
  func.func @transform_4(%arg0: i32) -> (i32, i32, i32) {
    %c0_i32 = arith.constant 0 : i32
    %c0_i32_0 = arith.constant 0 : i32
    %c0_i32_1 = arith.constant 0 : i32
    return %arg0, %c0_i32, %c0_i32_0 : i32, i32, i32
  }
}

module attributes {stable_mosaic.version = 11 : i64} {
  func.func @_down_kernel(%arg0: i32, %arg1: memref<1x9x9x128xbf16, #tpu.memory_space<vmem>>, %arg2: memref<1x9x9x128xbf16, #tpu.memory_space<vmem>>, %arg3: memref<1x9x9x128xbf16, #tpu.memory_space<vmem>>, %arg4: memref<1x9x9x128xbf16, #tpu.memory_space<vmem>>, %arg5: memref<16x128x128xbf16, #tpu.memory_space<vmem>>, %arg6: memref<1x64x128xbf16, #tpu.memory_space<vmem>>) attributes {dimension_semantics = [#tpu.dimension_semantics<parallel>], iteration_bounds = array<i64: 2>, scalar_prefetch = 0 : i64, scratch_operands = 0 : i64, tpu.core_type = #tpu.core_type<tc>, window_params = [{transform_indices = @transform_0, window_bounds = array<i64: 1, 9, 9, 128>}, {transform_indices = @transform_1, window_bounds = array<i64: 1, 9, 9, 128>}, {transform_indices = @transform_2, window_bounds = array<i64: 1, 9, 9, 128>}, {transform_indices = @transform_3, window_bounds = array<i64: 1, 9, 9, 128>}, {pipeline_mode = #tpu.pipeline_mode<synchronous>, transform_indices = @transform_4, window_bounds = array<i64: 16, 128, 128>}, {transform_indices = @transform_5, window_bounds = array<i64: 1, 64, 128>}]} {
    %c0 = arith.constant 0 : index
    %c0_0 = arith.constant 0 : index
    %c0_1 = arith.constant 0 : index
    %c0_2 = arith.constant 0 : index
    %0 = vector.load %arg1[%c0, %c0_0, %c0_1, %c0_2] : memref<1x9x9x128xbf16, #tpu.memory_space<vmem>>, vector<1x9x9x128xbf16>
    %1 = vector.shape_cast %0 : vector<1x9x9x128xbf16> to vector<9x9x128xbf16>
    %2 = arith.extf %1 : vector<9x9x128xbf16> to vector<9x9x128xf32>
    %cst = arith.constant 0.000000e+00 : f32
    %3 = vector.broadcast %cst : f32 to vector<9x9x128xf32>
    %4 = arith.cmpf ogt, %2, %3 : vector<9x9x128xf32>
    %cst_3 = arith.constant 2.000000e-01 : f32
    %5 = vector.broadcast %cst_3 : f32 to vector<9x9x128xf32>
    %6 = arith.mulf %5, %2 : vector<9x9x128xf32>
    %7 = arith.select %4, %2, %6 : vector<9x9x128xi1>, vector<9x9x128xf32>
    %8 = arith.truncf %7 : vector<9x9x128xf32> to vector<9x9x128xbf16>
    %c0_4 = arith.constant 0 : index
    %c0_5 = arith.constant 0 : index
    %c0_6 = arith.constant 0 : index
    %c0_7 = arith.constant 0 : index
    %9 = vector.load %arg2[%c0_4, %c0_5, %c0_6, %c0_7] : memref<1x9x9x128xbf16, #tpu.memory_space<vmem>>, vector<1x9x9x128xbf16>
    %10 = vector.shape_cast %9 : vector<1x9x9x128xbf16> to vector<9x9x128xbf16>
    %11 = arith.extf %10 : vector<9x9x128xbf16> to vector<9x9x128xf32>
    %cst_8 = arith.constant 0.000000e+00 : f32
    %12 = vector.broadcast %cst_8 : f32 to vector<9x9x128xf32>
    %13 = arith.cmpf ogt, %11, %12 : vector<9x9x128xf32>
    %cst_9 = arith.constant 2.000000e-01 : f32
    %14 = vector.broadcast %cst_9 : f32 to vector<9x9x128xf32>
    %15 = arith.mulf %14, %11 : vector<9x9x128xf32>
    %16 = arith.select %13, %11, %15 : vector<9x9x128xi1>, vector<9x9x128xf32>
    %17 = arith.truncf %16 : vector<9x9x128xf32> to vector<9x9x128xbf16>
    %c0_10 = arith.constant 0 : index
    %c0_11 = arith.constant 0 : index
    %c0_12 = arith.constant 0 : index
    %c0_13 = arith.constant 0 : index
    %18 = vector.load %arg3[%c0_10, %c0_11, %c0_12, %c0_13] : memref<1x9x9x128xbf16, #tpu.memory_space<vmem>>, vector<1x9x9x128xbf16>
    %19 = vector.shape_cast %18 : vector<1x9x9x128xbf16> to vector<9x9x128xbf16>
    %20 = arith.extf %19 : vector<9x9x128xbf16> to vector<9x9x128xf32>
    %cst_14 = arith.constant 0.000000e+00 : f32
    %21 = vector.broadcast %cst_14 : f32 to vector<9x9x128xf32>
    %22 = arith.cmpf ogt, %20, %21 : vector<9x9x128xf32>
    %cst_15 = arith.constant 2.000000e-01 : f32
    %23 = vector.broadcast %cst_15 : f32 to vector<9x9x128xf32>
    %24 = arith.mulf %23, %20 : vector<9x9x128xf32>
    %25 = arith.select %22, %20, %24 : vector<9x9x128xi1>, vector<9x9x128xf32>
    %26 = arith.truncf %25 : vector<9x9x128xf32> to vector<9x9x128xbf16>
    %c0_16 = arith.constant 0 : index
    %c0_17 = arith.constant 0 : index
    %c0_18 = arith.constant 0 : index
    %c0_19 = arith.constant 0 : index
    %27 = vector.load %arg4[%c0_16, %c0_17, %c0_18, %c0_19] : memref<1x9x9x128xbf16, #tpu.memory_space<vmem>>, vector<1x9x9x128xbf16>
    %28 = vector.shape_cast %27 : vector<1x9x9x128xbf16> to vector<9x9x128xbf16>
    %29 = arith.extf %28 : vector<9x9x128xbf16> to vector<9x9x128xf32>
    %cst_20 = arith.constant 0.000000e+00 : f32
    %30 = vector.broadcast %cst_20 : f32 to vector<9x9x128xf32>
    %31 = arith.cmpf ogt, %29, %30 : vector<9x9x128xf32>
    %cst_21 = arith.constant 2.000000e-01 : f32
    %32 = vector.broadcast %cst_21 : f32 to vector<9x9x128xf32>
    %33 = arith.mulf %32, %29 : vector<9x9x128xf32>
    %34 = arith.select %31, %29, %33 : vector<9x9x128xi1>, vector<9x9x128xf32>
    %35 = arith.truncf %34 : vector<9x9x128xf32> to vector<9x9x128xbf16>
    %cst_22 = arith.constant 0.000000e+00 : f32
    %36 = vector.broadcast %cst_22 : f32 to vector<64x128xf32>
    %37 = vector.extract_strided_slice %8 {offsets = [0, 0, 0], sizes = [8, 8, 128], strides = [1, 1, 1]} : vector<9x9x128xbf16> to vector<8x8x128xbf16>
    %38 = vector.shape_cast %37 : vector<8x8x128xbf16> to vector<64x128xbf16>
    %c0_23 = arith.constant 0 : index
    %c0_24 = arith.constant 0 : index
    %c0_25 = arith.constant 0 : index
    %39 = vector.load %arg5[%c0_23, %c0_24, %c0_25] : memref<16x128x128xbf16, #tpu.memory_space<vmem>>, vector<1x128x128xbf16>
    %40 = vector.shape_cast %39 : vector<1x128x128xbf16> to vector<128x128xbf16>
    %cst_26 = arith.constant dense<0.000000e+00> : vector<64x128xf32>
    %41 = tpu.matmul %38, %40, %cst_26 {dimension_numbers = #tpu.dot_dimension_numbers<[1], [0], [0], [1], [0, 0, 1, 1], [], []>} : vector<64x128xbf16>, vector<128x128xbf16>, vector<64x128xf32> -> vector<64x128xf32>
    %42 = arith.addf %36, %41 : vector<64x128xf32>
    %43 = vector.extract_strided_slice %17 {offsets = [0, 0, 0], sizes = [8, 8, 128], strides = [1, 1, 1]} : vector<9x9x128xbf16> to vector<8x8x128xbf16>
    %44 = vector.shape_cast %43 : vector<8x8x128xbf16> to vector<64x128xbf16>
    %c1 = arith.constant 1 : index
    %c0_27 = arith.constant 0 : index
    %c0_28 = arith.constant 0 : index
    %45 = vector.load %arg5[%c1, %c0_27, %c0_28] : memref<16x128x128xbf16, #tpu.memory_space<vmem>>, vector<1x128x128xbf16>
    %46 = vector.shape_cast %45 : vector<1x128x128xbf16> to vector<128x128xbf16>
    %cst_29 = arith.constant dense<0.000000e+00> : vector<64x128xf32>
    %47 = tpu.matmul %44, %46, %cst_29 {dimension_numbers = #tpu.dot_dimension_numbers<[1], [0], [0], [1], [0, 0, 1, 1], [], []>} : vector<64x128xbf16>, vector<128x128xbf16>, vector<64x128xf32> -> vector<64x128xf32>
    %48 = arith.addf %42, %47 : vector<64x128xf32>
    %49 = vector.extract_strided_slice %8 {offsets = [0, 1, 0], sizes = [8, 8, 128], strides = [1, 1, 1]} : vector<9x9x128xbf16> to vector<8x8x128xbf16>
    %50 = vector.shape_cast %49 : vector<8x8x128xbf16> to vector<64x128xbf16>
    %c2 = arith.constant 2 : index
    %c0_30 = arith.constant 0 : index
    %c0_31 = arith.constant 0 : index
    %51 = vector.load %arg5[%c2, %c0_30, %c0_31] : memref<16x128x128xbf16, #tpu.memory_space<vmem>>, vector<1x128x128xbf16>
    %52 = vector.shape_cast %51 : vector<1x128x128xbf16> to vector<128x128xbf16>
    %cst_32 = arith.constant dense<0.000000e+00> : vector<64x128xf32>
    %53 = tpu.matmul %50, %52, %cst_32 {dimension_numbers = #tpu.dot_dimension_numbers<[1], [0], [0], [1], [0, 0, 1, 1], [], []>} : vector<64x128xbf16>, vector<128x128xbf16>, vector<64x128xf32> -> vector<64x128xf32>
    %54 = arith.addf %48, %53 : vector<64x128xf32>
    %55 = vector.extract_strided_slice %17 {offsets = [0, 1, 0], sizes = [8, 8, 128], strides = [1, 1, 1]} : vector<9x9x128xbf16> to vector<8x8x128xbf16>
    %56 = vector.shape_cast %55 : vector<8x8x128xbf16> to vector<64x128xbf16>
    %c3 = arith.constant 3 : index
    %c0_33 = arith.constant 0 : index
    %c0_34 = arith.constant 0 : index
    %57 = vector.load %arg5[%c3, %c0_33, %c0_34] : memref<16x128x128xbf16, #tpu.memory_space<vmem>>, vector<1x128x128xbf16>
    %58 = vector.shape_cast %57 : vector<1x128x128xbf16> to vector<128x128xbf16>
    %cst_35 = arith.constant dense<0.000000e+00> : vector<64x128xf32>
    %59 = tpu.matmul %56, %58, %cst_35 {dimension_numbers = #tpu.dot_dimension_numbers<[1], [0], [0], [1], [0, 0, 1, 1], [], []>} : vector<64x128xbf16>, vector<128x128xbf16>, vector<64x128xf32> -> vector<64x128xf32>
    %60 = arith.addf %54, %59 : vector<64x128xf32>
    %61 = vector.extract_strided_slice %26 {offsets = [0, 0, 0], sizes = [8, 8, 128], strides = [1, 1, 1]} : vector<9x9x128xbf16> to vector<8x8x128xbf16>
    %62 = vector.shape_cast %61 : vector<8x8x128xbf16> to vector<64x128xbf16>
    %c4 = arith.constant 4 : index
    %c0_36 = arith.constant 0 : index
    %c0_37 = arith.constant 0 : index
    %63 = vector.load %arg5[%c4, %c0_36, %c0_37] : memref<16x128x128xbf16, #tpu.memory_space<vmem>>, vector<1x128x128xbf16>
    %64 = vector.shape_cast %63 : vector<1x128x128xbf16> to vector<128x128xbf16>
    %cst_38 = arith.constant dense<0.000000e+00> : vector<64x128xf32>
    %65 = tpu.matmul %62, %64, %cst_38 {dimension_numbers = #tpu.dot_dimension_numbers<[1], [0], [0], [1], [0, 0, 1, 1], [], []>} : vector<64x128xbf16>, vector<128x128xbf16>, vector<64x128xf32> -> vector<64x128xf32>
    %66 = arith.addf %60, %65 : vector<64x128xf32>
    %67 = vector.extract_strided_slice %35 {offsets = [0, 0, 0], sizes = [8, 8, 128], strides = [1, 1, 1]} : vector<9x9x128xbf16> to vector<8x8x128xbf16>
    %68 = vector.shape_cast %67 : vector<8x8x128xbf16> to vector<64x128xbf16>
    %c5 = arith.constant 5 : index
    %c0_39 = arith.constant 0 : index
    %c0_40 = arith.constant 0 : index
    %69 = vector.load %arg5[%c5, %c0_39, %c0_40] : memref<16x128x128xbf16, #tpu.memory_space<vmem>>, vector<1x128x128xbf16>
    %70 = vector.shape_cast %69 : vector<1x128x128xbf16> to vector<128x128xbf16>
    %cst_41 = arith.constant dense<0.000000e+00> : vector<64x128xf32>
    %71 = tpu.matmul %68, %70, %cst_41 {dimension_numbers = #tpu.dot_dimension_numbers<[1], [0], [0], [1], [0, 0, 1, 1], [], []>} : vector<64x128xbf16>, vector<128x128xbf16>, vector<64x128xf32> -> vector<64x128xf32>
    %72 = arith.addf %66, %71 : vector<64x128xf32>
    %73 = vector.extract_strided_slice %26 {offsets = [0, 1, 0], sizes = [8, 8, 128], strides = [1, 1, 1]} : vector<9x9x128xbf16> to vector<8x8x128xbf16>
    %74 = vector.shape_cast %73 : vector<8x8x128xbf16> to vector<64x128xbf16>
    %c6 = arith.constant 6 : index
    %c0_42 = arith.constant 0 : index
    %c0_43 = arith.constant 0 : index
    %75 = vector.load %arg5[%c6, %c0_42, %c0_43] : memref<16x128x128xbf16, #tpu.memory_space<vmem>>, vector<1x128x128xbf16>
    %76 = vector.shape_cast %75 : vector<1x128x128xbf16> to vector<128x128xbf16>
    %cst_44 = arith.constant dense<0.000000e+00> : vector<64x128xf32>
    %77 = tpu.matmul %74, %76, %cst_44 {dimension_numbers = #tpu.dot_dimension_numbers<[1], [0], [0], [1], [0, 0, 1, 1], [], []>} : vector<64x128xbf16>, vector<128x128xbf16>, vector<64x128xf32> -> vector<64x128xf32>
    %78 = arith.addf %72, %77 : vector<64x128xf32>
    %79 = vector.extract_strided_slice %35 {offsets = [0, 1, 0], sizes = [8, 8, 128], strides = [1, 1, 1]} : vector<9x9x128xbf16> to vector<8x8x128xbf16>
    %80 = vector.shape_cast %79 : vector<8x8x128xbf16> to vector<64x128xbf16>
    %c7 = arith.constant 7 : index
    %c0_45 = arith.constant 0 : index
    %c0_46 = arith.constant 0 : index
    %81 = vector.load %arg5[%c7, %c0_45, %c0_46] : memref<16x128x128xbf16, #tpu.memory_space<vmem>>, vector<1x128x128xbf16>
    %82 = vector.shape_cast %81 : vector<1x128x128xbf16> to vector<128x128xbf16>
    %cst_47 = arith.constant dense<0.000000e+00> : vector<64x128xf32>
    %83 = tpu.matmul %80, %82, %cst_47 {dimension_numbers = #tpu.dot_dimension_numbers<[1], [0], [0], [1], [0, 0, 1, 1], [], []>} : vector<64x128xbf16>, vector<128x128xbf16>, vector<64x128xf32> -> vector<64x128xf32>
    %84 = arith.addf %78, %83 : vector<64x128xf32>
    %85 = vector.extract_strided_slice %8 {offsets = [1, 0, 0], sizes = [8, 8, 128], strides = [1, 1, 1]} : vector<9x9x128xbf16> to vector<8x8x128xbf16>
    %86 = vector.shape_cast %85 : vector<8x8x128xbf16> to vector<64x128xbf16>
    %c8 = arith.constant 8 : index
    %c0_48 = arith.constant 0 : index
    %c0_49 = arith.constant 0 : index
    %87 = vector.load %arg5[%c8, %c0_48, %c0_49] : memref<16x128x128xbf16, #tpu.memory_space<vmem>>, vector<1x128x128xbf16>
    %88 = vector.shape_cast %87 : vector<1x128x128xbf16> to vector<128x128xbf16>
    %cst_50 = arith.constant dense<0.000000e+00> : vector<64x128xf32>
    %89 = tpu.matmul %86, %88, %cst_50 {dimension_numbers = #tpu.dot_dimension_numbers<[1], [0], [0], [1], [0, 0, 1, 1], [], []>} : vector<64x128xbf16>, vector<128x128xbf16>, vector<64x128xf32> -> vector<64x128xf32>
    %90 = arith.addf %84, %89 : vector<64x128xf32>
    %91 = vector.extract_strided_slice %17 {offsets = [1, 0, 0], sizes = [8, 8, 128], strides = [1, 1, 1]} : vector<9x9x128xbf16> to vector<8x8x128xbf16>
    %92 = vector.shape_cast %91 : vector<8x8x128xbf16> to vector<64x128xbf16>
    %c9 = arith.constant 9 : index
    %c0_51 = arith.constant 0 : index
    %c0_52 = arith.constant 0 : index
    %93 = vector.load %arg5[%c9, %c0_51, %c0_52] : memref<16x128x128xbf16, #tpu.memory_space<vmem>>, vector<1x128x128xbf16>
    %94 = vector.shape_cast %93 : vector<1x128x128xbf16> to vector<128x128xbf16>
    %cst_53 = arith.constant dense<0.000000e+00> : vector<64x128xf32>
    %95 = tpu.matmul %92, %94, %cst_53 {dimension_numbers = #tpu.dot_dimension_numbers<[1], [0], [0], [1], [0, 0, 1, 1], [], []>} : vector<64x128xbf16>, vector<128x128xbf16>, vector<64x128xf32> -> vector<64x128xf32>
    %96 = arith.addf %90, %95 : vector<64x128xf32>
    %97 = vector.extract_strided_slice %8 {offsets = [1, 1, 0], sizes = [8, 8, 128], strides = [1, 1, 1]} : vector<9x9x128xbf16> to vector<8x8x128xbf16>
    %98 = vector.shape_cast %97 : vector<8x8x128xbf16> to vector<64x128xbf16>
    %c10 = arith.constant 10 : index
    %c0_54 = arith.constant 0 : index
    %c0_55 = arith.constant 0 : index
    %99 = vector.load %arg5[%c10, %c0_54, %c0_55] : memref<16x128x128xbf16, #tpu.memory_space<vmem>>, vector<1x128x128xbf16>
    %100 = vector.shape_cast %99 : vector<1x128x128xbf16> to vector<128x128xbf16>
    %cst_56 = arith.constant dense<0.000000e+00> : vector<64x128xf32>
    %101 = tpu.matmul %98, %100, %cst_56 {dimension_numbers = #tpu.dot_dimension_numbers<[1], [0], [0], [1], [0, 0, 1, 1], [], []>} : vector<64x128xbf16>, vector<128x128xbf16>, vector<64x128xf32> -> vector<64x128xf32>
    %102 = arith.addf %96, %101 : vector<64x128xf32>
    %103 = vector.extract_strided_slice %17 {offsets = [1, 1, 0], sizes = [8, 8, 128], strides = [1, 1, 1]} : vector<9x9x128xbf16> to vector<8x8x128xbf16>
    %104 = vector.shape_cast %103 : vector<8x8x128xbf16> to vector<64x128xbf16>
    %c11 = arith.constant 11 : index
    %c0_57 = arith.constant 0 : index
    %c0_58 = arith.constant 0 : index
    %105 = vector.load %arg5[%c11, %c0_57, %c0_58] : memref<16x128x128xbf16, #tpu.memory_space<vmem>>, vector<1x128x128xbf16>
    %106 = vector.shape_cast %105 : vector<1x128x128xbf16> to vector<128x128xbf16>
    %cst_59 = arith.constant dense<0.000000e+00> : vector<64x128xf32>
    %107 = tpu.matmul %104, %106, %cst_59 {dimension_numbers = #tpu.dot_dimension_numbers<[1], [0], [0], [1], [0, 0, 1, 1], [], []>} : vector<64x128xbf16>, vector<128x128xbf16>, vector<64x128xf32> -> vector<64x128xf32>
    %108 = arith.addf %102, %107 : vector<64x128xf32>
    %109 = vector.extract_strided_slice %26 {offsets = [1, 0, 0], sizes = [8, 8, 128], strides = [1, 1, 1]} : vector<9x9x128xbf16> to vector<8x8x128xbf16>
    %110 = vector.shape_cast %109 : vector<8x8x128xbf16> to vector<64x128xbf16>
    %c12 = arith.constant 12 : index
    %c0_60 = arith.constant 0 : index
    %c0_61 = arith.constant 0 : index
    %111 = vector.load %arg5[%c12, %c0_60, %c0_61] : memref<16x128x128xbf16, #tpu.memory_space<vmem>>, vector<1x128x128xbf16>
    %112 = vector.shape_cast %111 : vector<1x128x128xbf16> to vector<128x128xbf16>
    %cst_62 = arith.constant dense<0.000000e+00> : vector<64x128xf32>
    %113 = tpu.matmul %110, %112, %cst_62 {dimension_numbers = #tpu.dot_dimension_numbers<[1], [0], [0], [1], [0, 0, 1, 1], [], []>} : vector<64x128xbf16>, vector<128x128xbf16>, vector<64x128xf32> -> vector<64x128xf32>
    %114 = arith.addf %108, %113 : vector<64x128xf32>
    %115 = vector.extract_strided_slice %35 {offsets = [1, 0, 0], sizes = [8, 8, 128], strides = [1, 1, 1]} : vector<9x9x128xbf16> to vector<8x8x128xbf16>
    %116 = vector.shape_cast %115 : vector<8x8x128xbf16> to vector<64x128xbf16>
    %c13 = arith.constant 13 : index
    %c0_63 = arith.constant 0 : index
    %c0_64 = arith.constant 0 : index
    %117 = vector.load %arg5[%c13, %c0_63, %c0_64] : memref<16x128x128xbf16, #tpu.memory_space<vmem>>, vector<1x128x128xbf16>
    %118 = vector.shape_cast %117 : vector<1x128x128xbf16> to vector<128x128xbf16>
    %cst_65 = arith.constant dense<0.000000e+00> : vector<64x128xf32>
    %119 = tpu.matmul %116, %118, %cst_65 {dimension_numbers = #tpu.dot_dimension_numbers<[1], [0], [0], [1], [0, 0, 1, 1], [], []>} : vector<64x128xbf16>, vector<128x128xbf16>, vector<64x128xf32> -> vector<64x128xf32>
    %120 = arith.addf %114, %119 : vector<64x128xf32>
    %121 = vector.extract_strided_slice %26 {offsets = [1, 1, 0], sizes = [8, 8, 128], strides = [1, 1, 1]} : vector<9x9x128xbf16> to vector<8x8x128xbf16>
    %122 = vector.shape_cast %121 : vector<8x8x128xbf16> to vector<64x128xbf16>
    %c14 = arith.constant 14 : index
    %c0_66 = arith.constant 0 : index
    %c0_67 = arith.constant 0 : index
    %123 = vector.load %arg5[%c14, %c0_66, %c0_67] : memref<16x128x128xbf16, #tpu.memory_space<vmem>>, vector<1x128x128xbf16>
    %124 = vector.shape_cast %123 : vector<1x128x128xbf16> to vector<128x128xbf16>
    %cst_68 = arith.constant dense<0.000000e+00> : vector<64x128xf32>
    %125 = tpu.matmul %122, %124, %cst_68 {dimension_numbers = #tpu.dot_dimension_numbers<[1], [0], [0], [1], [0, 0, 1, 1], [], []>} : vector<64x128xbf16>, vector<128x128xbf16>, vector<64x128xf32> -> vector<64x128xf32>
    %126 = arith.addf %120, %125 : vector<64x128xf32>
    %127 = vector.extract_strided_slice %35 {offsets = [1, 1, 0], sizes = [8, 8, 128], strides = [1, 1, 1]} : vector<9x9x128xbf16> to vector<8x8x128xbf16>
    %128 = vector.shape_cast %127 : vector<8x8x128xbf16> to vector<64x128xbf16>
    %c15 = arith.constant 15 : index
    %c0_69 = arith.constant 0 : index
    %c0_70 = arith.constant 0 : index
    %129 = vector.load %arg5[%c15, %c0_69, %c0_70] : memref<16x128x128xbf16, #tpu.memory_space<vmem>>, vector<1x128x128xbf16>
    %130 = vector.shape_cast %129 : vector<1x128x128xbf16> to vector<128x128xbf16>
    %cst_71 = arith.constant dense<0.000000e+00> : vector<64x128xf32>
    %131 = tpu.matmul %128, %130, %cst_71 {dimension_numbers = #tpu.dot_dimension_numbers<[1], [0], [0], [1], [0, 0, 1, 1], [], []>} : vector<64x128xbf16>, vector<128x128xbf16>, vector<64x128xf32> -> vector<64x128xf32>
    %132 = arith.addf %126, %131 : vector<64x128xf32>
    %133 = arith.truncf %132 : vector<64x128xf32> to vector<64x128xbf16>
    %c0_72 = arith.constant 0 : index
    %c0_73 = arith.constant 0 : index
    %c0_74 = arith.constant 0 : index
    %134 = vector.load %arg6[%c0_72, %c0_73, %c0_74] : memref<1x64x128xbf16, #tpu.memory_space<vmem>>, vector<1x64x128xbf16>
    %135 = vector.shape_cast %134 : vector<1x64x128xbf16> to vector<64x128xbf16>
    %136 = vector.shape_cast %133 : vector<64x128xbf16> to vector<1x64x128xbf16>
    tpu.vector_store %arg6[%c0_72, %c0_73, %c0_74], %136 {strides = array<i32>} : memref<1x64x128xbf16, #tpu.memory_space<vmem>>, vector<1x64x128xbf16>,
    return
  }
  func.func @transform_0(%arg0: i32) -> (i32, i32, i32, i32) {
    %c0_i32 = arith.constant 0 : i32
    %c0_i32_0 = arith.constant 0 : i32
    %c0_i32_1 = arith.constant 0 : i32
    %c0_i32_2 = arith.constant 0 : i32
    return %arg0, %c0_i32, %c0_i32_0, %c0_i32_1 : i32, i32, i32, i32
  }
  func.func @transform_1(%arg0: i32) -> (i32, i32, i32, i32) {
    %c0_i32 = arith.constant 0 : i32
    %c0_i32_0 = arith.constant 0 : i32
    %c0_i32_1 = arith.constant 0 : i32
    %c0_i32_2 = arith.constant 0 : i32
    return %arg0, %c0_i32, %c0_i32_0, %c0_i32_1 : i32, i32, i32, i32
  }
  func.func @transform_2(%arg0: i32) -> (i32, i32, i32, i32) {
    %c0_i32 = arith.constant 0 : i32
    %c0_i32_0 = arith.constant 0 : i32
    %c0_i32_1 = arith.constant 0 : i32
    %c0_i32_2 = arith.constant 0 : i32
    return %arg0, %c0_i32, %c0_i32_0, %c0_i32_1 : i32, i32, i32, i32
  }
  func.func @transform_3(%arg0: i32) -> (i32, i32, i32, i32) {
    %c0_i32 = arith.constant 0 : i32
    %c0_i32_0 = arith.constant 0 : i32
    %c0_i32_1 = arith.constant 0 : i32
    %c0_i32_2 = arith.constant 0 : i32
    return %arg0, %c0_i32, %c0_i32_0, %c0_i32_1 : i32, i32, i32, i32
  }
  func.func @transform_4(%arg0: i32) -> (i32, i32, i32) {
    %c0_i32 = arith.constant 0 : i32
    %c0_i32_0 = arith.constant 0 : i32
    %c0_i32_1 = arith.constant 0 : i32
    %c0_i32_2 = arith.constant 0 : i32
    return %c0_i32, %c0_i32_0, %c0_i32_1 : i32, i32, i32
  }
  func.func @transform_5(%arg0: i32) -> (i32, i32, i32) {
    %c0_i32 = arith.constant 0 : i32
    %c0_i32_0 = arith.constant 0 : i32
    %c0_i32_1 = arith.constant 0 : i32
    return %arg0, %c0_i32, %c0_i32_0 : i32, i32, i32
  }
}

module attributes {stable_mosaic.version = 11 : i64} {
  func.func @_bn_kernel(%arg0: i32, %arg1: memref<512x128xf32, #tpu.memory_space<vmem>>, %arg2: memref<1x128xf32, #tpu.memory_space<vmem>>, %arg3: memref<1x128xf32, #tpu.memory_space<vmem>>, %arg4: memref<512x128xf32, #tpu.memory_space<vmem>>) attributes {dimension_semantics = [#tpu.dimension_semantics<parallel>], iteration_bounds = array<i64: 1>, scalar_prefetch = 0 : i64, scratch_operands = 0 : i64, tpu.core_type = #tpu.core_type<tc>, window_params = [{transform_indices = @transform_0, window_bounds = array<i64: 512, 128>}, {pipeline_mode = #tpu.pipeline_mode<synchronous>, transform_indices = @transform_1, window_bounds = array<i64: 1, 128>}, {pipeline_mode = #tpu.pipeline_mode<synchronous>, transform_indices = @transform_2, window_bounds = array<i64: 1, 128>}, {transform_indices = @transform_3, window_bounds = array<i64: 512, 128>}]} {
    %c0 = arith.constant 0 : index
    %c0_0 = arith.constant 0 : index
    %0 = vector.load %arg1[%c0, %c0_0] : memref<512x128xf32, #tpu.memory_space<vmem>>, vector<512x128xf32>
    %c0_1 = arith.constant 0 : index
    %c0_2 = arith.constant 0 : index
    %1 = vector.load %arg2[%c0_1, %c0_2] : memref<1x128xf32, #tpu.memory_space<vmem>>, vector<1x128xf32>
    %2 = vector.broadcast %1 : vector<1x128xf32> to vector<512x128xf32>
    %3 = arith.mulf %0, %2 : vector<512x128xf32>
    %c0_3 = arith.constant 0 : index
    %c0_4 = arith.constant 0 : index
    %4 = vector.load %arg3[%c0_3, %c0_4] : memref<1x128xf32, #tpu.memory_space<vmem>>, vector<1x128xf32>
    %5 = vector.broadcast %4 : vector<1x128xf32> to vector<512x128xf32>
    %6 = arith.addf %3, %5 : vector<512x128xf32>
    %c0_5 = arith.constant 0 : index
    %c0_6 = arith.constant 0 : index
    %7 = vector.load %arg4[%c0_5, %c0_6] : memref<512x128xf32, #tpu.memory_space<vmem>>, vector<512x128xf32>
    tpu.vector_store %arg4[%c0_5, %c0_6], %6 {strides = array<i32>} : memref<512x128xf32, #tpu.memory_space<vmem>>, vector<512x128xf32>,
    return
  }
  func.func @transform_0(%arg0: i32) -> (i32, i32) {
    %c0_i32 = arith.constant 0 : i32
    %c0_i32_0 = arith.constant 0 : i32
    return %arg0, %c0_i32 : i32, i32
  }
  func.func @transform_1(%arg0: i32) -> (i32, i32) {
    %c0_i32 = arith.constant 0 : i32
    %c0_i32_0 = arith.constant 0 : i32
    %c0_i32_1 = arith.constant 0 : i32
    return %c0_i32, %c0_i32_0 : i32, i32
  }
  func.func @transform_2(%arg0: i32) -> (i32, i32) {
    %c0_i32 = arith.constant 0 : i32
    %c0_i32_0 = arith.constant 0 : i32
    %c0_i32_1 = arith.constant 0 : i32
    return %c0_i32, %c0_i32_0 : i32, i32
  }
  func.func @transform_3(%arg0: i32) -> (i32, i32) {
    %c0_i32 = arith.constant 0 : i32
    %c0_i32_0 = arith.constant 0 : i32
    return %arg0, %c0_i32 : i32, i32
  }
}

</mosaic_0001>

<bundles_post_ra>
// kernel: unet_innermost_forward.5
= control target key start
LH: loop header
LB: loop body
LE: loop exit
PB: predicated region body
PF: predicated region fallthrough
CT: control target
= control target key end

     0   :  { %s832_s0 = inlined_call_operand.vmem [shape: f32[512,128], index: 0, kind: input, shape index: {}]   ;;  %s833_s1 = inlined_call_operand.vmem [shape: f32[1,128], index: 1, kind: input, shape index: {}]   ;;  %s834_s2 = inlined_call_operand.vmem [shape: f32[1,128], index: 2, kind: input, shape index: {}]   ;;  %s835_s3 = inlined_call_operand.vmem [shape: f32[512,128], index: 3, kind: output, shape index: {}]  }
   0x1   :  { %v14_v0 = vld [vmem:[%s832_s0] sm:$0xff]  ;;  %v15_v4 = vld [vmem:[%s832_s0 + $0x8] sm:$0xff]  ;;  %v16_v5 = vld [vmem:[%s832_s0 + $0x10] sm:$0xff] }
   0x2   :  { %v316_v1 = vld [vmem:[%s833_s1] ss:$0 sm:$0xff]  ;;  %v17_v6 = vld [vmem:[%s832_s0 + $0x18] sm:$0xff]  ;;  %v19_v11 = vld [vmem:[%s832_s0 + $0x28] sm:$0xff] }
   0x3   :  { %v321_v2 = vld [vmem:[%s834_s2] ss:$0 sm:$0xff]  ;;  %v85_v3 = vmul.f32 %v316_v1, %v14_v0  ;;  %v86_v7 = vmul.f32 %v316_v1, %v15_v4  ;;  %v87_v8 = vmul.f32 %v316_v1, %v16_v5  ;;  %v88_v9 = vmul.f32 %v316_v1, %v17_v6  ;;  %v20_v12 = vld [vmem:[%s832_s0 + $0x30] sm:$0xff]  ;;  %v21_v17 = vld [vmem:[%s832_s0 + $0x38] sm:$0xff] }
   0x4   :  { %v18_v10 = vld [vmem:[%s832_s0 + $0x20] sm:$0xff]  ;;  %v90_v15 = vmul.f32 %v316_v1, %v19_v11  ;;  %v91_v16 = vmul.f32 %v316_v1, %v20_v12  ;;  %v23_v19 = vld [vmem:[%s832_s0 + $0x48] sm:$0xff]  ;;  %v92_v23 = vmul.f32 %v316_v1, %v21_v17  ;;  %v24_v24 = vld [vmem:[%s832_s0 + $0x50] sm:$0xff] }
   0x5   :  { %v156_v13 = vadd.f32 %v321_v2, %v85_v3  ;;  %v89_v14 = vmul.f32 %v316_v1, %v18_v10  ;;  %v22_v18 = vld [vmem:[%s832_s0 + $0x40] sm:$0xff]  ;;  %v157_v20 = vadd.f32 %v321_v2, %v86_v7  ;;  %v158_v21 = vadd.f32 %v321_v2, %v87_v8  ;;  %v25_v25 = vld [vmem:[%s832_s0 + $0x58] sm:$0xff]  ;;  %v27_v31 = vld [vmem:[%s832_s0 + $0x68] sm:$0xff] }
   0x6   :  { %v159_v22 = vadd.f32 %v321_v2, %v88_v9  ;;  %v26_v26 = vld [vmem:[%s832_s0 + $0x60] sm:$0xff]  ;;  %v161_v28 = vadd.f32 %v321_v2, %v90_v15  ;;  %v162_v29 = vadd.f32 %v321_v2, %v91_v16  ;;  %v93_v30 = vmul.f32 %v316_v1, %v22_v18  ;;  %v28_v32 = vld [vmem:[%s832_s0 + $0x70] sm:$0xff]  ;;  %v29_v33 = vld [vmem:[%s832_s0 + $0x78] sm:$0xff] }
   0x7   :  { %220 = vst [vmem:[%s835_s3] sm:$0xff] %v156_v13  ;;  %v160_v27 = vadd.f32 %v321_v2, %v89_v14  ;;  %221 = vst [vmem:[%s835_s3 + $0x8] sm:$0xff] %v157_v20  ;;  %v163_v34 = vadd.f32 %v321_v2, %v92_v23  ;;  %v94_v35 = vmul.f32 %v316_v1, %v23_v19  ;;  %v30_v38 = vld [vmem:[%s832_s0 + $0x80] sm:$0xff]  ;;  %v31_v43 = vld [vmem:[%s832_s0 + $0x88] sm:$0xff] }
   0x8   :  { %222 = vst [vmem:[%s835_s3 + $0x10] sm:$0xff] %v158_v21  ;;  %223 = vst [vmem:[%s835_s3 + $0x18] sm:$0xff] %v159_v22  ;;  %v95_v36 = vmul.f32 %v316_v1, %v24_v24  ;;  %v96_v37 = vmul.f32 %v316_v1, %v25_v25  ;;  %v164_v39 = vadd.f32 %v321_v2, %v93_v30  ;;  %v32_v44 = vld [vmem:[%s832_s0 + $0x90] sm:$0xff]  ;;  %v33_v45 = vld [vmem:[%s832_s0 + $0x98] sm:$0xff] }
   0x9   :  { %224 = vst [vmem:[%s835_s3 + $0x20] sm:$0xff] %v160_v27  ;;  %225 = vst [vmem:[%s835_s3 + $0x28] sm:$0xff] %v161_v28  ;;  %v97_v40 = vmul.f32 %v316_v1, %v26_v26  ;;  %v98_v41 = vmul.f32 %v316_v1, %v27_v31  ;;  %v99_v42 = vmul.f32 %v316_v1, %v28_v32  ;;  %v34_v50 = vld [vmem:[%s832_s0 + $0xa0] sm:$0xff]  ;;  %v35_v51 = vld [vmem:[%s832_s0 + $0xa8] sm:$0xff] }
   0xa   :  { %226 = vst [vmem:[%s835_s3 + $0x30] sm:$0xff] %v162_v29  ;;  %227 = vst [vmem:[%s835_s3 + $0x38] sm:$0xff] %v163_v34  ;;  %v165_v46 = vadd.f32 %v321_v2, %v94_v35  ;;  %v166_v47 = vadd.f32 %v321_v2, %v95_v36  ;;  %v167_v48 = vadd.f32 %v321_v2, %v96_v37  ;;  %v36_v52 = vld [vmem:[%s832_s0 + $0xb0] sm:$0xff]  ;;  %v37_v57 = vld [vmem:[%s832_s0 + $0xb8] sm:$0xff] }
   0xb   :  { %v100_v49 = vmul.f32 %v316_v1, %v29_v33  ;;  %228 = vst [vmem:[%s835_s3 + $0x40] sm:$0xff] %v164_v39  ;;  %v168_v53 = vadd.f32 %v321_v2, %v97_v40  ;;  %v169_v54 = vadd.f32 %v321_v2, %v98_v41  ;;  %v170_v55 = vadd.f32 %v321_v2, %v99_v42  ;;  %v38_v62 = vld [vmem:[%s832_s0 + $0xc0] sm:$0xff]  ;;  %v39_v5 = vld [vmem:[%s832_s0 + $0xc8] sm:$0xff]  ;;  %v40_v6 = vld [vmem:[%s832_s0 + $0xd0] sm:$0xff] }
   0xc   :  { %v101_v56 = vmul.f32 %v316_v1, %v30_v38  ;;  %229 = vst [vmem:[%s835_s3 + $0x48] sm:$0xff] %v165_v46  ;;  %230 = vst [vmem:[%s835_s3 + $0x50] sm:$0xff] %v166_v47  ;;  %v102_v59 = vmul.f32 %v316_v1, %v31_v43  ;;  %v103_v60 = vmul.f32 %v316_v1, %v32_v44  ;;  %v41_v7 = vld [vmem:[%s832_s0 + $0xd8] sm:$0xff]  ;;  %v42_v12 = vld [vmem:[%s832_s0 + $0xe0] sm:$0xff] }
   0xd   :  { %231 = vst [vmem:[%s835_s3 + $0x58] sm:$0xff] %v167_v48  ;;  %v171_v58 = vadd.f32 %v321_v2, %v100_v49  ;;  %v104_v61 = vmul.f32 %v316_v1, %v33_v45  ;;  %232 = vst [vmem:[%s835_s3 + $0x60] sm:$0xff] %v168_v53  ;;  %v105_v0 = vmul.f32 %v316_v1, %v34_v50  ;;  %v43_v13 = vld [vmem:[%s832_s0 + $0xe8] sm:$0xff]  ;;  %v44_v14 = vld [vmem:[%s832_s0 + $0xf0] sm:$0xff] }
   0xe   :  { %233 = vst [vmem:[%s835_s3 + $0x68] sm:$0xff] %v169_v54  ;;  %234 = vst [vmem:[%s835_s3 + $0x70] sm:$0xff] %v170_v55  ;;  %v172_v63 = vadd.f32 %v321_v2, %v101_v56  ;;  %v106_v3 = vmul.f32 %v316_v1, %v35_v51  ;;  %v107_v4 = vmul.f32 %v316_v1, %v36_v52  ;;  %v45_v19 = vld [vmem:[%s832_s0 + $0xf8] sm:$0xff]  ;;  %v46_v24 = vld [vmem:[%s832_s0 + $0x100] sm:$0xff] }
   0xf   :  { %235 = vst [vmem:[%s835_s3 + $0x78] sm:$0xff] %v171_v58  ;;  %v173_v8 = vadd.f32 %v321_v2, %v102_v59  ;;  %v174_v9 = vadd.f32 %v321_v2, %v103_v60  ;;  %v175_v10 = vadd.f32 %v321_v2, %v104_v61  ;;  %v108_v11 = vmul.f32 %v316_v1, %v37_v57  ;;  %v47_v29 = vld [vmem:[%s832_s0 + $0x108] sm:$0xff]  ;;  %v48_v30 = vld [vmem:[%s832_s0 + $0x110] sm:$0xff]  ;;  %v49_v31 = vld [vmem:[%s832_s0 + $0x118] sm:$0xff] }
  0x10   :  { %236 = vst [vmem:[%s835_s3 + $0x80] sm:$0xff] %v172_v63  ;;  %v176_v15 = vadd.f32 %v321_v2, %v105_v0  ;;  %v177_v16 = vadd.f32 %v321_v2, %v106_v3  ;;  %v178_v17 = vadd.f32 %v321_v2, %v107_v4  ;;  %v109_v18 = vmul.f32 %v316_v1, %v38_v62  ;;  %v50_v36 = vld [vmem:[%s832_s0 + $0x120] sm:$0xff]  ;;  %v51_v37 = vld [vmem:[%s832_s0 + $0x128] sm:$0xff]  ;;  %v52_v38 = vld [vmem:[%s832_s0 + $0x130] sm:$0xff] }
  0x11   :  { %237 = vst [vmem:[%s835_s3 + $0x88] sm:$0xff] %v173_v8  ;;  %238 = vst [vmem:[%s835_s3 + $0x90] sm:$0xff] %v174_v9  ;;  %v179_v20 = vadd.f32 %v321_v2, %v108_v11  ;;  %v110_v21 = vmul.f32 %v316_v1, %v39_v5  ;;  %v111_v22 = vmul.f32 %v316_v1, %v40_v6  ;;  %v53_v43 = vld [vmem:[%s832_s0 + $0x138] sm:$0xff]  ;;  %v54_v48 = vld [vmem:[%s832_s0 + $0x140] sm:$0xff] }
  0x12   :  { %239 = vst [vmem:[%s835_s3 + $0x98] sm:$0xff] %v175_v10  ;;  %v112_v23 = vmul.f32 %v316_v1, %v41_v7  ;;  %240 = vst [vmem:[%s835_s3 + $0xa0] sm:$0xff] %v176_v15  ;;  %v180_v25 = vadd.f32 %v321_v2, %v109_v18  ;;  %v113_v26 = vmul.f32 %v316_v1, %v42_v12  ;;  %v55_v53 = vld [vmem:[%s832_s0 + $0x148] sm:$0xff]  ;;  %v56_v54 = vld [vmem:[%s832_s0 + $0x150] sm:$0xff] }
  0x13   :  { %241 = vst [vmem:[%s835_s3 + $0xa8] sm:$0xff] %v177_v16  ;;  %242 = vst [vmem:[%s835_s3 + $0xb0] sm:$0xff] %v178_v17  ;;  %v114_v27 = vmul.f32 %v316_v1, %v43_v13  ;;  %v115_v28 = vmul.f32 %v316_v1, %v44_v14  ;;  %v181_v32 = vadd.f32 %v321_v2, %v110_v21  ;;  %v57_v55 = vld [vmem:[%s832_s0 + $0x158] sm:$0xff]  ;;  %v58_v60 = vld [vmem:[%s832_s0 + $0x160] sm:$0xff] }
  0x14   :  { %243 = vst [vmem:[%s835_s3 + $0xb8] sm:$0xff] %v179_v20  ;;  %v182_v33 = vadd.f32 %v321_v2, %v111_v22  ;;  %v183_v34 = vadd.f32 %v321_v2, %v112_v23  ;;  %v116_v35 = vmul.f32 %v316_v1, %v45_v19  ;;  %244 = vst [vmem:[%s835_s3 + $0xc0] sm:$0xff] %v180_v25  ;;  %v59_v61 = vld [vmem:[%s832_s0 + $0x168] sm:$0xff]  ;;  %v60_v62 = vld [vmem:[%s832_s0 + $0x170] sm:$0xff] }
  0x15   :  { %v184_v39 = vadd.f32 %v321_v2, %v113_v26  ;;  %v185_v40 = vadd.f32 %v321_v2, %v114_v27  ;;  %v186_v41 = vadd.f32 %v321_v2, %v115_v28  ;;  %v117_v42 = vmul.f32 %v316_v1, %v46_v24  ;;  %245 = vst [vmem:[%s835_s3 + $0xc8] sm:$0xff] %v181_v32  ;;  %v61_v5 = vld [vmem:[%s832_s0 + $0x178] sm:$0xff]  ;;  %v62_v10 = vld [vmem:[%s832_s0 + $0x180] sm:$0xff]  ;;  %v63_v15 = vld [vmem:[%s832_s0 + $0x188] sm:$0xff] }
  0x16   :  { %246 = vst [vmem:[%s835_s3 + $0xd0] sm:$0xff] %v182_v33  ;;  %247 = vst [vmem:[%s835_s3 + $0xd8] sm:$0xff] %v183_v34  ;;  %v187_v44 = vadd.f32 %v321_v2, %v116_v35  ;;  %v118_v45 = vmul.f32 %v316_v1, %v47_v29  ;;  %v119_v46 = vmul.f32 %v316_v1, %v48_v30  ;;  %v64_v16 = vld [vmem:[%s832_s0 + $0x190] sm:$0xff]  ;;  %v65_v17 = vld [vmem:[%s832_s0 + $0x198] sm:$0xff] }
  0x17   :  { %v120_v47 = vmul.f32 %v316_v1, %v49_v31  ;;  %248 = vst [vmem:[%s835_s3 + $0xe0] sm:$0xff] %v184_v39  ;;  %249 = vst [vmem:[%s835_s3 + $0xe8] sm:$0xff] %v185_v40  ;;  %v188_v49 = vadd.f32 %v321_v2, %v117_v42  ;;  %v121_v50 = vmul.f32 %v316_v1, %v50_v36  ;;  %v66_v22 = vld [vmem:[%s832_s0 + $0x1a0] sm:$0xff]  ;;  %v67_v23 = vld [vmem:[%s832_s0 + $0x1a8] sm:$0xff] }
  0x18   :  { %250 = vst [vmem:[%s835_s3 + $0xf0] sm:$0xff] %v186_v41  ;;  %v122_v51 = vmul.f32 %v316_v1, %v51_v37  ;;  %v123_v52 = vmul.f32 %v316_v1, %v52_v38  ;;  %251 = vst [vmem:[%s835_s3 + $0xf8] sm:$0xff] %v187_v44  ;;  %v189_v56 = vadd.f32 %v321_v2, %v118_v45  ;;  %v68_v24 = vld [vmem:[%s832_s0 + $0x1b0] sm:$0xff]  ;;  %v69_v29 = vld [vmem:[%s832_s0 + $0x1b8] sm:$0xff] }
  0x19   :  { %v190_v57 = vadd.f32 %v321_v2, %v119_v46  ;;  %v191_v58 = vadd.f32 %v321_v2, %v120_v47  ;;  %v124_v59 = vmul.f32 %v316_v1, %v53_v43  ;;  %252 = vst [vmem:[%s835_s3 + $0x100] sm:$0xff] %v188_v49  ;;  %v192_v63 = vadd.f32 %v321_v2, %v121_v50  ;;  %v70_v34 = vld [vmem:[%s832_s0 + $0x1c0] sm:$0xff]  ;;  %v71_v39 = vld [vmem:[%s832_s0 + $0x1c8] sm:$0xff]  ;;  %v72_v40 = vld [vmem:[%s832_s0 + $0x1d0] sm:$0xff] }
  0x1a   :  { %v193_v0 = vadd.f32 %v321_v2, %v122_v51  ;;  %v194_v3 = vadd.f32 %v321_v2, %v123_v52  ;;  %v125_v4 = vmul.f32 %v316_v1, %v54_v48  ;;  %253 = vst [vmem:[%s835_s3 + $0x108] sm:$0xff] %v189_v56  ;;  %v126_v7 = vmul.f32 %v316_v1, %v55_v53  ;;  %v73_v41 = vld [vmem:[%s832_s0 + $0x1d8] sm:$0xff]  ;;  %v74_v46 = vld [vmem:[%s832_s0 + $0x1e0] sm:$0xff]  ;;  %v75_v47 = vld [vmem:[%s832_s0 + $0x1e8] sm:$0xff] }
  0x1b   :  { %254 = vst [vmem:[%s835_s3 + $0x110] sm:$0xff] %v190_v57  ;;  %255 = vst [vmem:[%s835_s3 + $0x118] sm:$0xff] %v191_v58  ;;  %v195_v6 = vadd.f32 %v321_v2, %v124_v59  ;;  %v127_v8 = vmul.f32 %v316_v1, %v56_v54  ;;  %v128_v9 = vmul.f32 %v316_v1, %v57_v55  ;;  %v76_v48 = vld [vmem:[%s832_s0 + $0x1f0] sm:$0xff]  ;;  %v77_v53 = vld [vmem:[%s832_s0 + $0x1f8] sm:$0xff] }
  0x1c   :  { %256 = vst [vmem:[%s835_s3 + $0x120] sm:$0xff] %v192_v63  ;;  %257 = vst [vmem:[%s835_s3 + $0x128] sm:$0xff] %v193_v0  ;;  %v196_v11 = vadd.f32 %v321_v2, %v125_v4  ;;  %v129_v12 = vmul.f32 %v316_v1, %v58_v60  ;;  %v130_v13 = vmul.f32 %v316_v1, %v59_v61 }
  0x1d   :  { %258 = vst [vmem:[%s835_s3 + $0x130] sm:$0xff] %v194_v3  ;;  %v131_v14 = vmul.f32 %v316_v1, %v60_v62  ;;  %259 = vst [vmem:[%s835_s3 + $0x138] sm:$0xff] %v195_v6  ;;  %v197_v18 = vadd.f32 %v321_v2, %v126_v7  ;;  %v198_v19 = vadd.f32 %v321_v2, %v127_v8 }
  0x1e   :  { %v199_v20 = vadd.f32 %v321_v2, %v128_v9  ;;  %v132_v21 = vmul.f32 %v316_v1, %v61_v5  ;;  %260 = vst [vmem:[%s835_s3 + $0x140] sm:$0xff] %v196_v11  ;;  %v200_v25 = vadd.f32 %v321_v2, %v129_v12  ;;  %v201_v26 = vadd.f32 %v321_v2, %v130_v13 }
  0x1f   :  { %v202_v27 = vadd.f32 %v321_v2, %v131_v14  ;;  %v133_v28 = vmul.f32 %v316_v1, %v62_v10  ;;  %261 = vst [vmem:[%s835_s3 + $0x148] sm:$0xff] %v197_v18  ;;  %262 = vst [vmem:[%s835_s3 + $0x150] sm:$0xff] %v198_v19  ;;  %v134_v31 = vmul.f32 %v316_v1, %v63_v15 }
  0x20   :  { %263 = vst [vmem:[%s835_s3 + $0x158] sm:$0xff] %v199_v20  ;;  %v203_v30 = vadd.f32 %v321_v2, %v132_v21  ;;  %v135_v32 = vmul.f32 %v316_v1, %v64_v16  ;;  %v136_v33 = vmul.f32 %v316_v1, %v65_v17  ;;  %264 = vst [vmem:[%s835_s3 + $0x160] sm:$0xff] %v200_v25 }
  0x21   :  { %265 = vst [vmem:[%s835_s3 + $0x168] sm:$0xff] %v201_v26  ;;  %266 = vst [vmem:[%s835_s3 + $0x170] sm:$0xff] %v202_v27  ;;  %v204_v35 = vadd.f32 %v321_v2, %v133_v28  ;;  %v137_v36 = vmul.f32 %v316_v1, %v66_v22  ;;  %v138_v37 = vmul.f32 %v316_v1, %v67_v23 }
  0x22   :  { %v139_v38 = vmul.f32 %v316_v1, %v68_v24  ;;  %267 = vst [vmem:[%s835_s3 + $0x178] sm:$0xff] %v203_v30  ;;  %v205_v42 = vadd.f32 %v321_v2, %v134_v31  ;;  %v206_v43 = vadd.f32 %v321_v2, %v135_v32  ;;  %v207_v44 = vadd.f32 %v321_v2, %v136_v33 }
  0x23   :  { %v140_v45 = vmul.f32 %v316_v1, %v69_v29  ;;  %268 = vst [vmem:[%s835_s3 + $0x180] sm:$0xff] %v204_v35  ;;  %v208_v49 = vadd.f32 %v321_v2, %v137_v36  ;;  %v209_v50 = vadd.f32 %v321_v2, %v138_v37  ;;  %v141_v52 = vmul.f32 %v316_v1, %v70_v34 }
  0x24   :  { %v210_v51 = vadd.f32 %v321_v2, %v139_v38  ;;  %269 = vst [vmem:[%s835_s3 + $0x188] sm:$0xff] %v205_v42  ;;  %270 = vst [vmem:[%s835_s3 + $0x190] sm:$0xff] %v206_v43  ;;  %v142_v55 = vmul.f32 %v316_v1, %v71_v39  ;;  %v143_v56 = vmul.f32 %v316_v1, %v72_v40 }
  0x25   :  { %271 = vst [vmem:[%s835_s3 + $0x198] sm:$0xff] %v207_v44  ;;  %v211_v54 = vadd.f32 %v321_v2, %v140_v45  ;;  %v144_v57 = vmul.f32 %v316_v1, %v73_v41  ;;  %272 = vst [vmem:[%s835_s3 + $0x1a0] sm:$0xff] %v208_v49  ;;  %v212_v58 = vadd.f32 %v321_v2, %v141_v52 }
  0x26   :  { %273 = vst [vmem:[%s835_s3 + $0x1a8] sm:$0xff] %v209_v50  ;;  %274 = vst [vmem:[%s835_s3 + $0x1b0] sm:$0xff] %v210_v51  ;;  %v145_v59 = vmul.f32 %v316_v1, %v74_v46  ;;  %v146_v60 = vmul.f32 %v316_v1, %v75_v47  ;;  %v147_v61 = vmul.f32 %v316_v1, %v76_v48 }
  0x27   :  { %275 = vst [vmem:[%s835_s3 + $0x1b8] sm:$0xff] %v211_v54  ;;  %v213_v62 = vadd.f32 %v321_v2, %v142_v55  ;;  %v214_v63 = vadd.f32 %v321_v2, %v143_v56  ;;  %v215_v0 = vadd.f32 %v321_v2, %v144_v57  ;;  %v148_v3 = vmul.f32 %v316_v1, %v77_v53 }
  0x28   :  { %276 = vst [vmem:[%s835_s3 + $0x1c0] sm:$0xff] %v212_v58  ;;  %v216_v4 = vadd.f32 %v321_v2, %v145_v59  ;;  %v217_v5 = vadd.f32 %v321_v2, %v146_v60  ;;  %v218_v6 = vadd.f32 %v321_v2, %v147_v61 }
  0x29   :  { %277 = vst [vmem:[%s835_s3 + $0x1c8] sm:$0xff] %v213_v62  ;;  %278 = vst [vmem:[%s835_s3 + $0x1d0] sm:$0xff] %v214_v63  ;;  %v219_v1 = vadd.f32 %v321_v2, %v148_v3 }
  0x2a   :  { %279 = vst [vmem:[%s835_s3 + $0x1d8] sm:$0xff] %v215_v0  ;;  %280 = vst [vmem:[%s835_s3 + $0x1e0] sm:$0xff] %v216_v4 }
  0x2b   :  { %281 = vst [vmem:[%s835_s3 + $0x1e8] sm:$0xff] %v217_v5  ;;  %282 = vst [vmem:[%s835_s3 + $0x1f0] sm:$0xff] %v218_v6 }
  0x2c   :  { %283 = vst [vmem:[%s835_s3 + $0x1f8] sm:$0xff] %v219_v1 }

// kernel: unet_innermost_forward.4
= control target key start
LH: loop header
LB: loop body
LE: loop exit
PB: predicated region body
PF: predicated region fallthrough
CT: control target
= control target key end

     0   :  { %s5005_s15 = smov 0   ;;  %s6120_s0 = inlined_call_operand.vmem [shape: bf16[2,18,18,128], index: 0, kind: input, shape index: {}]   ;;  %s6121_s1 = inlined_call_operand.vmem [shape: bf16[9,128,128], index: 1, kind: input, shape index: {}]   ;;  %s6122_s2 = inlined_call_operand.vmem [shape: f32[2,256,128], index: 2, kind: output, shape index: {0}]   ;;  %s6123_s3 = inlined_call_operand.vmem [shape: f32[2,8,128], index: 3, kind: output, shape index: {1}]   ;;  %s6124_s4 = inlined_call_operand.vmem [shape: f32[2,8,128], index: 4, kind: output, shape index: {2}]  }
   0x1 LB: > { %s3676_s16 = sadd.s32 4294967295, %s4977_s15   ;;  %p3680_p0 = scmp.ge.s32.totalorder %s4977_s15, 1  ;;  %s4977_s15 = sphi %s5005_s15, %s15_s15  }
   0x2   : > { %p167_p1 = scmp.lt.s32.totalorder %s4977_s15, 3 }
   0x4   : > { %p168_p2 = pnand %p3680_p0, %p167_p1 }
   0x6   : > { %171 = sbr.rel (%p168_p2) target bundleno = 588 (0x24c), region = 28 }
   0xd   : > { %v4891_v0 = vld [vmem:[%s6121_s1 + $0x40] sm:$0xff]   ;;  %p201_p3 = scmp.lt.s32.totalorder %s3676_s16, 1  ;;  %v4893_v2 = vld [vmem:[%s6121_s1 + $0x48] sm:$0xff]   ;;  %v4895_v4 = vld [vmem:[%s6121_s1 + $0x50] sm:$0xff]   ;;  %v6125_v15 = vmov 0   ;;  %vm1342_vm3 = vcmask 1042432  }
   0xe   : > { %v4892_v1 = vld [vmem:[%s6121_s1 + $0x100] sm:$0xff]   ;;  %4177 = vmatprep.subr.bf16.mxu1 %v4891_v0  ;;  %v4894_v3 = vld [vmem:[%s6121_s1 + $0x108] sm:$0xff]   ;;  %v4896_v5 = vld [vmem:[%s6121_s1 + $0x110] sm:$0xff]   ;;  %vm344_vm0 = vsmask.f32 3328  ;;  %vm1343_vm4 = vcmask 1046532  }
   0xf   : > { %4369 = vmatprep.subr.bf16.mxu0 %v4892_v1  ;;  %4178 = vmatpush3.bf16.msra.mxu1 %v4891_v0  ;;  %s6216_s16 = smov (!%p201_p3, %s3676_s16), 1  ;;  %v4897_v6 = vld [vmem:[%s6121_s1 + $0x58] sm:$0xff]   ;;  %v4899_v8 = vld [vmem:[%s6121_s1 + $0x60] sm:$0xff]   ;;  %v4901_v10 = vld [vmem:[%s6121_s1 + $0x68] sm:$0xff]   ;;  %vm345_vm1 = vsmask.f32 7440 }
  0x10   : > { %4370 = vmatpush3.bf16.msra.mxu0 %v4892_v1  ;;  %4179 = vmatprep.subr.bf16.mxu1 %v4893_v2  ;;  %v4898_v7 = vld [vmem:[%s6121_s1 + $0x118] sm:$0xff]   ;;  %s4881_s7 = smul.u32 216, %s6216_s16  ;;  %v4900_v9 = vld [vmem:[%s6121_s1 + $0x120] sm:$0xff]   ;;  %v4902_v11 = vld [vmem:[%s6121_s1 + $0x128] sm:$0xff]   ;;  %s3960_s18 = sshll.u32 %s6216_s16, 8 }
  0x11   : > { %4371 = vmatprep.subr.bf16.mxu0 %v4894_v3  ;;  %v4903_v21 = vld [vmem:[%s6121_s1 + $0x70] sm:$0xff]   ;;  %v4905_v40 = vld [vmem:[%s6121_s1 + $0x78] sm:$0xff]   ;;  %vm5105_vm2 = vmor %vm344_vm0, %vm345_vm1  ;;  %s6071_s21 = scalar_lea.vmem %s6122_s2, %s3960_s18  ;;  %s3684_s22 = sshll.u32 %s6216_s16, 3 }
  0x12   : > { %s5049_s14 = scalar_lea.vmem %s6120_s0, %s4881_s7  ;;  %v4904_v29 = vld [vmem:[%s6121_s1 + $0x130] sm:$0xff]   ;;  %v4906_v55 = vld [vmem:[%s6121_s1 + $0x138] sm:$0xff]   ;;  %vm5329_vm5 = vmor %vm1342_vm3, %vm1343_vm4  ;;  %s214_s25 = scalar_lea.vmem %s6123_s3, %s3684_s22 }
  0x13   : > { %4180 = vmatpush3.bf16.msra.mxu1 %v4893_v2  ;;  %v220_v12 = vld [vmem:[%s5049_s14] sm:$0xf]  ;;  %v221_v13 = vld [vmem:[%s5049_s14 + $0x4] sm:$0xf]  ;;  %v222_v14 = vld [vmem:[%s5049_s14 + $0x8] sm:$0x1]  ;;  %s218_s28 = scalar_lea.vmem %s6124_s4, %s3684_s22 }
  0x14   : > { %4372 = vmatpush3.bf16.msra.mxu0 %v4894_v3  ;;  %4181 = vmatprep.subr.bf16.mxu1 %v4895_v4  ;;  %v5061_v16 = vmax.bf16 %v6125_v15, %v220_v12  ;;  %v5064_v17 = vmax.bf16 %v6125_v15, %v221_v13  ;;  %v5067_v18 = vmax.bf16 %v6125_v15, %v222_v14  ;;  %v223_v19 = vld [vmem:[%s5049_s14 + $0xc] sm:$0xf]  ;;  %v224_v20 = vld [vmem:[%s5049_s14 + $0x10] sm:$0xf]  ;;  %v225_v22 = vld [vmem:[%s5049_s14 + $0x14] sm:$0x1] }
  0x15   : > { %4373 = vmatprep.subr.bf16.mxu0 %v4896_v5  ;;  %v5076_v23 = vmax.bf16 %v6125_v15, %v223_v19  ;;  %v5079_v24 = vmax.bf16 %v6125_v15, %v224_v20  ;;  %v5090_v31 = vmax.bf16 %v6125_v15, %v225_v22  ;;  %v226_v34 = vld [vmem:[%s5049_s14 + $0x18] sm:$0xf]  ;;  %v227_v39 = vld [vmem:[%s5049_s14 + $0x1c] sm:$0xf]  ;;  %v228_v45 = vld [vmem:[%s5049_s14 + $0x20] sm:$0x1] }
  0x16   : > { %6161 = vst [vmem:[#allocation2_spill] sm:$0xff] %v5067_v18  ;;  %v348_v25 = vshrl.u32 %v5061_v16, 16  ;;  %v351_v26 = vshll.u32 %v5061_v16, 16  ;;  %v357_v27 = vshll.u32 %v5064_v17, 16  ;;  %v361_v28 = vshrl.u32 %v5064_v17, 16  ;;  %v5141_v20 = vld [vmem:[%s6121_s1 + $0x140] sm:$0xff]  }
  0x17   : > { %4182 = vmatpush3.bf16.msra.mxu1 %v4895_v4  ;;  %v367_v30 = vshll.u32 %v5067_v18, 16  ;;  %v372_v32 = vshrl.u32 %v5076_v23, 16  ;;  %v375_v33 = vshll.u32 %v5076_v23, 16  ;;  %v381_v44 = vshll.u32 %v5079_v24, 16  ;;  %v229_v0 = vld [vmem:[%s5049_s14 + $0x24] sm:$0xf] }
  0x18   : > { %4374 = vmatpush3.bf16.msra.mxu0 %v4896_v5  ;;  %4183 = vmatprep.subr.bf16.mxu1 %v4897_v6  ;;  %v350_v35 = vrot.slane %v348_v25, 4  ;;  %v353_v36 = vrot.slane %v351_v26, 5  ;;  %v359_v37 = vrot.slane %v357_v27, 5  ;;  %v363_v38 = vrot.slane %v361_v28, 4  ;;  %v4907_v4 = vld [vmem:[%s6121_s1] sm:$0xff]   ;;  %v4970_v50 = vld [vmem:[%s6121_s1 + $0x138] sm:$0xff]  }
  0x19   : > { %4375 = vmatprep.subr.bf16.mxu0 %v4898_v7  ;;  %v369_v41 = vrot.slane %v367_v30, 5  ;;  %v374_v42 = vrot.slane %v372_v32, 4  ;;  %v377_v43 = vrot.slane %v375_v33, 5  ;;  %v385_v48 = vshrl.u32 %v5079_v24, 16  ;;  %v232_v27 = vld [vmem:[%s5049_s14 + $0x30] sm:$0xf] }
  0x1a   : > { %v354_v46 = vor.u32 %v353_v36, %v350_v35  ;;  %v364_v47 = vor.u32 %v363_v38, %v359_v37  ;;  %v391_v49 = vshll.u32 %v5090_v31, 16  ;;  %v383_v52 = vrot.slane %v381_v44, 5  ;;  %v233_v33 = vld [vmem:[%s5049_s14 + $0x34] sm:$0xf] }
  0x1b   : > { %4184 = vmatpush3.bf16.msra.mxu1 %v4897_v6  ;;  %v378_v51 = vor.u32 %v377_v43, %v374_v42  ;;  %v5110_v53 = vmax.bf16 %v6125_v15, %v226_v34  ;;  %v5113_v54 = vmax.bf16 %v6125_v15, %v227_v39  ;;  %v387_v58 = vrot.slane %v385_v48, 4  ;;  %v230_v6 = vld [vmem:[%s5049_s14 + $0x28] sm:$0xf]  ;;  %v234_v34 = vld [vmem:[%s5049_s14 + $0x38] sm:$0x1] }
  0x1c   : > { %4376 = vmatpush3.bf16.msra.mxu0 %v4898_v7  ;;  %4185 = vmatprep.subr.bf16.mxu1 %v4899_v8  ;;  %v355_v56 = vrot.slane %v354_v46, 4  ;;  %v365_v57 = vrot.slane %v364_v47, 4  ;;  %v393_v59 = vrot.slane %v391_v49, 5  ;;  %v5119_v61 = vmax.bf16 %v6125_v15, %v228_v45  ;;  %v231_v7 = vld [vmem:[%s5049_s14 + $0x2c] sm:$0x1] }
  0x1d   : > { %4377 = vmatprep.subr.bf16.mxu0 %v4900_v9  ;;  %v379_v60 = vrot.slane %v378_v51, 4  ;;  %v396_v62 = vshrl.u32 %v5110_v53, 16  ;;  %v399_v63 = vshll.u32 %v5110_v53, 16  ;;  %v388_v3 = vor.u32 %v387_v58, %v383_v52  ;;  %v4910_v39 = vld [vmem:[%s6121_s1 + $0x8] sm:$0xff]   ;;  %v235_v48 = vld [vmem:[%s5049_s14 + $0x3c] sm:$0xf] }
  0x1e   : > { %v360_v1 = vsel %vm5105_vm2, %v355_v56, %v359_v37  ;;  %v370_v2 = vsel %vm5105_vm2, %v365_v57, %v369_v41  ;;  %v405_v5 = vshll.u32 %v5113_v54, 16  ;;  %v409_v14 = vshrl.u32 %v5113_v54, 16 }
  0x1f   : > { %4186 = vmatpush3.bf16.msra.mxu1 %v4899_v8  ;;  %v3702_v8 = vcombine.low %v360_v1, %v370_v2  ;;  %v389_v12 = vrot.slane %v388_v3, 4  ;;  %v415_v19 = vshll.u32 %v5119_v61, 16  ;;  %v5145_v25 = vmax.bf16 %v6125_v15, %v229_v0  ;;  %v236_v0 = vld [vmem:[%s5049_s14 + $0x40] sm:$0xf]  ;;  %v237_v1 = vld [vmem:[%s5049_s14 + $0x44] sm:$0x1] }
  0x20   : > { %4378 = vmatpush3.bf16.msra.mxu0 %v4900_v9  ;;  %4187 = vmatprep.subr.bf16.mxu1 %v4901_v10  ;;  %v384_v9 = vsel %vm5105_vm2, %v379_v60, %v383_v52  ;;  %v407_v13 = vrot.slane %v405_v5, 5  ;;  %v5148_v26 = vmax.bf16 %v6125_v15, %v230_v6  ;;  %v5154_v32 = vmax.bf16 %v6125_v15, %v231_v7  ;;  %v4913_v3 = vld [vmem:[%s6121_s1 + $0x10] sm:$0xff]   ;;  %v4909_v5 = vld [vmem:[%s6121_s1 + $0x148] sm:$0xff]  }
  0x21   : > { %4379 = vmatprep.subr.bf16.mxu0 %v4902_v11  ;;  %4193 = vmatprep.mubr.bf16.mxu1 %v3702_v8  ;;  %v394_v28 = vsel %vm5105_vm2, %v389_v12, %v393_v59  ;;  %v417_v30 = vrot.slane %v415_v19, 5  ;;  %v420_v37 = vshrl.u32 %v5145_v25, 16  ;;  %v423_v38 = vshll.u32 %v5145_v25, 16 }
  0x22   : > { %v3703_v35 = vcombine.low %v384_v9, %v394_v28  ;;  %v429_v41 = vshll.u32 %v5148_v26, 16  ;;  %v433_v42 = vshrl.u32 %v5148_v26, 16  ;;  %v439_v43 = vshll.u32 %v5154_v32, 16  ;;  %v4916_v28 = vld [vmem:[%s6121_s1 + $0x18] sm:$0xff]  }
  0x23   : > { %4188 = vmatpush3.bf16.msra.mxu1 %v4901_v10  ;;  %v398_v10 = vrot.slane %v396_v62, 4  ;;  %v422_v45 = vrot.slane %v420_v37, 4  ;;  %v425_v46 = vrot.slane %v423_v38, 5  ;;  %v5170_v47 = vmax.bf16 %v6125_v15, %v232_v27  ;;  %v4911_v37 = vld [vmem:[%s6121_s1 + $0x150] sm:$0xff]  }
  0x24   : > { %4380 = vmatpush3.bf16.msra.mxu0 %v4902_v11  ;;  %4189 = vmatprep.subr.bf16.mxu1 %v4903_v21  ;;  %v401_v11 = vrot.slane %v399_v63, 5  ;;  %v431_v51 = vrot.slane %v429_v41, 5  ;;  %v435_v52 = vrot.slane %v433_v42, 4  ;;  %v5174_v57 = vmax.bf16 %v6125_v15, %v233_v33 }
  0x25   : > { %4381 = vmatprep.subr.bf16.mxu0 %v4904_v29  ;;  %4385 = vmatprep.mubr.bf16.mxu0 %v3703_v35  ;;  %v426_v56 = vor.u32 %v425_v46, %v422_v45  ;;  %v5177_v58 = vmax.bf16 %v6125_v15, %v234_v34  ;;  %v444_v59 = vshrl.u32 %v5170_v47, 16  ;;  %v447_v63 = vshll.u32 %v5170_v47, 16  ;;  %v241_v45 = vld [vmem:[%s5049_s14 + $0x54] sm:$0xf] }
  0x26   : > { %v436_v62 = vor.u32 %v435_v52, %v431_v51  ;;  %v5186_v2 = vmax.bf16 %v6125_v15, %v235_v48  ;;  %v453_v8 = vshll.u32 %v5174_v57, 16  ;;  %v5208_v27 = vmax.bf16 %v6125_v15, %v237_v1  ;;  %v4919_v52 = vld [vmem:[%s6121_s1 + $0x20] sm:$0xff]  }
  0x27   : > { %4190 = vmatpush3.bf16.msra.mxu1 %v4903_v21  ;;  %v402_v21 = vor.u32 %v401_v11, %v398_v10  ;;  %v427_v6 = vrot.slane %v426_v56, 4  ;;  %v446_v7 = vrot.slane %v444_v59, 4  ;;  %v449_v10 = vrot.slane %v447_v63, 5 }
  0x28   : > { %4382 = vmatpush3.bf16.msra.mxu0 %v4904_v29  ;;  %4191 = vmatprep.subr.bf16.mxu1 %v4905_v40  ;;  %v411_v29 = vrot.slane %v409_v14, 4  ;;  %6164 = vst [vmem:[#allocation3_spill] sm:$0xff] %v5186_v2  ;;  %v437_v9 = vrot.slane %v436_v62, 4  ;;  %v457_v11 = vshrl.u32 %v5174_v57, 16  ;;  %v463_v12 = vshll.u32 %v5177_v58, 16  ;;  %v4912_v62 = vld [vmem:[%s6121_s1 + $0x158] sm:$0xff]  }
  0x29   : > { %4383 = vmatprep.subr.bf16.mxu0 %v4906_v55  ;;  %v403_v36 = vrot.slane %v402_v21, 4  ;;  %v432_v14 = vsel %vm5105_vm2, %v427_v6, %v431_v51  ;;  %v455_v19 = vrot.slane %v453_v8, 5  ;;  %v5205_v21 = vmax.bf16 %v6125_v15, %v236_v0 }
  0x2a   : > { %v459_v33 = vrot.slane %v457_v11, 4  ;;  %v465_v34 = vrot.slane %v463_v12, 5  ;;  %v468_v38 = vshrl.u32 %v5186_v2, 16 }
  0x2b   : > { %4192 = vmatpush3.bf16.msra.mxu1 %v4905_v40  ;;  %v412_v40 = vor.u32 %v411_v29, %v407_v13  ;;  %v408_v44 = vsel %vm5105_vm2, %v403_v36, %v407_v13  ;;  %v238_v13 = vld [vmem:[%s5049_s14 + $0x48] sm:$0xf]  ;;  %6166 = vst [vmem:[#allocation5_spill] sm:$0xff] %v5205_v21 }
  0x2c   : > { %4384 = vmatpush3.bf16.msra.mxu0 %v4906_v55  ;;  %4225 = vmatprep.subr.bf16.mxu1 %v4907_v4  ;;  %v441_v55 = vrot.slane %v439_v43, 5  ;;  %v460_v42 = vor.u32 %v459_v33, %v455_v19  ;;  %v481_v43 = vshrl.u32 %v5205_v21, 16  ;;  %v470_v46 = vrot.slane %v468_v38, 4  ;;  %v4914_v38 = vld [vmem:[%s6121_s1 + $0x160] sm:$0xff]  }
  0x2d   : > { %4417 = vmatprep.subr.bf16.mxu0 %v5141_v20  ;;  %v413_v49 = vrot.slane %v412_v40, 4  ;;  %v240_v40 = vld [vmem:[%s5049_s14 + $0x50] sm:$0x1]  ;;  %v5232_v51 = vmax.bf16 %v6125_v15, %v238_v13 }
  0x2e   : > { %4194 = vmatmul.mubr.bf16.vlgmr.msra.gmra.mrb[0].mxu1 %v3703_v35  ;;  %v442_v29 = vsel %vm5105_vm2, %v437_v9, %v441_v55  ;;  %v239_v35 = vld [vmem:[%s5049_s14 + $0x4c] sm:$0xf]  ;;  %v461_v56 = vrot.slane %v460_v42, 4  ;;  %v483_v59 = vrot.slane %v481_v43, 4  ;;  %v5246_v1 = vmax.bf16 %v6125_v15, %v240_v40  ;;  %v243_v9 = vld [vmem:[%s5049_s14 + $0x5c] sm:$0x1] }
  0x2f   : > { %4226 = vmatpush3.bf16.msra.mxu1 %v4907_v4  ;;  %v418_v60 = vsel %vm5105_vm2, %v413_v49, %v417_v30  ;;  %v450_v30 = vor.u32 %v449_v10, %v446_v7  ;;  %v5217_v36 = vcombine.low %v432_v14, %v442_v29  ;;  %6168 = vst [vmem:[#allocation7_spill] sm:$0xff] %v5232_v51  ;;  %v495_v8 = vshll.u32 %v5232_v51, 16 }
  0x30   : > { %4227 = vmatprep.subr.bf16.mxu1 %v4910_v39  ;;  %v5191_v4 = vcombine.low %v408_v44, %v418_v60  ;;  %v487_v44 = vshll.u32 %v5208_v27, 16  ;;  %v5243_v0 = vmax.bf16 %v6125_v15, %v239_v35  ;;  %v466_v6 = vsel %vm5105_vm2, %v461_v56, %v465_v34  ;;  %v4923_v56 = vld [vmem:[%s6121_s1 + $0x30] sm:$0xff]  }
  0x31   : > { %6167 = vst [vmem:[#allocation6_spill] sm:$0xff] %v5217_v36  ;;  %v451_v41 = vrot.slane %v450_v30, 4  ;;  %v5255_v10 = vmax.bf16 %v6125_v15, %v241_v45  ;;  %v497_v30 = vrot.slane %v495_v8, 5  ;;  %v511_v33 = vshll.u32 %v5246_v1, 16  ;;  %v246_v45 = vld [vmem:[%s5049_s14 + $0x68] sm:$0x1] }
  0x32   : > { %6165 = vst [vmem:[#allocation4_spill] sm:$0xff] %v5191_v4  ;;  %4386 = vmatmul.mubr.bf16.vlgmr.msra.gmra.mrb[0].mxu0 %v5191_v4  ;;  %4197 = vmatprep.mubr.bf16.mxu1 %v5191_v4  ;;  %v489_v60 = vrot.slane %v487_v44, 5  ;;  %6169 = vst [vmem:[#allocation8_spill] sm:$0xff] %v5243_v0  ;;  %v501_v14 = vshll.u32 %v5243_v0, 16  ;;  %v245_v44 = vld [vmem:[%s5049_s14 + $0x64] sm:$0xf] }
  0x33   : > { %4228 = vmatpush3.bf16.msra.mxu1 %v4910_v39  ;;  %4418 = vmatpush3.bf16.msra.mxu0 %v5141_v20  ;;  %v471_v20 = vshll.u32 %v5186_v2, 16  ;;  %v477_v39 = vshll.u32 %v5205_v21, 16  ;;  %v456_v55 = vsel %vm5105_vm2, %v451_v41, %v455_v19  ;;  %v4921_v19 = vld [vmem:[%s6121_s1 + $0x28] sm:$0xff]   ;;  %v513_v43 = vrot.slane %v511_v33, 5  ;;  %v4924_v4 = vld [vmem:[%s6121_s1 + $0x190] sm:$0xff]  }
  0x34   : > { %4229 = vmatprep.subr.bf16.mxu1 %v4913_v3  ;;  %4419 = vmatprep.subr.bf16.mxu0 %v4909_v5  ;;  %v5257_v11 = vcombine.low %v456_v55, %v466_v6  ;;  %v503_v35 = vrot.slane %v501_v14, 5 }
  0x35   : > { %4389 = vmatprep.mubr.bf16.mxu0 %v5217_v36  ;;  %v473_v48 = vrot.slane %v471_v20, 5  ;;  %v479_v49 = vrot.slane %v477_v39, 5  ;;  %v5275_v20 = vmax.bf16 %v6125_v15, %v243_v9  ;;  %v244_v39 = vld [vmem:[%s5049_s14 + $0x60] sm:$0xf] }
  0x36   : > { %4198 = vmatmul.mubr.bf16.gmra.mrb[4].mxu1 %v5217_v36  ;;  %6170 = vst [vmem:[#allocation9_spill] sm:$0xff] %v5257_v11  ;;  %v5299_v8 = vmax.bf16 %v6125_v15, %v244_v39  ;;  %v247_v39 = vld [vmem:[%s5049_s14 + $0x6c] sm:$0xf] }
  0x37   : > { %4230 = vmatpush3.bf16.msra.mxu1 %v4913_v3  ;;  %4420 = vmatpush3.bf16.msra.mxu0 %v4909_v5  ;;  %v474_v63 = vor.u32 %v473_v48, %v470_v46  ;;  %v492_v3 = vshrl.u32 %v5232_v51, 16  ;;  %v242_v5 = vld [vmem:[%s5049_s14 + $0x58] sm:$0xf]  ;;  %v484_v7 = vor.u32 %v483_v59, %v479_v49  ;;  %v516_v48 = vshrl.u32 %v5255_v10, 16 }
  0x38   : > { %4231 = vmatprep.subr.bf16.mxu1 %v4916_v28  ;;  %4421 = vmatprep.subr.bf16.mxu0 %v4911_v37  ;;  %6172 = vst [vmem:[#allocation11_spill] sm:$0xff] %v5299_v8 }
  0x39   : > { %v475_v12 = vrot.slane %v474_v63, 4  ;;  %v494_v13 = vrot.slane %v492_v3, 4  ;;  %v485_v29 = vrot.slane %v484_v7, 4  ;;  %4201 = vmatprep.mubr.bf16.mxu1 %v5257_v11  ;;  %v4915_v3 = vld [vmem:[%s6121_s1 + $0x168] sm:$0xff]  }
  0x3a   : > { %4390 = vmatmul.mubr.bf16.gmra.mrb[4].mxu0 %v5257_v11  ;;  %v1371_v11 = vrot.slane %v5154_v32, 5  ;;  %v4922_v32 = vld [vmem:[%s6121_s1 + $0x188] sm:$0xff]  }
  0x3b   : > { %4232 = vmatpush3.bf16.msra.mxu1 %v4916_v28  ;;  %4422 = vmatpush3.bf16.msra.mxu0 %v4911_v37  ;;  %v505_v28 = vshrl.u32 %v5243_v0, 16  ;;  %v480_v34 = vsel %vm5105_vm2, %v475_v12, %v479_v49  ;;  %v5272_v37 = vmax.bf16 %v6125_v15, %v242_v5  ;;  %v490_v40 = vsel %vm5105_vm2, %v485_v29, %v489_v60 }
  0x3c   : > { %4233 = vmatprep.subr.bf16.mxu1 %v4919_v52  ;;  %4423 = vmatprep.subr.bf16.mxu0 %v4912_v62  ;;  %v498_v41 = vor.u32 %v497_v30, %v494_v13  ;;  %v5283_v46 = vcombine.low %v480_v34, %v490_v40  ;;  %v519_v49 = vshll.u32 %v5255_v10, 16  ;;  %v518_v5 = vrot.slane %v516_v48, 4  ;;  %v4925_v40 = vld [vmem:[%s6121_s1 + $0x38] sm:$0xff]  }
  0x3d   : > { %v507_v42 = vrot.slane %v505_v28, 4  ;;  %v525_v55 = vshll.u32 %v5272_v37, 16  ;;  %v529_v63 = vshrl.u32 %v5272_v37, 16  ;;  %v5304_v29 = vmax.bf16 %v6125_v15, %v245_v44 }
  0x3e   : > { %6171 = vst [vmem:[#allocation10_spill] sm:$0xff] %v5283_v46  ;;  %v499_v59 = vrot.slane %v498_v41, 4  ;;  %4393 = vmatprep.mubr.bf16.mxu0 %v5283_v46  ;;  %4202 = vmatmul.mubr.bf16.gmra.mrb[8].mxu1 %v5283_v46  ;;  %v521_v6 = vrot.slane %v519_v49, 5  ;;  %v5307_v30 = vmax.bf16 %v6125_v15, %v246_v45  ;;  %v540_v28 = vshrl.u32 %v5299_v8, 16 }
  0x3f   : > { %4234 = vmatpush3.bf16.msra.mxu1 %v4919_v52  ;;  %4424 = vmatpush3.bf16.msra.mxu0 %v4912_v62  ;;  %v508_v60 = vor.u32 %v507_v42, %v503_v35  ;;  %v535_v52 = vshll.u32 %v5275_v20, 16  ;;  %v527_v7 = vrot.slane %v525_v55, 5  ;;  %v531_v12 = vrot.slane %v529_v63, 4  ;;  %v249_v63 = vld [vmem:[%s5049_s14 + $0x74] sm:$0x1] }
  0x40   : > { %4235 = vmatprep.subr.bf16.mxu1 %v4921_v19  ;;  %v504_v62 = vsel %vm5105_vm2, %v499_v59, %v503_v35  ;;  %4425 = vmatprep.subr.bf16.mxu0 %v4914_v38  ;;  %v522_v14 = vor.u32 %v521_v6, %v518_v5  ;;  %v543_v35 = vshll.u32 %v5299_v8, 16  ;;  %v542_v44 = vrot.slane %v540_v28, 4 }
  0x41   : > { %v509_v9 = vrot.slane %v508_v60, 4  ;;  %v537_v13 = vrot.slane %v535_v52, 5  ;;  %v532_v34 = vor.u32 %v531_v12, %v527_v7  ;;  %v549_v45 = vshll.u32 %v5304_v29, 16 }
  0x42   : > { %v523_v42 = vrot.slane %v522_v14, 4  ;;  %v545_v49 = vrot.slane %v543_v35, 5  ;;  %v553_v55 = vshrl.u32 %v5304_v29, 16  ;;  %v559_v59 = vshll.u32 %v5307_v30, 16 }
  0x43   : > { %4236 = vmatpush3.bf16.msra.mxu1 %v4921_v19  ;;  %v514_v33 = vsel %vm5105_vm2, %v509_v9, %v513_v43  ;;  %4426 = vmatpush3.bf16.msra.mxu0 %v4914_v38  ;;  %v3751_v19 = vrot.slane %v5076_v23, 9  ;;  %v4917_v38 = vld [vmem:[%s6121_s1 + $0x170] sm:$0xff]   ;;  %v533_v48 = vrot.slane %v532_v34, 4  ;;  %v551_v5 = vrot.slane %v549_v45, 5  ;;  %v5343_v9 = vld [vmem:[%s6121_s1 + $0x80] sm:$0xff]  }
  0x44   : > { %4237 = vmatprep.subr.bf16.mxu1 %v4923_v56  ;;  %v5318_v41 = vcombine.low %v504_v62, %v514_v33  ;;  %4427 = vmatprep.subr.bf16.mxu0 %v4915_v3  ;;  %v248_v43 = vld [vmem:[%s5049_s14 + $0x70] sm:$0xf]  ;;  %v528_v52 = vsel %vm5105_vm2, %v523_v42, %v527_v7  ;;  %v1354_v6 = vrot.slane %v5079_v24, 5  ;;  %v1357_v62 = vrot.slane %v5090_v31, 5  ;;  %v4918_v31 = vld [vmem:[%s6121_s1 + $0x178] sm:$0xff]  }
  0x45   : > { %v546_v12 = vor.u32 %v545_v49, %v542_v44  ;;  %v555_v14 = vrot.slane %v553_v55, 4  ;;  %v561_v28 = vrot.slane %v559_v59, 5  ;;  %v5358_v42 = vmax.bf16 %v6125_v15, %v248_v43 }
  0x46   : > { %6173 = vst [vmem:[#allocation12_spill] sm:$0xff] %v5318_v41  ;;  %4394 = vmatmul.mubr.bf16.gmra.mrb[8].mxu0 %v5318_v41  ;;  %4205 = vmatprep.mubr.bf16.mxu1 %v5318_v41  ;;  %v1355_v7 = vsel %vm5329_vm5, %v3751_v19, %v1354_v6  ;;  %v1356_v34 = vrot.slane %v1354_v6, 4  ;;  %v5361_v44 = vmax.bf16 %v6125_v15, %v249_v63  ;;  %v3752_v43 = vrot.slane %v5110_v53, 9  ;;  %v5379_v63 = vld [vmem:[%s6121_s1 + $0x180] sm:$0xff]  }
  0x47   : > { %4238 = vmatpush3.bf16.msra.mxu1 %v4923_v56  ;;  %4428 = vmatpush3.bf16.msra.mxu0 %v4915_v3  ;;  %v538_v56 = vsel %vm5105_vm2, %v533_v48, %v537_v13  ;;  %v5355_v3 = vmax.bf16 %v6125_v15, %v247_v39  ;;  %v547_v13 = vrot.slane %v546_v12, 4  ;;  %v556_v35 = vor.u32 %v555_v14, %v551_v5  ;;  %v250_v48 = vld [vmem:[%s5049_s14 + $0x78] sm:$0xf]  ;;  %v252_v6 = vld [vmem:[%s5049_s14 + $0x80] sm:$0x1] }
  0x48   : > { %4239 = vmatprep.subr.bf16.mxu1 %v4925_v40  ;;  %v5347_v33 = vcombine.low %v528_v52, %v538_v56  ;;  %4429 = vmatprep.subr.bf16.mxu0 %v4917_v38  ;;  %v1358_v19 = vsel %vm5329_vm5, %v1356_v34, %v1357_v62  ;;  %v573_v59 = vshll.u32 %v5358_v42, 16  ;;  %v251_v52 = vld [vmem:[%s5049_s14 + $0x7c] sm:$0xf]  ;;  %v5390_v34 = vmax.bf16 %v6125_v15, %v250_v48 }
  0x49   : > { %v564_v39 = vshrl.u32 %v5355_v3, 16  ;;  %v567_v45 = vshll.u32 %v5355_v3, 16  ;;  %v552_v49 = vsel %vm5105_vm2, %v547_v13, %v551_v5  ;;  %v557_v55 = vrot.slane %v556_v35, 4 }
  0x4a   : > { %6176 = vst [vmem:[#allocation13_spill] sm:$0xff] %v5347_v33  ;;  %4397 = vmatprep.mubr.bf16.mxu0 %v5347_v33  ;;  %4206 = vmatmul.mubr.bf16.gmra.mrb[12].mxu1 %v5347_v33  ;;  %v577_v5 = vshrl.u32 %v5358_v42, 16  ;;  %v575_v14 = vrot.slane %v573_v59, 5  ;;  %v591_v59 = vshll.u32 %v5390_v34, 16  ;;  %v3753_v41 = vrot.slane %v5145_v25, 9 }
  0x4b   : > { %4240 = vmatpush3.bf16.msra.mxu1 %v4925_v40  ;;  %4430 = vmatpush3.bf16.msra.mxu0 %v4917_v38  ;;  %v5373_v40 = vcombine.low %v1355_v7, %v1358_v19  ;;  %v566_v62 = vrot.slane %v564_v39, 4  ;;  %v569_v56 = vrot.slane %v567_v45, 5  ;;  %v583_v38 = vshll.u32 %v5361_v44, 16 }
  0x4c   : > { %4273 = vmatprep.subr.bf16.mxu1 %v5343_v9  ;;  %4431 = vmatprep.subr.bf16.mxu0 %v4918_v31  ;;  %v562_v12 = vsel %vm5105_vm2, %v557_v55, %v561_v28  ;;  %v1361_v7 = vrot.slane %v5113_v54, 5  ;;  %v579_v19 = vrot.slane %v577_v5, 4  ;;  %v5397_v28 = vmax.bf16 %v6125_v15, %v251_v52 }
  0x4d   : > { %6177 = vst [vmem:[#allocation14_spill] sm:$0xff] %v5373_v40  ;;  %v5392_v13 = vcombine.low %v552_v49, %v562_v12  ;;  %v570_v35 = vor.u32 %v569_v56, %v566_v62  ;;  %v585_v39 = vrot.slane %v583_v38, 5  ;;  %v5400_v55 = vmax.bf16 %v6125_v15, %v252_v6  ;;  %v254_v38 = vld [vmem:[%s5049_s14 + $0x88] sm:$0xf] }
  0x4e   : > { %v1362_v45 = vsel %vm5329_vm5, %v3752_v43, %v1361_v7  ;;  %v1363_v22 = vrot.slane %v1361_v7, 4  ;;  %v580_v49 = vor.u32 %v579_v19, %v575_v14  ;;  %v253_v43 = vld [vmem:[%s5049_s14 + $0x84] sm:$0xf]  ;;  %v6179_v52 = vrot.slane %v5119_v61, 5  ;;  %v255_v61 = vld [vmem:[%s5049_s14 + $0x8c] sm:$0x1] }
  0x4f   : > { %6178 = vst [vmem:[#allocation15_spill] sm:$0xff] %v5392_v13  ;;  %4432 = vmatpush3.bf16.msra.mxu0 %v4918_v31  ;;  %4209 = vmatprep.mubr.bf16.mxu1 %v5392_v13  ;;  %v571_v48 = vrot.slane %v570_v35, 4  ;;  %v588_v31 = vshrl.u32 %v5390_v34, 16  ;;  %v597_v62 = vshll.u32 %v5397_v28, 16  ;;  %v601_v56 = vshrl.u32 %v5397_v28, 16 }
  0x50   : > { %4398 = vmatmul.mubr.bf16.gmra.mrb[12].mxu0 %v5392_v13  ;;  %v1365_v6 = vsel %vm5329_vm5, %v1363_v22, %v6179_v52  ;;  %4465 = vmatprep.subr.bf16.mxu0 %v5379_v63  ;;  %v607_v5 = vshll.u32 %v5400_v55, 16  ;;  %v581_v7 = vrot.slane %v580_v49, 4  ;;  %v593_v15 = vrot.slane %v591_v59, 5 }
  0x51   : > { %4433 = vmatprep.mubr.bf16.mxu0 %v5373_v40  ;;  %v576_v12 = vsel %vm5105_vm2, %v571_v48, %v575_v14  ;;  %v5419_v35 = vcombine.low %v1362_v45, %v1365_v6  ;;  %v590_v19 = vrot.slane %v588_v31, 4  ;;  %v599_v13 = vrot.slane %v597_v62, 5 }
  0x52   : > { %v603_v22 = vrot.slane %v601_v56, 4  ;;  %v609_v52 = vrot.slane %v607_v5, 5  ;;  %v586_v33 = vsel %vm5105_vm2, %v581_v7, %v585_v39  ;;  %v1368_v46 = vrot.slane %v5148_v26, 5  ;;  %v257_v56 = vld [vmem:[%s5049_s14 + $0x94] sm:$0xf] }
  0x53   : > { %6180 = vst [vmem:[#allocation16_spill] sm:$0xff] %v5419_v35  ;;  %v5427_v14 = vcombine.low %v576_v12, %v586_v33  ;;  %v594_v45 = vor.u32 %v593_v15, %v590_v19  ;;  %v6182_v49 = vmov 0   ;;  %v258_v19 = vld [vmem:[%s5049_s14 + $0x98] sm:$0x1] }
  0x54   : > { %v604_v48 = vor.u32 %v603_v22, %v599_v13  ;;  %v5430_v31 = vmax.bf16 %v6182_v49, %v253_v43  ;;  %v1369_v59 = vsel %vm5329_vm5, %v3753_v41, %v1368_v46  ;;  %v1370_v6 = vrot.slane %v1368_v46, 4  ;;  %v256_v46 = vld [vmem:[%s5049_s14 + $0x90] sm:$0xf] }
  0x55   : > { %6181 = vst [vmem:[#allocation17_spill] sm:$0xff] %v5427_v14  ;;  %v5435_v39 = vmax.bf16 %v6182_v49, %v254_v38  ;;  %v5438_v62 = vmax.bf16 %v6182_v49, %v255_v61  ;;  %4210 = vmatmul.mubr.bf16.gmra.mrb[16].mxu1 %v5427_v14  ;;  %v595_v15 = vrot.slane %v594_v45, 4 }
  0x56   : > { %v605_v33 = vrot.slane %v604_v48, 4  ;;  %v612_v43 = vshrl.u32 %v5430_v31, 16  ;;  %v615_v41 = vshll.u32 %v5430_v31, 16  ;;  %v1372_v5 = vsel %vm5329_vm5, %v1370_v6, %v1371_v11 }
  0x57   : > { %v621_v38 = vshll.u32 %v5435_v39, 16  ;;  %v625_v12 = vshrl.u32 %v5435_v39, 16  ;;  %v631_v7 = vshll.u32 %v5438_v62, 16  ;;  %v600_v61 = vsel %vm5105_vm2, %v595_v15, %v599_v13 }
  0x58   : > { %4434 = vmatmul.mubr.bf16.vlgmr.msra.gmra.mrb[0].mxu0 %v5419_v35  ;;  %v610_v22 = vsel %vm5105_vm2, %v605_v33, %v609_v52  ;;  %v5460_v45 = vcombine.low %v1369_v59, %v1372_v5  ;;  %v614_v48 = vrot.slane %v612_v43, 4  ;;  %v617_v11 = vrot.slane %v615_v41, 5  ;;  %v4926_v5 = vld [vmem:[%s6121_s1 + $0x198] sm:$0xff]  }
  0x59   : > { %4466 = vmatpush3.bf16.msra.mxu0 %v5379_v63  ;;  %v5462_v14 = vcombine.low %v600_v61, %v610_v22  ;;  %v623_v6 = vrot.slane %v621_v38, 5  ;;  %v627_v36 = vrot.slane %v625_v12, 4  ;;  %v633_v63 = vrot.slane %v631_v7, 5 }
  0x5a   : > { %6183 = vst [vmem:[#allocation18_spill] sm:$0xff] %v5460_v45  ;;  %4467 = vmatprep.subr.bf16.mxu0 %v4922_v32  ;;  %4437 = vmatprep.mubr.bf16.mxu0 %v5460_v45  ;;  %v3754_v13 = vrot.slane %v5170_v47, 9  ;;  %v1375_v52 = vrot.slane %v5174_v57, 5  ;;  %v1378_v59 = vrot.slane %v5177_v58, 5  ;;  %v618_v15 = vor.u32 %v617_v11, %v614_v48  ;;  %v260_v48 = vld [vmem:[%s5049_s14 + $0xa0] sm:$0xf] }
  0x5b   : > { %6184 = vst [vmem:[#allocation19_spill] sm:$0xff] %v5462_v14  ;;  %4213 = vmatprep.mubr.bf16.mxu1 %v5462_v14  ;;  %v628_v33 = vor.u32 %v627_v36, %v623_v6  ;;  %v5473_v43 = vmax.bf16 %v6182_v49, %v256_v46  ;;  %v5476_v41 = vmax.bf16 %v6182_v49, %v257_v56  ;;  %v3755_v36 = vrot.slane %v5186_v2, 9  ;;  %v259_v46 = vld [vmem:[%s5049_s14 + $0x9c] sm:$0xf] }
  0x5c   : > { %v1376_v38 = vsel %vm5329_vm5, %v3754_v13, %v1375_v52  ;;  %v1377_v58 = vrot.slane %v1375_v52, 4  ;;  %v5484_v12 = vmax.bf16 %v6182_v49, %v258_v19  ;;  %v619_v7 = vrot.slane %v618_v15, 4  ;;  %v261_v52 = vld [vmem:[%s5049_s14 + $0xa4] sm:$0x1] }
  0x5d   : > { %4468 = vmatpush3.bf16.msra.mxu0 %v4922_v32  ;;  %v629_v61 = vrot.slane %v628_v33, 4  ;;  %v636_v56 = vshrl.u32 %v5473_v43, 16  ;;  %v639_v22 = vshll.u32 %v5473_v43, 16  ;;  %v645_v13 = vshll.u32 %v5476_v41, 16 }
  0x5e   : > { %4469 = vmatprep.subr.bf16.mxu0 %v4924_v4  ;;  %v1379_v11 = vsel %vm5329_vm5, %v1377_v58, %v1378_v59  ;;  %v649_v32 = vshrl.u32 %v5476_v41, 16  ;;  %v655_v19 = vshll.u32 %v5484_v12, 16  ;;  %v624_v15 = vsel %vm5105_vm2, %v619_v7, %v623_v6 }
  0x5f   : > { %v634_v33 = vsel %vm5105_vm2, %v629_v61, %v633_v63  ;;  %v5501_v14 = vcombine.low %v1376_v38, %v1379_v11  ;;  %v638_v45 = vrot.slane %v636_v56, 4  ;;  %v641_v40 = vrot.slane %v639_v22, 5  ;;  %v4928_v63 = vld [vmem:[%s6121_s1 + $0x1a0] sm:$0xff]  }
  0x60   : > { %v5503_v35 = vcombine.low %v624_v15, %v634_v33  ;;  %v647_v59 = vrot.slane %v645_v13, 5  ;;  %v651_v58 = vrot.slane %v649_v32, 4  ;;  %v657_v18 = vrot.slane %v655_v19, 5  ;;  %v262_v13 = vld [vmem:[%s5049_s14 + $0xa8] sm:$0xf] }
  0x61   : > { %6185 = vst [vmem:[#allocation20_spill] sm:$0xff] %v5501_v14  ;;  %4470 = vmatpush3.bf16.msra.mxu0 %v4924_v4  ;;  %v1382_v2 = vrot.slane %v5205_v21, 5  ;;  %v1385_v6 = vrot.slane %v5208_v27, 5  ;;  %v5509_v7 = vmax.bf16 %v6182_v49, %v259_v46  ;;  %v642_v4 = vor.u32 %v641_v40, %v638_v45  ;;  %v264_v15 = vld [vmem:[%s5049_s14 + $0xb0] sm:$0x1] }
  0x62   : > { %6186 = vst [vmem:[#allocation21_spill] sm:$0xff] %v5503_v35  ;;  %4438 = vmatmul.mubr.bf16.gmra.mrb[4].mxu0 %v5501_v14  ;;  %4471 = vmatprep.subr.bf16.mxu0 %v4926_v5  ;;  %v652_v38 = vor.u32 %v651_v58, %v647_v59  ;;  %v5516_v61 = vmax.bf16 %v6182_v49, %v260_v48  ;;  %v263_v48 = vld [vmem:[%s5049_s14 + $0xac] sm:$0xf]  ;;  %v1389_v21 = vrot.slane %v5243_v0, 5  ;;  %v1399_v0 = vrot.slane %v5275_v20, 5 }
  0x63   : > { %4214 = vmatmul.mubr.bf16.gmra.mrb[20].mxu1 %v5503_v35  ;;  %v5519_v56 = vmax.bf16 %v6182_v49, %v261_v52  ;;  %v1383_v27 = vsel %vm5329_vm5, %v3755_v36, %v1382_v2  ;;  %v1384_v46 = vrot.slane %v1382_v2, 4  ;;  %v660_v22 = vshrl.u32 %v5509_v7, 16  ;;  %v4930_v58 = vld [vmem:[%s6121_s1 + $0x1a8] sm:$0xff]  }
  0x64   : > { %v663_v11 = vshll.u32 %v5509_v7, 16  ;;  %v643_v32 = vrot.slane %v642_v4, 4  ;;  %v653_v19 = vrot.slane %v652_v38, 4  ;;  %v669_v40 = vshll.u32 %v5516_v61, 16 }
  0x65   : > { %v673_v45 = vshrl.u32 %v5516_v61, 16  ;;  %4472 = vmatpush3.bf16.msra.mxu0 %v4926_v5  ;;  %v1386_v52 = vsel %vm5329_vm5, %v1384_v46, %v1385_v6  ;;  %v662_v33 = vrot.slane %v660_v22, 4  ;;  %v679_v2 = vshll.u32 %v5519_v56, 16 }
  0x66   : > { %v665_v36 = vrot.slane %v663_v11, 5  ;;  %4473 = vmatprep.subr.bf16.mxu0 %v4928_v63  ;;  %v648_v4 = vsel %vm5105_vm2, %v643_v32, %v647_v59  ;;  %v658_v38 = vsel %vm5105_vm2, %v653_v19, %v657_v18  ;;  %v5540_v35 = vcombine.low %v1383_v27, %v1386_v52 }
  0x67   : > { %v671_v5 = vrot.slane %v669_v40, 5  ;;  %v5542_v14 = vcombine.low %v648_v4, %v658_v38  ;;  %v675_v46 = vrot.slane %v673_v45, 4  ;;  %v681_v22 = vrot.slane %v679_v2, 5  ;;  %v266_v4 = vld [vmem:[%s5049_s14 + $0xb8] sm:$0xf] }
  0x68   : > { %6187 = vst [vmem:[#allocation22_spill] sm:$0xff] %v5540_v35  ;;  %v666_v6 = vor.u32 %v665_v36, %v662_v33  ;;  %4441 = vmatprep.mubr.bf16.mxu0 %v5540_v35  ;;  %v3756_v11 = vrot.slane %v5232_v51, 9  ;;  %v1392_v59 = vrot.slane %v5246_v1, 5  ;;  %v5549_v32 = vmax.bf16 %v6182_v49, %v262_v13  ;;  %v4932_v1 = vld [vmem:[%s6121_s1 + $0x1b0] sm:$0xff]   ;;  %v267_v38 = vld [vmem:[%s5049_s14 + $0xbc] sm:$0x1] }
  0x69   : > { %6188 = vst [vmem:[#allocation23_spill] sm:$0xff] %v5542_v14  ;;  %4474 = vmatpush3.bf16.msra.mxu0 %v4928_v63  ;;  %4217 = vmatprep.mubr.bf16.mxu1 %v5542_v14  ;;  %v676_v27 = vor.u32 %v675_v46, %v671_v5  ;;  %v5553_v19 = vmax.bf16 %v6182_v49, %v263_v48  ;;  %v1391_v13 = vrot.slane %v1389_v21, 4  ;;  %v265_v33 = vld [vmem:[%s5049_s14 + $0xb4] sm:$0xf]  ;;  %v4934_v14 = vld [vmem:[%s6121_s1 + $0x1b8] sm:$0xff]  }
  0x6a   : > { %v667_v18 = vrot.slane %v666_v6, 4  ;;  %v5556_v40 = vmax.bf16 %v6182_v49, %v264_v15  ;;  %4475 = vmatprep.subr.bf16.mxu0 %v4930_v58  ;;  %v1390_v63 = vsel %vm5329_vm5, %v3756_v11, %v1389_v21  ;;  %v684_v45 = vshrl.u32 %v5549_v32, 16 }
  0x6b   : > { %v687_v52 = vshll.u32 %v5549_v32, 16  ;;  %v677_v36 = vrot.slane %v676_v27, 4  ;;  %v693_v15 = vshll.u32 %v5553_v19, 16  ;;  %v697_v2 = vshrl.u32 %v5553_v19, 16 }
  0x6c   : > { %v672_v48 = vsel %vm5105_vm2, %v667_v18, %v671_v5  ;;  %v1393_v6 = vsel %vm5329_vm5, %v1391_v13, %v1392_v59  ;;  %v686_v46 = vrot.slane %v684_v45, 4  ;;  %v703_v11 = vshll.u32 %v5556_v40, 16 }
  0x6d   : > { %v689_v21 = vrot.slane %v687_v52, 5  ;;  %4476 = vmatpush3.bf16.msra.mxu0 %v4930_v58  ;;  %v682_v5 = vsel %vm5105_vm2, %v677_v36, %v681_v22  ;;  %v5580_v18 = vcombine.low %v1390_v63, %v1393_v6  ;;  %v695_v27 = vrot.slane %v693_v15, 5  ;;  %v5605_v6 = vld [vmem:[%s6121_s1 + $0x1c0] sm:$0xff]  }
  0x6e   : > { %v699_v35 = vrot.slane %v697_v2, 4  ;;  %4477 = vmatprep.subr.bf16.mxu0 %v4932_v1  ;;  %v5582_v51 = vcombine.low %v672_v48, %v682_v5  ;;  %v705_v13 = vrot.slane %v703_v11, 5  ;;  %v3757_v45 = vrot.slane %v5255_v10, 9 }
  0x6f   : > { %6189 = vst [vmem:[#allocation24_spill] sm:$0xff] %v5580_v18  ;;  %v690_v59 = vor.u32 %v689_v21, %v686_v46  ;;  %4442 = vmatmul.mubr.bf16.gmra.mrb[8].mxu0 %v5580_v18  ;;  %v1396_v52 = vrot.slane %v5272_v37, 5  ;;  %v5589_v22 = vmax.bf16 %v6182_v49, %v265_v33  ;;  %v5593_v48 = vmax.bf16 %v6182_v49, %v266_v4 }
  0x70   : > { %6190 = vst [vmem:[#allocation25_spill] sm:$0xff] %v5582_v51  ;;  %v700_v58 = vor.u32 %v699_v35, %v695_v27  ;;  %4218 = vmatmul.mubr.bf16.gmra.mrb[24].mxu1 %v5582_v51  ;;  %v5596_v36 = vmax.bf16 %v6182_v49, %v267_v38  ;;  %v3758_v15 = vrot.slane %v5299_v8, 9  ;;  %v1403_v18 = vrot.slane %v5304_v29, 5 }
  0x71   : > { %v691_v63 = vrot.slane %v690_v59, 4  ;;  %4478 = vmatpush3.bf16.msra.mxu0 %v4932_v1  ;;  %v1397_v2 = vsel %vm5329_vm5, %v3757_v45, %v1396_v52  ;;  %v1398_v20 = vrot.slane %v1396_v52, 4  ;;  %v708_v33 = vshrl.u32 %v5589_v22, 16 }
  0x72   : > { %v701_v35 = vrot.slane %v700_v58, 4  ;;  %4479 = vmatprep.subr.bf16.mxu0 %v4934_v14  ;;  %v711_v38 = vshll.u32 %v5589_v22, 16  ;;  %v717_v1 = vshll.u32 %v5593_v48, 16  ;;  %v721_v46 = vshrl.u32 %v5593_v48, 16 }
  0x73   : > { %v696_v4 = vsel %vm5105_vm2, %v691_v63, %v695_v27  ;;  %v1400_v11 = vsel %vm5329_vm5, %v1398_v20, %v1399_v0  ;;  %v710_v5 = vrot.slane %v708_v33, 4  ;;  %v727_v59 = vshll.u32 %v5596_v36, 16 }
  0x74   : > { %v706_v21 = vsel %vm5105_vm2, %v701_v35, %v705_v13  ;;  %v5619_v58 = vcombine.low %v1397_v2, %v1400_v11  ;;  %v713_v27 = vrot.slane %v711_v38, 5  ;;  %v719_v52 = vrot.slane %v717_v1, 5 }
  0x75   : > { %v5617_v45 = vcombine.low %v696_v4, %v706_v21  ;;  %4480 = vmatpush3.bf16.msra.mxu0 %v4934_v14  ;;  %v723_v63 = vrot.slane %v721_v46, 4  ;;  %v729_v51 = vrot.slane %v727_v59, 5  ;;  %v1406_v8 = vrot.slane %v5307_v30, 5 }
  0x76   : > { %4513 = vmatprep.subr.bf16.mxu0 %v5605_v6  ;;  %4445 = vmatprep.mubr.bf16.mxu0 %v5619_v58  ;;  %v714_v0 = vor.u32 %v713_v27, %v710_v5  ;;  %v3759_v13 = vrot.slane %v5355_v3, 9  ;;  %v1410_v35 = vrot.slane %v5358_v42, 5  ;;  %v1404_v14 = vsel %vm5329_vm5, %v3758_v15, %v1403_v18 }
  0x77   : > { %4221 = vmatprep.mubr.bf16.mxu1 %v5617_v45  ;;  %v724_v2 = vor.u32 %v723_v63, %v719_v52  ;;  %v1405_v20 = vrot.slane %v1403_v18, 4  ;;  %v1413_v33 = vrot.slane %v5361_v44, 5  ;;  %v3760_v21 = vrot.slane %v5390_v34, 9 }
  0x78   : > { %v715_v4 = vrot.slane %v714_v0, 4  ;;  %v1411_v30 = vsel %vm5329_vm5, %v3759_v13, %v1410_v35  ;;  %v1412_v38 = vrot.slane %v1410_v35, 4  ;;  %v1417_v11 = vrot.slane %v5397_v28, 5 }
  0x79   : > { %v725_v1 = vrot.slane %v724_v2, 4  ;;  %v1407_v46 = vsel %vm5329_vm5, %v1405_v20, %v1406_v8  ;;  %v1420_v18 = vrot.slane %v5400_v55, 5  ;;  %v3726_v8 = vcombine.low %v5061_v16, %v5064_v17 }
  0x7a   : > { %v720_v5 = vsel %vm5105_vm2, %v715_v4, %v719_v52  ;;  %v5639_v15 = vcombine.low %v1404_v14, %v1407_v46  ;;  %v1414_v44 = vsel %vm5329_vm5, %v1412_v38, %v1413_v33  ;;  %v1419_v63 = vrot.slane %v1417_v11, 4 }
  0x7b   : > { %v730_v59 = vsel %vm5105_vm2, %v725_v1, %v729_v51  ;;  %v5648_v27 = vcombine.low %v1411_v30, %v1414_v44  ;;  %v3761_v52 = vrot.slane %v5430_v31, 9  ;;  %v1424_v13 = vrot.slane %v5435_v39, 5 }
  0x7c   : > { %v5650_v0 = vcombine.low %v720_v5, %v730_v59  ;;  %4446 = vmatmul.mubr.bf16.gmra.mrb[12].mxu0 %v5639_v15  ;;  %v1418_v55 = vsel %vm5329_vm5, %v3760_v21, %v1417_v11  ;;  %v1421_v51 = vsel %vm5329_vm5, %v1419_v63, %v1420_v18  ;;  %v1427_v35 = vrot.slane %v5438_v62, 5  ;;  %v4929_v18 = vld [vmem:[%s6121_s1 + $0x88] sm:$0xff]   ;;  %v269_v63 = vld [vmem:[%s5049_s14 + $0xc4] sm:$0xf] }
  0x7d   : > { %4449 = vmatprep.mubr.bf16.mxu0 %v5648_v27  ;;  %v1425_v2 = vsel %vm5329_vm5, %v3761_v52, %v1424_v13  ;;  %v1426_v14 = vrot.slane %v1424_v13, 4  ;;  %v1431_v20 = vrot.slane %v5476_v41, 5  ;;  %v3762_v33 = vrot.slane %v5473_v43, 9 }
  0x7e   : > { %4222 = vmatmul.mubr.bf16.gmra.mrb[28].mxu1 %v5650_v0  ;;  %v1434_v4 = vrot.slane %v5484_v12, 5  ;;  %v1438_v30 = vrot.slane %v5516_v61, 5  ;;  %v5668_v38 = vcombine.low %v1418_v55, %v1421_v51  ;;  %v3763_v46 = vrot.slane %v5509_v7, 9 }
  0x7f   : > { %4241 = vmatprep.mubr.bf16.mxu1 %v3726_v8  ;;  %v1428_v62 = vsel %vm5329_vm5, %v1426_v14, %v1427_v35  ;;  %v1433_v1 = vrot.slane %v1431_v20, 4  ;;  %v1441_v5 = vrot.slane %v5519_v56, 5  ;;  %v5678_v44 = vcombine.low %v5076_v23, %v5079_v24 }
  0x80   : > { %v5673_v21 = vcombine.low %v1425_v2, %v1428_v62  ;;  %v1440_v11 = vrot.slane %v1438_v30, 4  ;;  %v5682_v12 = vcombine.low %v5110_v53, %v5113_v54  ;;  %v1432_v59 = vsel %vm5329_vm5, %v3762_v33, %v1431_v20  ;;  %v4935_v62 = vld [vmem:[%s6121_s1 + $0xa0] sm:$0xff]  }
  0x81   : > { %v1435_v56 = vsel %vm5329_vm5, %v1433_v1, %v1434_v4  ;;  %v1445_v8 = vrot.slane %v5553_v19, 5  ;;  %v1439_v23 = vsel %vm5329_vm5, %v3763_v46, %v1438_v30  ;;  %v1452_v53 = vrot.slane %v5593_v48, 5  ;;  %v268_v4 = vld [vmem:[%s5049_s14 + $0xc0] sm:$0xf]  ;;  %v270_v30 = vld [vmem:[%s5049_s14 + $0xc8] sm:$0x1] }
  0x82   : > { %v1442_v24 = vsel %vm5329_vm5, %v1440_v11, %v1441_v5  ;;  %v5702_v54 = vcombine.low %v5145_v25, %v5148_v26  ;;  %v5707_v52 = vcombine.low %v1432_v59, %v1435_v56  ;;  %v3764_v13 = vrot.slane %v5549_v32, 9  ;;  %v4931_v25 = vld [vmem:[%s6121_s1 + $0x90] sm:$0xff]  }
  0x83   : > { %v1448_v55 = vrot.slane %v5556_v40, 5  ;;  %v3765_v51 = vrot.slane %v5589_v22, 9  ;;  %v5712_v35 = vcombine.low %v1439_v23, %v1442_v24  ;;  %v1447_v26 = vrot.slane %v1445_v8, 4  ;;  %v6193_v23 = vld [vmem:[#allocation8_spill] sm:$0xff]  ;;  %v6194_v24 = vld [vmem:[#allocation7_spill] sm:$0xff] }
  0x84   : > { %4450 = vmatmul.mubr.bf16.gmra.mrb[16].mxu0 %v5668_v38  ;;  %v5723_v2 = vcombine.low %v5390_v34, %v5397_v28  ;;  %v1454_v14 = vrot.slane %v1452_v53, 4  ;;  %v1455_v40 = vrot.slane %v5596_v36, 5  ;;  %v5727_v20 = vmax.bf16 %v6182_v49, %v269_v63  ;;  %v4937_v63 = vld [vmem:[%s6121_s1 + $0xa8] sm:$0xff]  }
  0x85   : > { %4453 = vmatprep.mubr.bf16.mxu0 %v5673_v21  ;;  %v5731_v33 = vcombine.low %v5430_v31, %v5435_v39  ;;  %v5745_v34 = vcombine.low %v5549_v32, %v5553_v19  ;;  %v5749_v28 = vcombine.low %v5589_v22, %v5593_v48  ;;  %v5753_v31 = vcombine.low %v5170_v47, %v5174_v57  ;;  %v6191_v19 = vld [vmem:[#allocation5_spill] sm:$0xff]  ;;  %v6192_v22 = vld [vmem:[#allocation3_spill] sm:$0xff] }
  0x86   : > { %4242 = vmatmul.mubr.bf16.vlgmr.msra.gmra.mrb[0].mxu1 %v5678_v44  ;;  %v1446_v39 = vsel %vm5329_vm5, %v3764_v13, %v1445_v8  ;;  %v324_v47 = vmax.bf16 %v6182_v49, %v270_v30  ;;  %v2332_v57 = vrot.slane %v5727_v20, 5  ;;  %v1456_v32 = vsel %vm5329_vm5, %v1454_v14, %v1455_v40 }
  0x87   : > { %4274 = vmatpush3.bf16.msra.mxu1 %v5343_v9  ;;  %4245 = vmatprep.mubr.bf16.mxu1 %v5682_v12  ;;  %v5719_v9 = vcombine.low %v5355_v3, %v5358_v42  ;;  %v5737_v3 = vcombine.low %v5473_v43, %v5476_v41  ;;  %v5741_v42 = vcombine.low %v5509_v7, %v5516_v61  ;;  %v4933_v43 = vld [vmem:[%s6121_s1 + $0x98] sm:$0xff]   ;;  %v2053_v56 = vshll.u32 %v5727_v20, 16 }
  0x88   : > { %4275 = vmatprep.subr.bf16.mxu1 %v4929_v18  ;;  %v1449_v41 = vsel %vm5329_vm5, %v1447_v26, %v1448_v55  ;;  %v5765_v7 = vmax.bf16 %v6182_v49, %v268_v4  ;;  %v1453_v61 = vsel %vm5329_vm5, %v3765_v51, %v1452_v53  ;;  %v5777_v48 = vcombine.low %v6192_v22, %v6191_v19  ;;  %v6195_v22 = vld [vmem:[#allocation11_spill] sm:$0xff] }
  0x89   : > { %v5779_v36 = vcombine.low %v1446_v39, %v1449_v41  ;;  %v5784_v1 = vcombine.low %v1453_v61, %v1456_v32  ;;  %v2334_v11 = vrot.slane %v2332_v57, 4  ;;  %v2335_v5 = vrot.slane %v324_v47, 5 }
  0x8a   : > { %v3856_v46 = vrot.slane %v5765_v7, 9  ;;  %v2047_v59 = vshll.u32 %v5765_v7, 16  ;;  %v2057_v8 = vshrl.u32 %v5727_v20, 16  ;;  %v5793_v53 = vcombine.low %v6194_v24, %v6193_v23  ;;  %v6196_v23 = vld [vmem:[#allocation2_spill] sm:$0xff] }
  0x8b   : > { %4276 = vmatpush3.bf16.msra.mxu1 %v4929_v18  ;;  %v2044_v18 = vshrl.u32 %v5765_v7, 16  ;;  %v2055_v51 = vrot.slane %v2053_v56, 5  ;;  %v2336_v14 = vsel %vm5329_vm5, %v2334_v11, %v2335_v5  ;;  %v2063_v30 = vshll.u32 %v324_v47, 16  ;;  %v4940_v11 = vld [vmem:[%s6121_s1 + $0x1d0] sm:$0xff]   ;;  %v4942_v5 = vld [vmem:[%s6121_s1 + $0x1d8] sm:$0xff]  }
  0x8c   : > { %4454 = vmatmul.mubr.bf16.gmra.mrb[20].mxu0 %v5707_v52  ;;  %4277 = vmatprep.subr.bf16.mxu1 %v4931_v25  ;;  %v2049_v55 = vrot.slane %v2047_v59, 5  ;;  %v2333_v26 = vsel %vm5329_vm5, %v3856_v46, %v2332_v57  ;;  %v5813_v32 = vcombine.low %v5255_v10, %v5272_v37  ;;  %v4941_v10 = vld [vmem:[%s6121_s1 + $0xb8] sm:$0xff]   ;;  %v4943_v37 = vld [vmem:[%s6121_s1 + $0xc0] sm:$0xff]   ;;  %v4946_v59 = vld [vmem:[%s6121_s1 + $0x1e8] sm:$0xff]   ;;  %v3750_v56 = vrot.slane %v5061_v16, 9 }
  0x8d   : > { %4457 = vmatprep.mubr.bf16.mxu0 %v5712_v35  ;;  %v2046_v13 = vrot.slane %v2044_v18, 4  ;;  %v5806_v39 = vcombine.low %v2333_v26, %v2336_v14  ;;  %v2065_v61 = vrot.slane %v2063_v30, 5  ;;  %v1347_v18 = vrot.slane %v5064_v17, 5  ;;  %v4948_v17 = vld [vmem:[%s6121_s1 + $0x1f0] sm:$0xff]   ;;  %v6197_v26 = vld [vmem:[#allocation14_spill] sm:$0xff] }
  0x8e   : > { %4246 = vmatmul.mubr.bf16.gmra.mrb[4].mxu1 %v5702_v54  ;;  %v1350_v24 = vrot.slane %v6196_v23, 5  ;;  %v6198_v14 = vld [vmem:[#allocation16_spill] sm:$0xff]  ;;  %v6199_v30 = vld [vmem:[#allocation18_spill] sm:$0xff]  ;;  %v4958_v23 = vld [vmem:[%s6121_s1 + $0x218] sm:$0xff]  }
  0x8f   : > { %4249 = vmatprep.mubr.bf16.mxu1 %v5753_v31  ;;  %4278 = vmatpush3.bf16.msra.mxu1 %v4931_v25  ;;  %v2059_v25 = vrot.slane %v2057_v8, 4  ;;  %v2050_v40 = vor.u32 %v2049_v55, %v2046_v13  ;;  %v1349_v8 = vrot.slane %v1347_v18, 4  ;;  %v4950_v13 = vld [vmem:[%s6121_s1 + $0x1f8] sm:$0xff]  }
  0x90   : > { %4279 = vmatprep.subr.bf16.mxu1 %v4933_v43 }
  0x91   : > { %v2060_v4 = vor.u32 %v2059_v25, %v2055_v51  ;;  %v2051_v41 = vrot.slane %v2050_v40, 4  ;;  %v1351_v16 = vsel %vm5329_vm5, %v1349_v8, %v1350_v24  ;;  %v4945_v25 = vld [vmem:[%s6121_s1 + $0xc8] sm:$0xff]   ;;  %v4947_v40 = vld [vmem:[%s6121_s1 + $0xd0] sm:$0xff]   ;;  %v6206_v24 = vld [vmem:[#allocation10_spill] sm:$0xff] }
  0x92   : > { %v4956_v8 = vld [vmem:[%s6121_s1 + $0x210] sm:$0xff]  }
  0x93   : > { %4280 = vmatpush3.bf16.msra.mxu1 %v4933_v43  ;;  %v4939_v43 = vld [vmem:[%s6121_s1 + $0xb0] sm:$0xff]   ;;  %v2061_v57 = vrot.slane %v2060_v4, 4  ;;  %v2056_v47 = vsel %vm5105_vm2, %v2051_v41, %v2055_v51  ;;  %v4952_v51 = vld [vmem:[%s6121_s1 + $0x200] sm:$0xff]   ;;  %v4949_v4 = vld [vmem:[%s6121_s1 + $0xd8] sm:$0xff]  }
  0x94   : > { %4458 = vmatmul.mubr.bf16.gmra.mrb[24].mxu0 %v5779_v36  ;;  %4281 = vmatprep.subr.bf16.mxu1 %v4935_v62  ;;  %v4951_v41 = vld [vmem:[%s6121_s1 + $0xe0] sm:$0xff]  }
  0x95   : > { %4461 = vmatprep.mubr.bf16.mxu0 %v5784_v1  ;;  %v2066_v19 = vsel %vm5105_vm2, %v2061_v57, %v2065_v61  ;;  %v5904_v57 = vcombine.low %v5765_v7, %v5727_v20  ;;  %v271_v61 = vld [vmem:[%s5049_s14 + $0xcc] sm:$0xf]  ;;  %v6201_v20 = vld [vmem:[#allocation22_spill] sm:$0xff]  ;;  %v6202_v7 = vld [vmem:[#allocation24_spill] sm:$0xff] }
  0x96   : > { %4250 = vmatmul.mubr.bf16.gmra.mrb[8].mxu1 %v5777_v48  ;;  %v5823_v46 = vcombine.low %v2056_v47, %v2066_v19  ;;  %v272_v47 = vld [vmem:[%s5049_s14 + $0xd0] sm:$0xf]  ;;  %v5910_v19 = vmax.bf16 %v6182_v49, %v271_v61  ;;  %v273_v61 = vld [vmem:[%s5049_s14 + $0xd4] sm:$0x1] }
  0x97   : > { %4253 = vmatprep.mubr.bf16.mxu1 %v5793_v53  ;;  %4282 = vmatpush3.bf16.msra.mxu1 %v4935_v62  ;;  %v5821_v62 = vcombine.low %v6195_v22, %v5304_v29  ;;  %v4938_v29 = vld [vmem:[%s6121_s1 + $0x1c8] sm:$0xff]   ;;  %v5913_v22 = vmax.bf16 %v6182_v49, %v272_v47 }
  0x98   : > { %4283 = vmatprep.subr.bf16.mxu1 %v4937_v63  ;;  %v2864_v47 = vshrl.u32 %v5910_v19, 16 }
  0x9b   : > { %4284 = vmatpush3.bf16.msra.mxu1 %v4937_v63  ;;  %v1348_v63 = vsel %vm5329_vm5, %v3750_v56, %v1347_v18  ;;  %v6204_v18 = vld [vmem:[#allocation6_spill] sm:$0xff]  ;;  %v6205_v56 = vld [vmem:[#allocation9_spill] sm:$0xff] }
  0x9c   : > { %4462 = vmatmul.mubr.bf16.gmra.mrb[28].mxu0 %v5806_v39  ;;  %4285 = vmatprep.subr.bf16.mxu1 %v4939_v43  ;;  %v3782_v55 = vcombine.low %v1348_v63, %v1351_v16  ;;  %v4959_v63 = vld [vmem:[%s6121_s1 + $0x220] sm:$0xff]   ;;  %v4960_v16 = vld [vmem:[%s6121_s1 + $0x228] sm:$0xff]  }
  0x9d   : > { %4481 = vmatprep.mubr.bf16.mxu0 %v5682_v12 }
  0x9e   : > { %4254 = vmatmul.mubr.bf16.gmra.mrb[12].mxu1 %v5813_v32 }
  0x9f   : > { %4257 = vmatprep.mubr.bf16.mxu1 %v5821_v62  ;;  %4286 = vmatpush3.bf16.msra.mxu1 %v4939_v43  ;;  %v6200_v43 = vld [vmem:[#allocation20_spill] sm:$0xff] }
  0xa0   : > { %4287 = vmatprep.subr.bf16.mxu1 %v4941_v10 }
  0xa3   : > { %4288 = vmatpush3.bf16.msra.mxu1 %v4941_v10  ;;  %v4953_v10 = vld [vmem:[%s6121_s1 + $0xe8] sm:$0xff]  }
  0xa4   : > { %4482 = vmatmul.mubr.bf16.vlgmr.msra.gmra.mrb[0].mxu0 %v5702_v54  ;;  %4321 = vmatprep.subr.bf16.mxu1 %v4943_v37 }
  0xa5   : > { %4514 = vmatpush3.bf16.msra.mxu0 %v5605_v6  ;;  %4485 = vmatprep.mubr.bf16.mxu0 %v5753_v31  ;;  %v4944_v6 = vld [vmem:[%s6121_s1 + $0x1e0] sm:$0xff]  }
  0xa6   : > { %4258 = vmatmul.mubr.bf16.gmra.mrb[16].mxu1 %v5719_v9  ;;  %4515 = vmatprep.subr.bf16.mxu0 %v4938_v29 }
  0xa7   : > { %4261 = vmatprep.mubr.bf16.mxu1 %v5723_v2 }
  0xa9   : > { %4516 = vmatpush3.bf16.msra.mxu0 %v4938_v29  ;;  %v4955_v29 = vld [vmem:[%s6121_s1 + $0xf0] sm:$0xff]  }
  0xaa   : > { %4517 = vmatprep.subr.bf16.mxu0 %v4940_v11 }
  0xac   : > { %4486 = vmatmul.mubr.bf16.gmra.mrb[4].mxu0 %v5777_v48 }
  0xad   : > { %4489 = vmatprep.mubr.bf16.mxu0 %v5793_v53  ;;  %4518 = vmatpush3.bf16.msra.mxu0 %v4940_v11  ;;  %v4957_v11 = vld [vmem:[%s6121_s1 + $0xf8] sm:$0xff]  }
  0xae   : > { %4262 = vmatmul.mubr.bf16.gmra.mrb[20].mxu1 %v5731_v33  ;;  %4519 = vmatprep.subr.bf16.mxu0 %v4942_v5 }
  0xaf   : > { %4265 = vmatprep.mubr.bf16.mxu1 %v5737_v3 }
  0xb1   : > { %4520 = vmatpush3.bf16.msra.mxu0 %v4942_v5  ;;  %v6203_v5 = vld [vmem:[#allocation4_spill] sm:$0xff] }
  0xb2   : > { %4521 = vmatprep.subr.bf16.mxu0 %v4944_v6 }
  0xb4   : > { %4490 = vmatmul.mubr.bf16.gmra.mrb[8].mxu0 %v5813_v32 }
  0xb5   : > { %4493 = vmatprep.mubr.bf16.mxu0 %v5821_v62  ;;  %4522 = vmatpush3.bf16.msra.mxu0 %v4944_v6  ;;  %v4954_v6 = vld [vmem:[%s6121_s1 + $0x208] sm:$0xff]  }
  0xb6   : > { %4266 = vmatmul.mubr.bf16.gmra.mrb[24].mxu1 %v5741_v42  ;;  %4523 = vmatprep.subr.bf16.mxu0 %v4946_v59 }
  0xb7   : > { %4269 = vmatprep.mubr.bf16.mxu1 %v5745_v34 }
  0xb9   : > { %4524 = vmatpush3.bf16.msra.mxu0 %v4946_v59  ;;  %v4963_v59 = vld [vmem:[%s6121_s1 + $0x100] sm:$0xff]  }
  0xba   : > { %4525 = vmatprep.subr.bf16.mxu0 %v4948_v17 }
  0xbc   : > { %4494 = vmatmul.mubr.bf16.gmra.mrb[12].mxu0 %v5719_v9 }
  0xbd   : > { %4497 = vmatprep.mubr.bf16.mxu0 %v5723_v2  ;;  %4526 = vmatpush3.bf16.msra.mxu0 %v4948_v17  ;;  %v6207_v17 = vld [vmem:[#allocation12_spill] sm:$0xff] }
  0xbe   : > { %4270 = vmatmul.mubr.bf16.gmra.mrb[28].mxu1 %v5749_v28  ;;  %4527 = vmatprep.subr.bf16.mxu0 %v4950_v13 }
  0xbf   : > { %4289 = vmatprep.mubr.bf16.mxu1 %v3782_v55  ;;  %v6209_v55 = vld [vmem:[#allocation15_spill] sm:$0xff] }
  0xc1   : > { %4528 = vmatpush3.bf16.msra.mxu0 %v4950_v13  ;;  %v6208_v13 = vld [vmem:[#allocation13_spill] sm:$0xff] }
  0xc2   : > { %4561 = vmatprep.subr.bf16.mxu0 %v4952_v51 }
  0xc4   : > { %4498 = vmatmul.mubr.bf16.gmra.mrb[16].mxu0 %v5731_v33 }
  0xc5   : > { %4501 = vmatprep.mubr.bf16.mxu0 %v5737_v3 }
  0xc6   : > { %4290 = vmatmul.mubr.bf16.vlgmr.msra.gmra.mrb[0].mxu1 %v6197_v26  ;;  %v6210_v26 = vld [vmem:[#allocation17_spill] sm:$0xff] }
  0xc7   : > { %4322 = vmatpush3.bf16.msra.mxu1 %v4943_v37  ;;  %4293 = vmatprep.mubr.bf16.mxu1 %v6198_v14  ;;  %v3898_v37 = vcombine.low %v5910_v19, %v5913_v22 }
  0xc8   : > { %4323 = vmatprep.subr.bf16.mxu1 %v4945_v25 }
  0xcb   : > { %4324 = vmatpush3.bf16.msra.mxu1 %v4945_v25  ;;  %v4962_v25 = vld [vmem:[%s6121_s1 + $0x238] sm:$0xff]  }
  0xcc   : > { %4502 = vmatmul.mubr.bf16.gmra.mrb[20].mxu0 %v5741_v42  ;;  %4325 = vmatprep.subr.bf16.mxu1 %v4947_v40 }
  0xcd   : > { %4505 = vmatprep.mubr.bf16.mxu0 %v5745_v34 }
  0xce   : > { %4294 = vmatmul.mubr.bf16.gmra.mrb[4].mxu1 %v6199_v30 }
  0xcf   : > { %4297 = vmatprep.mubr.bf16.mxu1 %v6200_v43  ;;  %4326 = vmatpush3.bf16.msra.mxu1 %v4947_v40  ;;  %v6211_v40 = vld [vmem:[#allocation19_spill] sm:$0xff] }
  0xd0   : > { %4327 = vmatprep.subr.bf16.mxu1 %v4949_v4 }
  0xd3   : > { %4328 = vmatpush3.bf16.msra.mxu1 %v4949_v4  ;;  %v6212_v4 = vld [vmem:[#allocation21_spill] sm:$0xff] }
  0xd4   : > { %4506 = vmatmul.mubr.bf16.gmra.mrb[24].mxu0 %v5749_v28  ;;  %4329 = vmatprep.subr.bf16.mxu1 %v4951_v41 }
  0xd5   : > { %4509 = vmatprep.mubr.bf16.mxu0 %v5904_v57 }
  0xd6   : > { %4298 = vmatmul.mubr.bf16.gmra.mrb[8].mxu1 %v6201_v20 }
  0xd7   : > { %4301 = vmatprep.mubr.bf16.mxu1 %v6202_v7  ;;  %4330 = vmatpush3.bf16.msra.mxu1 %v4951_v41  ;;  %v6213_v41 = vld [vmem:[#allocation23_spill] sm:$0xff] }
  0xd8   : > { %4331 = vmatprep.subr.bf16.mxu1 %v4953_v10 }
  0xdb   : > { %4332 = vmatpush3.bf16.msra.mxu1 %v4953_v10  ;;  %v2867_v10 = vshll.u32 %v5910_v19, 16 }
  0xdc   : > { %4510 = vmatmul.mubr.bf16.gmra.mrb[28].mxu0 %v3898_v37  ;;  %4333 = vmatprep.subr.bf16.mxu1 %v4955_v29  ;;  %v2873_v37 = vshll.u32 %v5913_v22, 16 }
  0xdd   : > { %4529 = vmatprep.mubr.bf16.mxu0 %v6203_v5  ;;  %v2866_v5 = vrot.slane %v2864_v47, 4 }
  0xde   : > { %4302 = vmatmul.mubr.bf16.gmra.mrb[12].mxu1 %v5619_v58 }
  0xdf   : > { %4305 = vmatprep.mubr.bf16.mxu1 %v5639_v15  ;;  %4334 = vmatpush3.bf16.msra.mxu1 %v4955_v29  ;;  %v2877_v29 = vshrl.u32 %v5913_v22, 16 }
  0xe0   : > { %4335 = vmatprep.subr.bf16.mxu1 %v4957_v11 }
  0xe3   : > { %4336 = vmatpush3.bf16.msra.mxu1 %v4957_v11  ;;  %v5985_v11 = vmax.bf16 %v6182_v49, %v273_v61  ;;  %v4966_v49 = vld [vmem:[%s6121_s1 + $0x118] sm:$0xff]  }
  0xe4   : > { %4530 = vmatmul.mubr.bf16.vlgmr.msra.gmra.mrb[0].mxu0 %v6204_v18  ;;  %4609 = vmatprep.subr.bf16.mxu1 %v4963_v59  ;;  %v2875_v18 = vrot.slane %v2873_v37, 5 }
  0xe5   : > { %4562 = vmatpush3.bf16.msra.mxu0 %v4952_v51  ;;  %4533 = vmatprep.mubr.bf16.mxu0 %v6205_v56  ;;  %v4961_v51 = vld [vmem:[%s6121_s1 + $0x230] sm:$0xff]   ;;  %v2879_v56 = vrot.slane %v2877_v29, 4 }
  0xe6   : > { %4306 = vmatmul.mubr.bf16.gmra.mrb[16].mxu1 %v5648_v27  ;;  %4563 = vmatprep.subr.bf16.mxu0 %v4954_v6 }
  0xe7   : > { %4309 = vmatprep.mubr.bf16.mxu1 %v5668_v38 }
  0xe9   : > { %4564 = vmatpush3.bf16.msra.mxu0 %v4954_v6  ;;  %v2869_v6 = vrot.slane %v2867_v10, 5 }
  0xea   : > { %4565 = vmatprep.subr.bf16.mxu0 %v4956_v8 }
  0xec   : > { %4534 = vmatmul.mubr.bf16.gmra.mrb[4].mxu0 %v6206_v24 }
  0xed   : > { %4537 = vmatprep.mubr.bf16.mxu0 %v6207_v17  ;;  %4566 = vmatpush3.bf16.msra.mxu0 %v4956_v8  ;;  %v6214_v8 = vld [vmem:[#allocation25_spill] sm:$0xff] }
  0xee   : > { %4310 = vmatmul.mubr.bf16.gmra.mrb[20].mxu1 %v5673_v21  ;;  %4567 = vmatprep.subr.bf16.mxu0 %v4958_v23 }
  0xef   : > { %4313 = vmatprep.mubr.bf16.mxu1 %v5707_v52 }
  0xf1   : > { %4568 = vmatpush3.bf16.msra.mxu0 %v4958_v23  ;;  %v2883_v23 = vshll.u32 %v5985_v11, 16 }
  0xf2   : > { %4569 = vmatprep.subr.bf16.mxu0 %v4959_v63 }
  0xf4   : > { %4538 = vmatmul.mubr.bf16.gmra.mrb[8].mxu0 %v6208_v13 }
  0xf5   : > { %4541 = vmatprep.mubr.bf16.mxu0 %v6209_v55  ;;  %4570 = vmatpush3.bf16.msra.mxu0 %v4959_v63  ;;  %v2885_v63 = vrot.slane %v2883_v23, 5  ;;  %v4968_v55 = vld [vmem:[%s6121_s1 + $0x128] sm:$0xff]  }
  0xf6   : > { %4314 = vmatmul.mubr.bf16.gmra.mrb[24].mxu1 %v5712_v35  ;;  %4571 = vmatprep.subr.bf16.mxu0 %v4960_v16 }
  0xf7   : > { %4317 = vmatprep.mubr.bf16.mxu1 %v5779_v36 }
  0xf9   : > { %4572 = vmatpush3.bf16.msra.mxu0 %v4960_v16  ;;  %v4967_v16 = vld [vmem:[%s6121_s1 + $0x120] sm:$0xff]  }
  0xfa   : > { %4573 = vmatprep.subr.bf16.mxu0 %v4961_v51 }
  0xfc   : > { %4542 = vmatmul.mubr.bf16.gmra.mrb[12].mxu0 %v6210_v26 }
  0xfd   : > { %4545 = vmatprep.mubr.bf16.mxu0 %v6211_v40  ;;  %4574 = vmatpush3.bf16.msra.mxu0 %v4961_v51  ;;  %v4969_v51 = vld [vmem:[%s6121_s1 + $0x130] sm:$0xff]  }
  0xfe   : > { %4318 = vmatmul.mubr.bf16.gmra.mrb[28].mxu1 %v5784_v1  ;;  %4575 = vmatprep.subr.bf16.mxu0 %v4962_v25 }
  0xff   : > { %4337 = vmatprep.mubr.bf16.mxu1 %v5678_v44  ;;  %v4964_v44 = vld [vmem:[%s6121_s1 + $0x108] sm:$0xff]  }
 0x101   : > { %4576 = vmatpush3.bf16.msra.mxu0 %v4962_v25 }
 0x104   : > { %4546 = vmatmul.mubr.bf16.gmra.mrb[16].mxu0 %v6212_v4 }
 0x105   : > { %4549 = vmatprep.mubr.bf16.mxu0 %v6213_v41 }
 0x106   : > { %4338 = vmatmul.mubr.bf16.vlgmr.msra.gmra.mrb[0].mxu1 %v5682_v12  ;;  %v4965_v12 = vld [vmem:[%s6121_s1 + $0x110] sm:$0xff]  }
 0x107   : > { %4617 = vmatpush3.bf16.msra.mxu1 %v4963_v59  ;;  %4341 = vmatprep.mubr.bf16.mxu1 %v5702_v54  ;;  %v2870_v54 = vor.u32 %v2869_v6, %v2866_v5  ;;  %v2880_v59 = vor.u32 %v2879_v56, %v2875_v18 }
 0x108   : > { %4610 = vmatprep.subr.bf16.mxu1 %v4964_v44 }
 0x109   : > { %v2871_v24 = vrot.slane %v2870_v54, 4  ;;  %v2881_v17 = vrot.slane %v2880_v59, 4 }
 0x10b   : > { %4618 = vmatpush3.bf16.msra.mxu1 %v4964_v44 }
 0x10c   : > { %4550 = vmatmul.mubr.bf16.gmra.mrb[20].mxu0 %v6214_v8  ;;  %4611 = vmatprep.subr.bf16.mxu1 %v4965_v12 }
 0x10d   : > { %4553 = vmatprep.mubr.bf16.mxu0 %v5617_v45 }
 0x10e   : > { %4342 = vmatmul.mubr.bf16.gmra.mrb[4].mxu1 %v5753_v31  ;;  %v2876_v31 = vsel %vm5105_vm2, %v2871_v24, %v2875_v18 }
 0x10f   : > { %4345 = vmatprep.mubr.bf16.mxu1 %v5777_v48  ;;  %4619 = vmatpush3.bf16.msra.mxu1 %v4965_v12  ;;  %v2886_v48 = vsel %vm5105_vm2, %v2881_v17, %v2885_v63 }
 0x110   : > { %4612 = vmatprep.subr.bf16.mxu1 %v4966_v49  ;;  %v3923_v13 = vcombine.low %v2876_v31, %v2886_v48 }
 0x113   : > { %4620 = vmatpush3.bf16.msra.mxu1 %v4966_v49 }
 0x114   : > { %4554 = vmatmul.mubr.bf16.gmra.mrb[24].mxu0 %v5650_v0  ;;  %4613 = vmatprep.subr.bf16.mxu1 %v4967_v16 }
 0x115   : > { %4557 = vmatprep.mubr.bf16.mxu0 %v5823_v46 }
 0x116   : > { %4346 = vmatmul.mubr.bf16.gmra.mrb[8].mxu1 %v5793_v53 }
 0x117   : > { %4349 = vmatprep.mubr.bf16.mxu1 %v5813_v32  ;;  %4621 = vmatpush3.bf16.msra.mxu1 %v4967_v16 }
 0x118   : > { %4614 = vmatprep.subr.bf16.mxu1 %v4968_v55 }
 0x11b   : > { %4622 = vmatpush3.bf16.msra.mxu1 %v4968_v55 }
 0x11c   : > { %4558 = vmatmul.mubr.bf16.gmra.mrb[28].mxu0 %v3923_v13  ;;  %4615 = vmatprep.subr.bf16.mxu1 %v4969_v51 }
 0x11d   : > { %4577 = vmatprep.mubr.bf16.mxu0 %v6198_v14 }
 0x11e   : > { %4350 = vmatmul.mubr.bf16.gmra.mrb[12].mxu1 %v5821_v62 }
 0x11f   : > { %4353 = vmatprep.mubr.bf16.mxu1 %v5719_v9  ;;  %4623 = vmatpush3.bf16.msra.mxu1 %v4969_v51 }
 0x120   : > { %4616 = vmatprep.subr.bf16.mxu1 %v4970_v50 }
 0x123   : > { %4624 = vmatpush3.bf16.msra.mxu1 %v4970_v50 }
 0x124   : > { %4578 = vmatmul.mubr.bf16.vlgmr.msra.gmra.mrb[0].mxu0 %v6199_v30 }
 0x125   : > { %4581 = vmatprep.mubr.bf16.mxu0 %v6200_v43 }
 0x126   : > { %4354 = vmatmul.mubr.bf16.gmra.mrb[16].mxu1 %v5723_v2 }
 0x127   : > { %4357 = vmatprep.mubr.bf16.mxu1 %v5731_v33 }
 0x12c   : > { %4582 = vmatmul.mubr.bf16.gmra.mrb[4].mxu0 %v6201_v20 }
 0x12d   : > { %4585 = vmatprep.mubr.bf16.mxu0 %v6202_v7 }
 0x12e   : > { %4358 = vmatmul.mubr.bf16.gmra.mrb[20].mxu1 %v5737_v3 }
 0x12f   : > { %4361 = vmatprep.mubr.bf16.mxu1 %v5741_v42 }
 0x134   : > { %4586 = vmatmul.mubr.bf16.gmra.mrb[8].mxu0 %v5619_v58  ;;  %v3152_v58 = vrot.slane %v5913_v22, 5 }
 0x135   : > { %4589 = vmatprep.mubr.bf16.mxu0 %v5639_v15  ;;  %v3932_v15 = vrot.slane %v5910_v19, 9 }
 0x136   : > { %4362 = vmatmul.mubr.bf16.gmra.mrb[24].mxu1 %v5745_v34 }
 0x137   : > { %4365 = vmatprep.mubr.bf16.mxu1 %v5749_v28 }
 0x13c   : > { %4590 = vmatmul.mubr.bf16.gmra.mrb[12].mxu0 %v5648_v27  ;;  %v3154_v27 = vrot.slane %v3152_v58, 4 }
 0x13d   : > { %4593 = vmatprep.mubr.bf16.mxu0 %v5668_v38  ;;  %v3155_v38 = vrot.slane %v5985_v11, 5 }
 0x13e   : > { %4366 = vmatmul.mubr.bf16.gmra.mrb[28].mxu1 %v5904_v57 }
 0x13f   : > { %4401 = vmatprep.mubr.bf16.mxu1 %v6210_v26 }
 0x144   : > { %4594 = vmatmul.mubr.bf16.gmra.mrb[16].mxu0 %v5673_v21  ;;  %v3153_v21 = vsel %vm5329_vm5, %v3932_v15, %v3152_v58 }
 0x145   : > { %4597 = vmatprep.mubr.bf16.mxu0 %v5707_v52  ;;  %v3156_v52 = vsel %vm5329_vm5, %v3154_v27, %v3155_v38 }
 0x146   : > { %4402 = vmatmul.mubr.bf16.vlgmr.msra.gmra.mrb[16].mxu1 %v6211_v40 }
 0x147   : > { %4405 = vmatprep.mubr.bf16.mxu1 %v6212_v4 }
 0x14c   : > { %4598 = vmatmul.mubr.bf16.gmra.mrb[20].mxu0 %v5712_v35  ;;  %v3949_v35 = vcombine.low %v3153_v21, %v3156_v52 }
 0x14d   : > { %4601 = vmatprep.mubr.bf16.mxu0 %v5779_v36 }
 0x14e   : > { %4406 = vmatmul.mubr.bf16.gmra.mrb[20].mxu1 %v6213_v41 }
 0x14f   : > { %4409 = vmatprep.mubr.bf16.mxu1 %v6214_v8 }
 0x154   : > { %4602 = vmatmul.mubr.bf16.gmra.mrb[24].mxu0 %v5784_v1 }
 0x155   : > { %4605 = vmatprep.mubr.bf16.mxu0 %v5806_v39 }
 0x156   : > { %4410 = vmatmul.mubr.bf16.gmra.mrb[24].mxu1 %v5617_v45 }
 0x157   : > { %4413 = vmatprep.mubr.bf16.mxu1 %v5650_v0 }
 0x15c   : > { %4606 = vmatmul.mubr.bf16.gmra.mrb[28].mxu0 %v3949_v35 }
 0x15e   : > { %4414 = vmatmul.mubr.bf16.gmra.mrb[28].mxu1 %v5823_v46 }
 0x1d9   : > { %v4339_v9 = vpop.f32.mrb[0].mxu1 }
 0x1da   : > { %v1884_v2 = vpop.f32.mrb[1].mxu1 }
 0x1db   : > { %v4340_v33 = vpop.f32.mrb[2].mxu1 }
 0x1dc   : > { %v1887_v3 = vpop.f32.mrb[3].mxu1 }
 0x1e1   : > { %v4343_v42 = vpop.f32.mrb[4].mxu1 }
 0x1e2   : > { %v1900_v34 = vpop.f32.mrb[5].mxu1 }
 0x1e3   : > { %v4344_v28 = vpop.f32.mrb[6].mxu1 }
 0x1e4   : > { %v1903_v36 = vpop.f32.mrb[7].mxu1 }
 0x1e9   : > { %v4347_v1 = vpop.f32.mrb[8].mxu1 }
 0x1ea   : > { %v1916_v60 = vpop.f32.mrb[9].mxu1 }
 0x1eb   : > { %v4348_v53 = vpop.f32.mrb[10].mxu1 }
 0x1ec   : > { %v6057_v39 = vpop.f32.mrb[11].mxu1 }
 0x1f1   : > { %v6059_v45 = vpop.f32.mrb[12].mxu1 }
 0x1f2   : > { %v6061_v0 = vpop.f32.mrb[13].mxu1 }
 0x1f3   : > { %v6063_v32 = vpop.f32.mrb[14].mxu1 }
 0x1f4   : > { %v6065_v62 = vpop.f32.mrb[15].mxu1 }
 0x1f7   : > { %v4579_v46 = vpop.f32.mrb[0].mxu0 }
 0x1f8   : > { %v4625_v14 = vadd.f32 %v4579_v46, %v4339_v9  ;;  %v3260_v30 = vpop.f32.mrb[1].mxu0 }
 0x1f9   : > { %v4626_v43 = vadd.f32 %v3260_v30, %v1884_v2  ;;  %v4580_v57 = vpop.f32.mrb[2].mxu0 }
 0x1fa   : > { %3421 = vst [vmem:[%s6071_s21 + $0x10] sm:$0xff] %v4625_v14  ;;  %v4627_v19 = vadd.f32 %v4580_v57, %v4340_v33  ;;  %v3263_v22 = vpop.f32.mrb[3].mxu0  ;;  %v3490_v40 = vmul.f32 %v4625_v14, %v4625_v14 }
 0x1fb   : > { %3419 = vst [vmem:[%s6071_s21] sm:$0xff] %v4626_v43  ;;  %v4628_v20 = vadd.f32 %v3263_v22, %v1887_v3  ;;  %v3488_v7 = vmul.f32 %v4626_v43, %v4626_v43 }
 0x1fc   : > { %3422 = vst [vmem:[%s6071_s21 + $0x18] sm:$0xff] %v4627_v19  ;;  %v3491_v37 = vmul.f32 %v4627_v19, %v4627_v19 }
 0x1fd   : > { %3420 = vst [vmem:[%s6071_s21 + $0x8] sm:$0xff] %v4628_v20  ;;  %v3451_v25 = vadd.f32 %v4628_v20, %v4626_v43  ;;  %v3489_v26 = vmul.f32 %v4628_v20, %v4628_v20 }
 0x1ff   : > { %v3452_v4 = vadd.f32 %v4625_v14, %v3451_v25  ;;  %v3520_v41 = vadd.f32 %v3489_v26, %v3488_v7  ;;  %v4583_v61 = vpop.f32.mrb[4].mxu0 }
 0x200   : > { %v4629_v47 = vadd.f32 %v4583_v61, %v4343_v42  ;;  %v3276_v10 = vpop.f32.mrb[5].mxu0 }
 0x201   : > { %v3521_v29 = vadd.f32 %v3520_v41, %v3490_v40  ;;  %v4630_v44 = vadd.f32 %v3276_v10, %v1900_v34  ;;  %v3453_v11 = vadd.f32 %v4627_v19, %v3452_v4  ;;  %v4584_v5 = vpop.f32.mrb[6].mxu0 }
 0x202   : > { %3425 = vst [vmem:[%s6071_s21 + $0x30] sm:$0xff] %v4629_v47  ;;  %v4631_v6 = vadd.f32 %v4584_v5, %v4344_v28  ;;  %v3279_v18 = vpop.f32.mrb[7].mxu0  ;;  %v3494_v24 = vmul.f32 %v4629_v47, %v4629_v47 }
 0x203   : > { %3423 = vst [vmem:[%s6071_s21 + $0x20] sm:$0xff] %v4630_v44  ;;  %v3454_v56 = vadd.f32 %v4630_v44, %v3453_v11  ;;  %v3492_v8 = vmul.f32 %v4630_v44, %v4630_v44  ;;  %v3522_v12 = vadd.f32 %v3521_v29, %v3491_v37  ;;  %v4632_v54 = vadd.f32 %v3279_v18, %v1903_v36 }
 0x204   : > { %3426 = vst [vmem:[%s6071_s21 + $0x38] sm:$0xff] %v4631_v6  ;;  %v3495_v13 = vmul.f32 %v4631_v6, %v4631_v6 }
 0x205   : > { %v3523_v59 = vadd.f32 %v3522_v12, %v3492_v8  ;;  %3424 = vst [vmem:[%s6071_s21 + $0x28] sm:$0xff] %v4632_v54  ;;  %v3455_v23 = vadd.f32 %v4632_v54, %v3454_v56  ;;  %v3493_v49 = vmul.f32 %v4632_v54, %v4632_v54 }
 0x207   : > { %v3456_v17 = vadd.f32 %v4629_v47, %v3455_v23  ;;  %v3524_v63 = vadd.f32 %v3523_v59, %v3493_v49  ;;  %v4587_v16 = vpop.f32.mrb[8].mxu0 }
 0x208   : > { %v4633_v31 = vadd.f32 %v4587_v16, %v4347_v1  ;;  %v3292_v48 = vpop.f32.mrb[9].mxu0 }
 0x209   : > { %v3525_v55 = vadd.f32 %v3524_v63, %v3494_v24  ;;  %v4634_v51 = vadd.f32 %v3292_v48, %v1916_v60  ;;  %v3457_v50 = vadd.f32 %v4631_v6, %v3456_v17  ;;  %v4588_v58 = vpop.f32.mrb[10].mxu0 }
 0x20a   : > { %3429 = vst [vmem:[%s6071_s21 + $0x50] sm:$0xff] %v4633_v31  ;;  %v4635_v15 = vadd.f32 %v4588_v58, %v4348_v53  ;;  %v3295_v27 = vpop.f32.mrb[11].mxu0  ;;  %v3498_v3 = vmul.f32 %v4633_v31, %v4633_v31 }
 0x20b   : > { %3427 = vst [vmem:[%s6071_s21 + $0x40] sm:$0xff] %v4634_v51  ;;  %v3458_v38 = vadd.f32 %v4634_v51, %v3457_v50  ;;  %v3496_v21 = vmul.f32 %v4634_v51, %v4634_v51  ;;  %v3526_v52 = vadd.f32 %v3525_v55, %v3495_v13  ;;  %v4636_v35 = vadd.f32 %v3295_v27, %v6057_v39 }
 0x20c   : > { %3430 = vst [vmem:[%s6071_s21 + $0x58] sm:$0xff] %v4635_v15  ;;  %v3499_v60 = vmul.f32 %v4635_v15, %v4635_v15 }
 0x20d   : > { %v3527_v9 = vadd.f32 %v3526_v52, %v3496_v21  ;;  %3428 = vst [vmem:[%s6071_s21 + $0x48] sm:$0xff] %v4636_v35  ;;  %v3459_v2 = vadd.f32 %v4636_v35, %v3458_v38  ;;  %v3497_v33 = vmul.f32 %v4636_v35, %v4636_v35 }
 0x20f   : > { %v3460_v42 = vadd.f32 %v4633_v31, %v3459_v2  ;;  %v3528_v34 = vadd.f32 %v3527_v9, %v3497_v33  ;;  %v4591_v28 = vpop.f32.mrb[12].mxu0 }
 0x210   : > { %v4637_v36 = vadd.f32 %v4591_v28, %v6059_v45  ;;  %v3308_v1 = vpop.f32.mrb[13].mxu0 }
 0x211   : > { %v3529_v53 = vadd.f32 %v3528_v34, %v3498_v3  ;;  %v4638_v39 = vadd.f32 %v3308_v1, %v6061_v0  ;;  %v3461_v46 = vadd.f32 %v4635_v15, %v3460_v42  ;;  %v4592_v14 = vpop.f32.mrb[14].mxu0 }
 0x212   : > { %3433 = vst [vmem:[%s6071_s21 + $0x70] sm:$0xff] %v4637_v36  ;;  %v4639_v30 = vadd.f32 %v4592_v14, %v6063_v32  ;;  %v3311_v43 = vpop.f32.mrb[15].mxu0  ;;  %v3502_v26 = vmul.f32 %v4637_v36, %v4637_v36 }
 0x213   : > { %3431 = vst [vmem:[%s6071_s21 + $0x60] sm:$0xff] %v4638_v39  ;;  %v3462_v57 = vadd.f32 %v4638_v39, %v3461_v46  ;;  %v3500_v19 = vmul.f32 %v4638_v39, %v4638_v39  ;;  %v3530_v22 = vadd.f32 %v3529_v53, %v3499_v60  ;;  %v4640_v20 = vadd.f32 %v3311_v43, %v6065_v62 }
 0x214   : > { %3434 = vst [vmem:[%s6071_s21 + $0x78] sm:$0xff] %v4639_v30  ;;  %v3503_v32 = vmul.f32 %v4639_v30, %v4639_v30 }
 0x215   : > { %v3531_v45 = vadd.f32 %v3530_v22, %v3500_v19  ;;  %3432 = vst [vmem:[%s6071_s21 + $0x68] sm:$0xff] %v4640_v20  ;;  %v3463_v7 = vadd.f32 %v4640_v20, %v3462_v57  ;;  %v3501_v25 = vmul.f32 %v4640_v20, %v4640_v20 }
 0x217   : > { %v3464_v0 = vadd.f32 %v4637_v36, %v3463_v7  ;;  %v3532_v40 = vadd.f32 %v3531_v45, %v3501_v25  ;;  %v4595_v4 = vpop.f32.mrb[16].mxu0 }
 0x218   : > { %v3324_v41 = vpop.f32.mrb[17].mxu0 }
 0x219   : > { %v3533_v61 = vadd.f32 %v3532_v40, %v3502_v26  ;;  %v4403_v47 = vpop.f32.mrb[16].mxu1  ;;  %v3465_v10 = vadd.f32 %v4639_v30, %v3464_v0  ;;  %v4596_v37 = vpop.f32.mrb[18].mxu0 }
 0x21a   : > { %v4641_v62 = vadd.f32 %v4595_v4, %v4403_v47  ;;  %v2234_v29 = vpop.f32.mrb[17].mxu1  ;;  %v3327_v44 = vpop.f32.mrb[19].mxu0 }
 0x21b   : > { %v4642_v11 = vadd.f32 %v3324_v41, %v2234_v29  ;;  %v3534_v5 = vadd.f32 %v3533_v61, %v3503_v32  ;;  %v4404_v6 = vpop.f32.mrb[18].mxu1 }
 0x21c   : > { %3437 = vst [vmem:[%s6071_s21 + $0x90] sm:$0xff] %v4641_v62  ;;  %v4643_v18 = vadd.f32 %v4596_v37, %v4404_v6  ;;  %v2237_v56 = vpop.f32.mrb[19].mxu1  ;;  %v3506_v63 = vmul.f32 %v4641_v62, %v4641_v62 }
 0x21d   : > { %3435 = vst [vmem:[%s6071_s21 + $0x80] sm:$0xff] %v4642_v11  ;;  %v3466_v8 = vadd.f32 %v4642_v11, %v3465_v10  ;;  %v3504_v12 = vmul.f32 %v4642_v11, %v4642_v11  ;;  %v4644_v54 = vadd.f32 %v3327_v44, %v2237_v56 }
 0x21e   : > { %3438 = vst [vmem:[%s6071_s21 + $0x98] sm:$0xff] %v4643_v18  ;;  %v3507_v58 = vmul.f32 %v4643_v18, %v4643_v18 }
 0x21f   : > { %v3535_v59 = vadd.f32 %v3534_v5, %v3504_v12  ;;  %3436 = vst [vmem:[%s6071_s21 + $0x88] sm:$0xff] %v4644_v54  ;;  %v3467_v23 = vadd.f32 %v4644_v54, %v3466_v8  ;;  %v3505_v49 = vmul.f32 %v4644_v54, %v4644_v54  ;;  %v4599_v24 = vpop.f32.mrb[20].mxu0 }
 0x220   : > { %v3340_v17 = vpop.f32.mrb[21].mxu0 }
 0x221   : > { %v3468_v16 = vadd.f32 %v4641_v62, %v3467_v23  ;;  %v3536_v31 = vadd.f32 %v3535_v59, %v3505_v49  ;;  %v4407_v48 = vpop.f32.mrb[20].mxu1  ;;  %v4600_v13 = vpop.f32.mrb[22].mxu0 }
 0x222   : > { %v4645_v55 = vadd.f32 %v4599_v24, %v4407_v48  ;;  %v2250_v51 = vpop.f32.mrb[21].mxu1  ;;  %v3343_v50 = vpop.f32.mrb[23].mxu0 }
 0x223   : > { %v3537_v15 = vadd.f32 %v3536_v31, %v3506_v63  ;;  %v4646_v27 = vadd.f32 %v3340_v17, %v2250_v51  ;;  %v3469_v38 = vadd.f32 %v4643_v18, %v3468_v16  ;;  %v4408_v21 = vpop.f32.mrb[22].mxu1 }
 0x224   : > { %3441 = vst [vmem:[%s6071_s21 + $0xb0] sm:$0xff] %v4645_v55  ;;  %v4647_v52 = vadd.f32 %v4600_v13, %v4408_v21  ;;  %v2253_v35 = vpop.f32.mrb[23].mxu1  ;;  %v3510_v60 = vmul.f32 %v4645_v55, %v4645_v55 }
 0x225   : > { %3439 = vst [vmem:[%s6071_s21 + $0xa0] sm:$0xff] %v4646_v27  ;;  %v3470_v9 = vadd.f32 %v4646_v27, %v3469_v38  ;;  %v3508_v2 = vmul.f32 %v4646_v27, %v4646_v27  ;;  %v3538_v33 = vadd.f32 %v3537_v15, %v3507_v58  ;;  %v4648_v3 = vadd.f32 %v3343_v50, %v2253_v35 }
 0x226   : > { %3442 = vst [vmem:[%s6071_s21 + $0xb8] sm:$0xff] %v4647_v52  ;;  %v3511_v19 = vmul.f32 %v4647_v52, %v4647_v52 }
 0x227   : > { %v3539_v42 = vadd.f32 %v3538_v33, %v3508_v2  ;;  %3440 = vst [vmem:[%s6071_s21 + $0xa8] sm:$0xff] %v4648_v3  ;;  %v3471_v34 = vadd.f32 %v4648_v3, %v3470_v9  ;;  %v3509_v28 = vmul.f32 %v4648_v3, %v4648_v3  ;;  %v4603_v36 = vpop.f32.mrb[24].mxu0 }
 0x228   : > { %v3356_v1 = vpop.f32.mrb[25].mxu0 }
 0x229   : > { %v3472_v53 = vadd.f32 %v4645_v55, %v3471_v34  ;;  %v3540_v39 = vadd.f32 %v3539_v42, %v3509_v28  ;;  %v4411_v46 = vpop.f32.mrb[24].mxu1  ;;  %v4604_v14 = vpop.f32.mrb[26].mxu0 }
 0x22a   : > { %v4649_v30 = vadd.f32 %v4603_v36, %v4411_v46  ;;  %v2266_v43 = vpop.f32.mrb[25].mxu1  ;;  %v3359_v57 = vpop.f32.mrb[27].mxu0 }
 0x22b   : > { %v3541_v22 = vadd.f32 %v3540_v39, %v3510_v60  ;;  %v4650_v20 = vadd.f32 %v3356_v1, %v2266_v43  ;;  %v3473_v45 = vadd.f32 %v4647_v52, %v3472_v53  ;;  %v4412_v7 = vpop.f32.mrb[26].mxu1 }
 0x22c   : > { %3445 = vst [vmem:[%s6071_s21 + $0xd0] sm:$0xff] %v4649_v30  ;;  %v4651_v25 = vadd.f32 %v4604_v14, %v4412_v7  ;;  %v2269_v26 = vpop.f32.mrb[27].mxu1  ;;  %v3514_v62 = vmul.f32 %v4649_v30, %v4649_v30 }
 0x22d   : > { %3443 = vst [vmem:[%s6071_s21 + $0xc0] sm:$0xff] %v4650_v20  ;;  %v3474_v0 = vadd.f32 %v4650_v20, %v3473_v45  ;;  %v3512_v40 = vmul.f32 %v4650_v20, %v4650_v20  ;;  %v3542_v4 = vadd.f32 %v3541_v22, %v3511_v19  ;;  %v4652_v41 = vadd.f32 %v3359_v57, %v2269_v26 }
 0x22e   : > { %3446 = vst [vmem:[%s6071_s21 + $0xd8] sm:$0xff] %v4651_v25  ;;  %v3515_v8 = vmul.f32 %v4651_v25, %v4651_v25 }
 0x22f   : > { %v3543_v32 = vadd.f32 %v3542_v4, %v3512_v40  ;;  %3444 = vst [vmem:[%s6071_s21 + $0xc8] sm:$0xff] %v4652_v41  ;;  %v3475_v61 = vadd.f32 %v4652_v41, %v3474_v0  ;;  %v3513_v47 = vmul.f32 %v4652_v41, %v4652_v41  ;;  %v4607_v10 = vpop.f32.mrb[28].mxu0 }
 0x230   : > { %v3372_v37 = vpop.f32.mrb[29].mxu0 }
 0x231   : > { %v3476_v29 = vadd.f32 %v4649_v30, %v3475_v61  ;;  %v3544_v44 = vadd.f32 %v3543_v32, %v3513_v47  ;;  %v4415_v11 = vpop.f32.mrb[28].mxu1  ;;  %v4608_v5 = vpop.f32.mrb[30].mxu0 }
 0x232   : > { %v4653_v6 = vadd.f32 %v4607_v10, %v4415_v11  ;;  %v2282_v18 = vpop.f32.mrb[29].mxu1  ;;  %v3375_v56 = vpop.f32.mrb[31].mxu0 }
 0x233   : > { %v3545_v12 = vadd.f32 %v3544_v44, %v3514_v62  ;;  %v4654_v54 = vadd.f32 %v3372_v37, %v2282_v18  ;;  %v3477_v59 = vadd.f32 %v4651_v25, %v3476_v29  ;;  %v4416_v23 = vpop.f32.mrb[30].mxu1 }
 0x234   : > { %3449 = vst [vmem:[%s6071_s21 + $0xf0] sm:$0xff] %v4653_v6  ;;  %v4655_v49 = vadd.f32 %v4608_v5, %v4416_v23  ;;  %v2285_v24 = vpop.f32.mrb[31].mxu1  ;;  %v3518_v51 = vmul.f32 %v4653_v6, %v4653_v6 }
 0x235   : > { %3447 = vst [vmem:[%s6071_s21 + $0xe0] sm:$0xff] %v4654_v54  ;;  %v3478_v17 = vadd.f32 %v4654_v54, %v3477_v59  ;;  %v3516_v63 = vmul.f32 %v4654_v54, %v4654_v54  ;;  %v3546_v16 = vadd.f32 %v3545_v12, %v3515_v8  ;;  %v4656_v31 = vadd.f32 %v3375_v56, %v2285_v24 }
 0x236   : > { %3450 = vst [vmem:[%s6071_s21 + $0xf8] sm:$0xff] %v4655_v49  ;;  %v3519_v15 = vmul.f32 %v4655_v49, %v4655_v49 }
 0x237   : > { %v3547_v48 = vadd.f32 %v3546_v16, %v3516_v63  ;;  %3448 = vst [vmem:[%s6071_s21 + $0xe8] sm:$0xff] %v4656_v31  ;;  %v3479_v13 = vadd.f32 %v4656_v31, %v3478_v17  ;;  %v3517_v55 = vmul.f32 %v4656_v31, %v4656_v31 }
 0x239   : > { %v3480_v50 = vadd.f32 %v4653_v6, %v3479_v13  ;;  %v3548_v58 = vadd.f32 %v3547_v48, %v3517_v55 }
 0x23b   : > { %v3481_v27 = vadd.f32 %v4655_v49, %v3480_v50  ;;  %v3549_v38 = vadd.f32 %v3548_v58, %v3518_v51 }
 0x23d   : > { %v3482_v21 = vrot.slane %v3481_v27, 4  ;;  %v3550_v52 = vadd.f32 %v3549_v38, %v3519_v15 }
 0x23f   : > { %v3483_v35 = vadd.f32 %v3482_v21, %v3481_v27  ;;  %v3551_v9 = vrot.slane %v3550_v52, 4 }
 0x241   : > { %v3484_v2 = vrot.slane %v3483_v35, 2  ;;  %v3552_v33 = vadd.f32 %v3551_v9, %v3550_v52 }
 0x243   : > { %v3485_v3 = vadd.f32 %v3484_v2, %v3483_v35  ;;  %v3553_v42 = vrot.slane %v3552_v33, 2 }
 0x245   : > { %v3486_v34 = vrot.slane %v3485_v3, 1  ;;  %v3554_v28 = vadd.f32 %v3553_v42, %v3552_v33 }
 0x247   : > { %v3487_v36 = vadd.f32 %v3486_v34, %v3485_v3  ;;  %v3555_v1 = vrot.slane %v3554_v28, 1 }
 0x249   : > { %v3556_v60 = vadd.f32 %v3555_v1, %v3554_v28  ;;  %3557 = vst [vmem:[%s214_s25] sm:$0xff] %v3487_v36 }
 0x24b   : > { %3558 = vst [vmem:[%s218_s28] sm:$0xff] %v3556_v60 }
 0x24c PF: > { %s15_s15 = sadd.s32 1, %s4977_s15  }
 0x24d   : > { %p12_p4 = scmp.ge.s32.totalorder %s15_s15, 4  }
 0x24f   :  { %14 = sbr.rel (!%p12_p4) target bundleno = 1 (0x1), region = 90 }

// kernel: unet_innermost_forward.3
= control target key start
LH: loop header
LB: loop body
LE: loop exit
PB: predicated region body
PF: predicated region fallthrough
CT: control target
= control target key end

     0   :  { %s5387_s18 = smov 0   ;;  %s6642_s0 = inlined_call_operand.vmem [shape: bf16[2,9,9,128], index: 0, kind: input, shape index: {}]   ;;  %s6643_s1 = inlined_call_operand.vmem [shape: bf16[2,9,9,128], index: 1, kind: input, shape index: {}]   ;;  %s6644_s2 = inlined_call_operand.vmem [shape: bf16[2,9,9,128], index: 2, kind: input, shape index: {}]   ;;  %s6645_s3 = inlined_call_operand.vmem [shape: bf16[2,9,9,128], index: 3, kind: input, shape index: {}]   ;;  %s6646_s4 = inlined_call_operand.vmem [shape: bf16[16,128,128], index: 4, kind: input, shape index: {}]   ;;  %s6647_s5 = inlined_call_operand.vmem [shape: bf16[2,64,128], index: 5, kind: output, shape index: {}]  }
   0x1 LB: > { %s3855_s19 = sadd.s32 4294967295, %s5355_s18   ;;  %p3859_p0 = scmp.ge.s32.totalorder %s5355_s18, 1  ;;  %s5355_s18 = sphi %s5387_s18, %s15_s18  }
   0x2   : > { %p217_p1 = scmp.lt.s32.totalorder %s5355_s18, 3 }
   0x4   : > { %p218_p2 = pnand %p3859_p0, %p217_p1 }
   0x5   : > { %v5221_v0 = vld [vmem:[%s6646_s4 + $0x40] sm:$0xff] (!%p218_p2)   ;;  %p260_p3 = scmp.lt.s32.totalorder (!%p218_p2), %s3855_s19, 1  ;;  %v5223_v2 = vld [vmem:[%s6646_s4 + $0x48] sm:$0xff] (!%p218_p2)   ;;  %v5225_v4 = vld [vmem:[%s6646_s4 + $0x50] sm:$0xff] (!%p218_p2)  }
   0x6   : > { %221 = sbr.rel (%p218_p2) target bundleno = 491 (0x1eb), region = 40  ;;  %v5222_v1 = vld [vmem:[%s6646_s4 + $0x200] sm:$0xff] (!%p218_p2)   ;;  %4708 = vmatprep.subr.bf16.mxu1 (!%p218_p2), %v5221_v0  ;;  %v5224_v3 = vld [vmem:[%s6646_s4 + $0x208] sm:$0xff] (!%p218_p2)   ;;  %v5226_v5 = vld [vmem:[%s6646_s4 + $0x210] sm:$0xff] (!%p218_p2)  }
   0x7   : > { %4900 = vmatprep.subr.bf16.mxu0 (!%p218_p2), %v5222_v1  ;;  %4709 = vmatpush3.bf16.msra.mxu1 (!%p218_p2), %v5221_v0  ;;  %v5227_v6 = vld [vmem:[%s6646_s4 + $0x58] sm:$0xff] (!%p218_p2)   ;;  %v5229_v8 = vld [vmem:[%s6646_s4 + $0x60] sm:$0xff] (!%p218_p2)   ;;  %v5231_v10 = vld [vmem:[%s6646_s4 + $0x68] sm:$0xff] (!%p218_p2)  }
   0x8   : > { %4901 = vmatpush3.bf16.msra.mxu0 (!%p218_p2), %v5222_v1  ;;  %4710 = vmatprep.subr.bf16.mxu1 (!%p218_p2), %v5223_v2  ;;  %v5228_v7 = vld [vmem:[%s6646_s4 + $0x218] sm:$0xff] (!%p218_p2)   ;;  %v5230_v9 = vld [vmem:[%s6646_s4 + $0x220] sm:$0xff] (!%p218_p2)   ;;  %v5232_v12 = vld [vmem:[%s6646_s4 + $0x228] sm:$0xff] (!%p218_p2)  }
   0x9   : > { %4902 = vmatprep.subr.bf16.mxu0 (!%p218_p2), %v5224_v3  ;;  %v5233_v20 = vld [vmem:[%s6646_s4 + $0x70] sm:$0xff] (!%p218_p2)   ;;  %v5235_v29 = vld [vmem:[%s6646_s4 + $0x78] sm:$0xff] (!%p218_p2)   ;;  %v5237_v38 = vld [vmem:[%s6646_s4] sm:$0xff] (!%p218_p2)  }
   0xa   : > { %v5234_v22 = vld [vmem:[%s6646_s4 + $0x230] sm:$0xff] (!%p218_p2)   ;;  %v5236_v31 = vld [vmem:[%s6646_s4 + $0x238] sm:$0xff] (!%p218_p2)   ;;  %v5238_v42 = vld [vmem:[%s6646_s4 + $0x240] sm:$0xff] (!%p218_p2)  }
   0xb   : > { %4711 = vmatpush3.bf16.msra.mxu1 (!%p218_p2), %v5223_v2  ;;  %v5239_v57 = vld [vmem:[%s6646_s4 + $0x8] sm:$0xff] (!%p218_p2)  }
   0xc   : > { %4903 = vmatpush3.bf16.msra.mxu0 (!%p218_p2), %v5224_v3  ;;  %4712 = vmatprep.subr.bf16.mxu1 (!%p218_p2), %v5225_v4  ;;  %v5240_v61 = vld [vmem:[%s6646_s4 + $0x248] sm:$0xff] (!%p218_p2)  }
   0xd   : > { %s6659_s19 = smov (!%p260_p3, %s3855_s19), 1  ;;  %4904 = vmatprep.subr.bf16.mxu0 %v5226_v5 }
   0xe   : > { %s5422_s11 = smul.u32 72, %s6659_s19  ;;  %s4380_s7 = sshll.u32 %s6659_s19, 5 }
   0xf   : > { %4713 = vmatpush3.bf16.msra.mxu1 %v5225_v4  ;;  %s284_s9 = scalar_lea.vmem %s6647_s5, %s4380_s7 }
  0x10   : > { %4905 = vmatpush3.bf16.msra.mxu0 %v5226_v5  ;;  %4714 = vmatprep.subr.bf16.mxu1 %v5227_v6  ;;  %s5434_s20 = scalar_lea.vmem %s6643_s1, %s5422_s11  ;;  %s5440_s23 = scalar_lea.vmem %s6642_s0, %s5422_s11  ;;  %v5241_v5 = vld [vmem:[%s6646_s4 + $0x10] sm:$0xff]  }
  0x11   : > { %4906 = vmatprep.subr.bf16.mxu0 %v5228_v7  ;;  %v385_v11 = vld [vmem:[%s5434_s20] ss:$8 sps:$4 sm:$0xff]   ;;  %v389_v30 = vld [vmem:[%s5434_s20 + $0x10] ss:$8 sps:$4 sm:$0xff]   ;;  %s5915_s16 = scalar_lea.vmem %s6644_s2, %s5422_s11  ;;  %s6025_s6 = scalar_lea.vmem %s6645_s3, %s5422_s11 }
  0x12   : > { %v403_v13 = vunpack.c.l.bf16 %v385_v11  ;;  %v405_v14 = vunpack.c.h.bf16 %v385_v11  ;;  %v288_v15 = vld [vmem:[%s5440_s23 + $0x8] ss:$8 sps:$4 sm:$0xff]   ;;  %v292_v21 = vld [vmem:[%s5440_s23 + $0x18] ss:$8 sps:$4 sm:$0xff]   ;;  %v407_v37 = vunpack.c.l.bf16 %v389_v30  ;;  %v409_v46 = vunpack.c.h.bf16 %v389_v30 }
  0x13   : > { %4715 = vmatpush3.bf16.msra.mxu1 %v5227_v6  ;;  %v306_v16 = vunpack.c.l.bf16 %v288_v15  ;;  %v308_v17 = vunpack.c.h.bf16 %v288_v15  ;;  %v310_v28 = vunpack.c.l.bf16 %v292_v21  ;;  %v312_v39 = vunpack.c.h.bf16 %v292_v21  ;;  %v393_v62 = vld [vmem:[%s5434_s20 + $0x20] ss:$8 sps:$4 sm:$0xff]   ;;  %v5243_v21 = vld [vmem:[%s6646_s4 + $0x18] sm:$0xff]  }
  0x14   : > { %4907 = vmatpush3.bf16.msra.mxu0 %v5228_v7  ;;  %4716 = vmatprep.subr.bf16.mxu1 %v5229_v8  ;;  %vm421_vm0 = vcmp.gt.f32.partialorder %v403_v13, 0.0  ;;  %vm423_vm1 = vcmp.gt.f32.partialorder %v405_v14, 0.0  ;;  %v439_v18 = vmul.f32 0.2, %v403_v13  ;;  %v441_v19 = vmul.f32 0.2, %v405_v14 }
  0x15   : > { %4908 = vmatprep.subr.bf16.mxu0 %v5230_v9  ;;  %v342_v25 = vmul.f32 0.2, %v306_v16  ;;  %v344_v26 = vmul.f32 0.2, %v308_v17  ;;  %vm324_vm2 = vcmp.gt.f32.partialorder %v306_v16, 0.0  ;;  %vm326_vm3 = vcmp.gt.f32.partialorder %v308_v17, 0.0 }
  0x16   : > { %v457_v23 = vsel %vm421_vm0, %v403_v13, %v439_v18  ;;  %v5457_v24 = vsel %vm423_vm1, %v405_v14, %v441_v19  ;;  %v346_v36 = vmul.f32 0.2, %v310_v28  ;;  %vm328_vm4 = vcmp.gt.f32.partialorder %v310_v28, 0.0 }
  0x17   : > { %4717 = vmatpush3.bf16.msra.mxu1 %v5229_v8  ;;  %v4381_v27 = vpack.c.bf16 %v5457_v24, %v457_v23  ;;  %v4405_v32 = vpack.c.bf16 %v457_v23, %v457_v23  ;;  %v4407_v33 = vpack.c.bf16 %v5457_v24, %v5457_v24  ;;  %v5469_v34 = vsel %vm324_vm2, %v306_v16, %v342_v25 }
  0x18   : > { %4909 = vmatpush3.bf16.msra.mxu0 %v5230_v9  ;;  %4718 = vmatprep.subr.bf16.mxu1 %v5231_v10  ;;  %v5471_v35 = vsel %vm326_vm3, %v308_v17, %v344_v26  ;;  %v4391_v40 = vpack.c.bf16 %v5469_v34, %v5469_v34  ;;  %v5483_v48 = vsel %vm328_vm4, %v310_v28, %v346_v36  ;;  %vm425_vm5 = vcmp.gt.f32.partialorder %v407_v37, 0.0  ;;  %v5242_v9 = vld [vmem:[%s6646_s4 + $0x250] sm:$0xff]  }
  0x19   : > { %4910 = vmatprep.subr.bf16.mxu0 %v5232_v12  ;;  %4724 = vmatprep.mubr.bf16.mxu1 %v4381_v27  ;;  %v4461_v41 = vpack.c.bf16 %v5471_v35, %v5469_v34  ;;  %v1307_v43 = vshrl.u32 %v4405_v32, 16  ;;  %v1310_v44 = vshll.u32 %v4405_v32, 16  ;;  %v1321_v45 = vshrl.u32 %v4407_v33, 16 }
  0x1a   : > { %v1324_v47 = vshll.u32 %v4407_v33, 16  ;;  %v443_v49 = vmul.f32 0.2, %v407_v37  ;;  %vm427_vm6 = vcmp.gt.f32.partialorder %v409_v46, 0.0  ;;  %v445_v50 = vmul.f32 0.2, %v409_v46 }
  0x1b   : > { %4719 = vmatpush3.bf16.msra.mxu1 %v5231_v10  ;;  %4916 = vmatprep.mubr.bf16.mxu0 %v4461_v41  ;;  %vm330_vm7 = vcmp.gt.f32.partialorder %v312_v39, 0.0  ;;  %v348_v51 = vmul.f32 0.2, %v312_v39  ;;  %v4393_v53 = vpack.c.bf16 %v5471_v35, %v5471_v35  ;;  %v1031_v54 = vshrl.u32 %v4391_v40, 16  ;;  %v296_v10 = vld [vmem:[%s5440_s23 + $0x28] ss:$8 sps:$4 sm:$0xff]  }
  0x1c   : > { %4911 = vmatpush3.bf16.msra.mxu0 %v5232_v12  ;;  %4720 = vmatprep.subr.bf16.mxu1 %v5233_v20  ;;  %v5485_v52 = vsel %vm425_vm5, %v407_v37, %v443_v49  ;;  %v5489_v55 = vsel %vm427_vm6, %v409_v46, %v445_v50  ;;  %v4395_v58 = vpack.c.bf16 %v5483_v48, %v5483_v48  ;;  %v411_v63 = vunpack.c.l.bf16 %v393_v62  ;;  %v5245_v41 = vld [vmem:[%s6646_s4 + $0x20] sm:$0xff]   ;;  %v5247_v50 = vld [vmem:[%s6646_s4 + $0x28] sm:$0xff]  }
  0x1d   : > { %4912 = vmatprep.subr.bf16.mxu0 %v5234_v22  ;;  %v5491_v56 = vsel %vm330_vm7, %v312_v39, %v348_v51  ;;  %v4382_v59 = vpack.c.bf16 %v5489_v55, %v5485_v52  ;;  %v413_v0 = vunpack.c.h.bf16 %v393_v62  ;;  %v1309_v1 = vrot.slane %v1307_v43, 4  ;;  %v5246_v46 = vld [vmem:[%s6646_s4 + $0x260] sm:$0xff]   ;;  %v5248_v51 = vld [vmem:[%s6646_s4 + $0x268] sm:$0xff]  }
  0x1e   : > { %v4462_v60 = vpack.c.bf16 %v5491_v56, %v5483_v48  ;;  %v1312_v2 = vrot.slane %v1310_v44, 5  ;;  %v5506_v3 = vrot.slane %v1321_v45, 4  ;;  %v1034_v4 = vshll.u32 %v4391_v40, 16  ;;  %v300_v44 = vld [vmem:[%s5440_s23 + $0x38] ss:$8 sps:$4 sm:$0xff]  }
  0x1f   : > { %4721 = vmatpush3.bf16.msra.mxu1 %v5233_v20  ;;  %v5511_v6 = vrot.slane %v1324_v47, 5  ;;  %v5513_v7 = vrot.slane %v1031_v54, 4  ;;  %v1045_v8 = vshrl.u32 %v4393_v53, 16  ;;  %v1048_v11 = vshll.u32 %v4393_v53, 16  ;;  %v397_v20 = vld [vmem:[%s5434_s20 + $0x30] ss:$8 sps:$4 sm:$0xff]  }
  0x20   : > { %4913 = vmatpush3.bf16.msra.mxu0 %v5234_v22  ;;  %4722 = vmatprep.subr.bf16.mxu1 %v5235_v29  ;;  %v1059_v12 = vshrl.u32 %v4395_v58, 16  ;;  %vm429_vm8 = vcmp.gt.f32.partialorder %v411_v63, 0.0  ;;  %vm431_vm9 = vcmp.gt.f32.partialorder %v413_v0, 0.0  ;;  %v447_v13 = vmul.f32 0.2, %v411_v63  ;;  %v5244_v22 = vld [vmem:[%s6646_s4 + $0x258] sm:$0xff]  }
  0x21   : > { %4914 = vmatprep.subr.bf16.mxu0 %v5236_v31  ;;  %v449_v14 = vmul.f32 0.2, %v413_v0  ;;  %v314_v15 = vunpack.c.l.bf16 %v296_v10  ;;  %v316_v16 = vunpack.c.h.bf16 %v296_v10  ;;  %v1313_v17 = vor.u32 %v1312_v2, %v1309_v1  ;;  %v286_v1 = vld [vmem:[%s5440_s23] sm:$0xf] }
  0x22   : > { %v5519_v18 = vrot.slane %v1034_v4, 5  ;;  %v1062_v19 = vshll.u32 %v4395_v58, 16  ;;  %v5528_v23 = vsel %vm429_vm8, %v411_v63, %v447_v13  ;;  %v4409_v26 = vpack.c.bf16 %v5485_v52, %v5485_v52 }
  0x23   : > { %4723 = vmatpush3.bf16.msra.mxu1 %v5235_v29  ;;  %v5530_v25 = vsel %vm431_vm9, %v413_v0, %v449_v14  ;;  %vm332_vm10 = vcmp.gt.f32.partialorder %v314_v15, 0.0  ;;  %vm334_vm11 = vcmp.gt.f32.partialorder %v316_v16, 0.0  ;;  %v350_v28 = vmul.f32 0.2, %v314_v15 }
  0x24   : > { %4915 = vmatpush3.bf16.msra.mxu0 %v5236_v31  ;;  %4732 = vmatprep.subr.bf16.mxu1 %v5237_v38  ;;  %v4383_v27 = vpack.c.bf16 %v5530_v25, %v5528_v23  ;;  %v5536_v29 = vrot.slane %v1045_v8, 4  ;;  %v352_v30 = vmul.f32 0.2, %v316_v16  ;;  %v415_v31 = vunpack.c.l.bf16 %v397_v20 }
  0x25   : > { %4924 = vmatprep.subr.bf16.mxu0 %v5238_v42  ;;  %v417_v32 = vunpack.c.h.bf16 %v397_v20  ;;  %v5538_v33 = vrot.slane %v1313_v17, 4  ;;  %v5540_v36 = vrot.slane %v1048_v11, 5  ;;  %v5542_v37 = vrot.slane %v1059_v12, 4 }
  0x26   : > { %4725 = vmatmul.mubr.bf16.vlgmr.msra.gmra.mrb[0].mxu1 %v4382_v59  ;;  %v5546_v39 = vrot.slane %v1062_v19, 5  ;;  %v5550_v40 = vpack.c.bf16 %v5491_v56, %v5491_v56  ;;  %v5559_v43 = vsel %vm334_vm11, %v316_v16, %v352_v30  ;;  %v1335_v45 = vshrl.u32 %v4409_v26, 16  ;;  %v5249_v16 = vld [vmem:[%s6646_s4 + $0x30] sm:$0xff]  }
  0x27   : > { %4917 = vmatmul.mubr.bf16.vlgmr.msra.gmra.mrb[0].mxu0 %v4462_v60  ;;  %4733 = vmatpush3.bf16.msra.mxu1 %v5237_v38  ;;  %v4411_v38 = vpack.c.bf16 %v5489_v55, %v5489_v55  ;;  %vm433_vm12 = vcmp.gt.f32.partialorder %v415_v31, 0.0  ;;  %vm435_vm13 = vcmp.gt.f32.partialorder %v417_v32, 0.0  ;;  %v451_v49 = vmul.f32 0.2, %v415_v31  ;;  %v5250_v19 = vld [vmem:[%s6646_s4 + $0x270] sm:$0xff]  }
  0x28   : > { %4925 = vmatpush3.bf16.msra.mxu0 %v5238_v42  ;;  %4734 = vmatprep.subr.bf16.mxu1 %v5239_v57  ;;  %v5556_v42 = vsel %vm332_vm10, %v314_v15, %v350_v28  ;;  %v453_v53 = vmul.f32 0.2, %v417_v32  ;;  %v318_v54 = vunpack.c.l.bf16 %v300_v44  ;;  %v1338_v58 = vshll.u32 %v4409_v26, 16  ;;  %v5251_v28 = vld [vmem:[%s6646_s4 + $0x38] sm:$0xff]  }
  0x29   : > { %4926 = vmatprep.subr.bf16.mxu0 %v5240_v61  ;;  %4728 = vmatprep.mubr.bf16.mxu1 %v4383_v27  ;;  %v4463_v47 = vpack.c.bf16 %v5559_v43, %v5556_v42  ;;  %v1349_v59 = vshrl.u32 %v4411_v38, 16  ;;  %v1352_v60 = vshll.u32 %v4411_v38, 16  ;;  %v4413_v62 = vpack.c.bf16 %v5528_v23, %v5528_v23 }
  0x2a   : > { %v5577_v63 = vsel %vm433_vm12, %v415_v31, %v451_v49  ;;  %v5580_v0 = vsel %vm435_vm13, %v417_v32, %v453_v53  ;;  %v5583_v2 = vrot.slane %v1335_v45, 4  ;;  %v1076_v4 = vshll.u32 %v5550_v40, 16  ;;  %v5252_v32 = vld [vmem:[%s6646_s4 + $0x278] sm:$0xff]  }
  0x2b   : > { %4735 = vmatpush3.bf16.msra.mxu1 %v5239_v57  ;;  %v320_v57 = vunpack.c.h.bf16 %v300_v44  ;;  %4920 = vmatprep.mubr.bf16.mxu0 %v4463_v47  ;;  %vm336_vm14 = vcmp.gt.f32.partialorder %v318_v54, 0.0  ;;  %v4384_v8 = vpack.c.bf16 %v5580_v0, %v5577_v63  ;;  %v304_v11 = vunpack.c.l.bf16 %v286_v1 }
  0x2c   : > { %4927 = vmatpush3.bf16.msra.mxu0 %v5240_v61  ;;  %4736 = vmatprep.subr.bf16.mxu1 %v5241_v5  ;;  %v1073_v61 = vshrl.u32 %v5550_v40, 16  ;;  %v4465_v12 = vpack.c.bf16 %v5485_v52, %v5457_v24  ;;  %v5592_v13 = vrot.slane %v1338_v58, 5  ;;  %v5594_v14 = vrot.slane %v1349_v59, 4  ;;  %v5253_v58 = vld [vmem:[%s6646_s4 + $0x80] sm:$0xff]  }
  0x2d   : > { %4928 = vmatprep.subr.bf16.mxu0 %v5242_v9  ;;  %vm338_vm15 = vcmp.gt.f32.partialorder %v320_v57, 0.0  ;;  %v356_v10 = vmul.f32 0.2, %v320_v57  ;;  %v1363_v15 = vshrl.u32 %v4413_v62, 16  ;;  %v4399_v17 = vpack.c.bf16 %v5556_v42, %v5556_v42 }
  0x2e   : > { %4729 = vmatmul.mubr.bf16.gmra.mrb[4].mxu1 %v4384_v8  ;;  %vm322_vm0 = vcmp.gt.f32.partialorder %v304_v11, 0.0  ;;  %v340_v20 = vmul.f32 0.2, %v304_v11  ;;  %v4401_v27 = vpack.c.bf16 %v5559_v43, %v5559_v43  ;;  %v5619_v31 = vrot.slane %v1073_v61, 4 }
  0x2f   : > { %4737 = vmatpush3.bf16.msra.mxu1 %v5241_v5  ;;  %v4415_v5 = vpack.c.bf16 %v5530_v25, %v5530_v25  ;;  %v5608_v52 = vsel %vm338_vm15, %v320_v57, %v356_v10  ;;  %v5624_v40 = vrot.slane %v1076_v4, 5  ;;  %v1087_v45 = vshrl.u32 %v4399_v17, 16  ;;  %v401_v10 = vld [vmem:[%s5434_s20 + $0x40] sm:$0xf] }
  0x30   : > { %4929 = vmatpush3.bf16.msra.mxu0 %v5242_v9  ;;  %4738 = vmatprep.subr.bf16.mxu1 %v5243_v21  ;;  %v354_v9 = vmul.f32 0.2, %v318_v54  ;;  %v358_v38 = vsel %vm322_vm0, %v304_v11, %v340_v20  ;;  %v1101_v47 = vshrl.u32 %v4401_v27, 16  ;;  %v5635_v57 = vpack.c.bf16 %v5577_v63, %v5577_v63  ;;  %v287_v20 = vld [vmem:[%s5440_s23 + $0x4] sm:$0x1] }
  0x31   : > { %4930 = vmatprep.subr.bf16.mxu0 %v5244_v22  ;;  %v1377_v26 = vshrl.u32 %v4415_v5, 16  ;;  %v1380_v44 = vshll.u32 %v4415_v5, 16  ;;  %v4385_v49 = vpack.c.bf16 %v5469_v34, %v358_v38  ;;  %v5254_v34 = vld [vmem:[%s6646_s4 + $0x280] sm:$0xff]   ;;  %v4386_v59 = vpack.c.bf16 %v5483_v48, %v5471_v35 }
  0x32   : > { %v5605_v24 = vsel %vm336_vm14, %v318_v54, %v354_v9  ;;  %v1104_v54 = vshll.u32 %v4401_v27, 16  ;;  %v1051_v1 = vor.u32 %v5540_v36, %v5536_v29  ;;  %v5651_v5 = vrot.slane %v1087_v45, 4  ;;  %v289_v27 = vld [vmem:[%s5440_s23 + $0xc] sm:$0x1] }
  0x33   : > { %4739 = vmatpush3.bf16.msra.mxu1 %v5243_v21  ;;  %v5610_v21 = vrot.slane %v1352_v60, 5  ;;  %v4464_v30 = vpack.c.bf16 %v5608_v52, %v5605_v24  ;;  %v5631_v53 = vrot.slane %v1377_v26, 4  ;;  %v5649_v4 = vrot.slane %v1380_v44, 5  ;;  %4748 = vmatprep.mubr.bf16.mxu1 %v4385_v49  ;;  %v5263_v29 = vld [vmem:[%s6646_s4 + $0xa8] sm:$0xff]  }
  0x34   : > { %4931 = vmatpush3.bf16.msra.mxu0 %v5244_v22  ;;  %4740 = vmatprep.subr.bf16.mxu1 %v5245_v41  ;;  %v1366_v22 = vshll.u32 %v4413_v62, 16  ;;  %v1037_v62 = vor.u32 %v5519_v18, %v5513_v7  ;;  %v4466_v8 = vpack.c.bf16 %v5528_v23, %v5489_v55  ;;  %v5657_v48 = vrot.slane %v1101_v47, 4  ;;  %v5255_v7 = vld [vmem:[%s6646_s4 + $0x88] sm:$0xff]  }
  0x35   : > { %4932 = vmatprep.subr.bf16.mxu0 %v5246_v46  ;;  %4921 = vmatmul.mubr.bf16.gmra.mrb[4].mxu0 %v4464_v30  ;;  %v5661_v9 = vpack.c.bf16 %v5580_v0, %v5580_v0  ;;  %v5256_v18 = vld [vmem:[%s6646_s4 + $0x288] sm:$0xff]   ;;  %v5670_v11 = vrot.slane %v1104_v54, 5  ;;  %v1391_v55 = vshrl.u32 %v5635_v57, 16  ;;  %v4387_v23 = vpack.c.bf16 %v5556_v42, %v5491_v56  ;;  %v5257_v30 = vld [vmem:[%s6646_s4 + $0x90] sm:$0xff]   ;;  %v293_v54 = vld [vmem:[%s5440_s23 + $0x1c] sm:$0x1] }
  0x36   : > { %4940 = vmatprep.mubr.bf16.mxu0 %v4465_v12  ;;  %v419_v12 = vunpack.c.l.bf16 %v401_v10  ;;  %v5687_v42 = vpack.c.bf16 %v5608_v52, %v5608_v52  ;;  %vm1013_vm2 = vsmask.f32 3328  ;;  %v4388_v47 = vpack.c.bf16 %v5605_v24, %v5559_v43 }
  0x37   : > { %4741 = vmatpush3.bf16.msra.mxu1 %v5245_v41  ;;  %v5626_v41 = vrot.slane %v1363_v15, 4  ;;  %v5677_v15 = vpack.c.bf16 %v5605_v24, %v5605_v24  ;;  %v1405_v56 = vshrl.u32 %v5661_v9, 16  ;;  %vm1014_vm5 = vsmask.f32 7440 }
  0x38   : > { %4933 = vmatpush3.bf16.msra.mxu0 %v5246_v46  ;;  %4742 = vmatprep.subr.bf16.mxu1 %v5247_v50  ;;  %v1090_v46 = vshll.u32 %v4399_v17, 16  ;;  %vm437_vm1 = vcmp.gt.f32.partialorder %v419_v12, 0.0  ;;  %v455_v26 = vmul.f32 0.2, %v419_v12  ;;  %v311_v10 = vunpack.c.l.bf16 %v293_v54  ;;  %vm5717_vm6 = vmor %vm1013_vm2, %vm1014_vm5 }
  0x39   : > { %4934 = vmatprep.subr.bf16.mxu0 %v5248_v51  ;;  %v1115_v44 = vshrl.u32 %v5677_v15, 16 }
  0x3a   : > { %v5655_v35 = vrot.slane %v1090_v46, 5  ;;  %vm329_vm8 = vcmp.gt.f32.partialorder %v311_v10, 0.0 }
  0x3b   : > { %4743 = vmatpush3.bf16.msra.mxu1 %v5247_v50  ;;  %v4389_v50 = vpack.c.bf16 %v358_v38, %v358_v38  ;;  %v1038_v38 = vrot.slane %v1037_v62, 4 }
  0x3c   : > { %4935 = vmatpush3.bf16.msra.mxu0 %v5248_v51  ;;  %4744 = vmatprep.subr.bf16.mxu1 %v5249_v16  ;;  %v5629_v51 = vrot.slane %v1366_v22, 5  ;;  %v1394_v22 = vshll.u32 %v5635_v57, 16  ;;  %v5275_v57 = vld [vmem:[%s6646_s4 + $0xd8] sm:$0xff]  }
  0x3d   : > { %4936 = vmatprep.subr.bf16.mxu0 %v5250_v19  ;;  %v1017_v60 = vshrl.u32 %v4389_v50, 16  ;;  %v1020_v61 = vshll.u32 %v4389_v50, 16  ;;  %v291_v50 = vld [vmem:[%s5440_s23 + $0x14] sm:$0x1] }
  0x3f   : > { %4745 = vmatpush3.bf16.msra.mxu1 %v5249_v16  ;;  %v1019_v16 = vrot.slane %v1017_v60, 4  ;;  %v1022_v17 = vrot.slane %v1020_v61, 5  ;;  %v5260_v60 = vld [vmem:[%s6646_s4 + $0x298] sm:$0xff]  }
  0x40   : > { %4937 = vmatpush3.bf16.msra.mxu0 %v5250_v19  ;;  %4746 = vmatprep.subr.bf16.mxu1 %v5251_v28  ;;  %v4467_v19 = vpack.c.bf16 %v5577_v63, %v5530_v25  ;;  %v5258_v25 = vld [vmem:[%s6646_s4 + $0x290] sm:$0xff]   ;;  %v307_v63 = vunpack.c.l.bf16 %v289_v27 }
  0x41   : > { %4938 = vmatprep.subr.bf16.mxu0 %v5252_v32  ;;  %v1023_v46 = vor.u32 %v1022_v17, %v1019_v16  ;;  %v2776_v16 = vshrl.u32 %v5687_v42, 16 }
  0x42   : > { %vm325_vm4 = vcmp.gt.f32.partialorder %v307_v63, 0.0  ;;  %v343_v45 = vmul.f32 0.2, %v307_v63 }
  0x43   : > { %4747 = vmatpush3.bf16.msra.mxu1 %v5251_v28  ;;  %v305_v28 = vunpack.c.l.bf16 %v287_v20  ;;  %v1024_v17 = vrot.slane %v1023_v46, 4  ;;  %v2779_v20 = vshll.u32 %v5687_v42, 16  ;;  %v1079_v42 = vor.u32 %v5624_v40, %v5619_v31 }
  0x44   : > { %4939 = vmatpush3.bf16.msra.mxu0 %v5252_v32  ;;  %4756 = vmatprep.subr.bf16.mxu1 %v5253_v58  ;;  %v5695_v32 = vsel %vm437_vm1, %v419_v12, %v455_v26  ;;  %v361_v62 = vsel %vm325_vm4, %v307_v63, %v343_v45  ;;  %v1118_v12 = vshll.u32 %v5677_v15, 16  ;;  %v5262_v15 = vld [vmem:[%s6646_s4 + $0x2a0] sm:$0xff]   ;;  %v1052_v45 = vrot.slane %v1051_v1, 4 }
  0x45   : > { %4948 = vmatprep.subr.bf16.mxu0 %v5254_v34  ;;  %vm323_vm3 = vcmp.gt.f32.partialorder %v305_v28, 0.0  ;;  %v341_v52 = vmul.f32 0.2, %v305_v28  ;;  %v4468_v61 = vpack.c.bf16 %v5695_v32, %v5580_v0  ;;  %v4392_v24 = vpack.c.bf16 %v361_v62, %v361_v62  ;;  %v5341_v0 = vld [vmem:[%s6646_s4 + $0x1e0] sm:$0xff]  }
  0x46   : > { %4749 = vmatmul.mubr.bf16.vlgmr.msra.gmra.mrb[0].mxu1 %v4386_v59  ;;  %v5259_v59 = vld [vmem:[%s6646_s4 + $0x98] sm:$0xff]   ;;  %v1120_v54 = vrot.slane %v1118_v12, 5  ;;  %v5265_v12 = vld [vmem:[%s6646_s4 + $0xb0] sm:$0xff]  }
  0x47   : > { %4941 = vmatmul.mubr.bf16.vlgmr.msra.gmra.mrb[0].mxu0 %v4466_v8  ;;  %4757 = vmatpush3.bf16.msra.mxu1 %v5253_v58  ;;  %v359_v49 = vsel %vm323_vm3, %v305_v28, %v341_v52  ;;  %v295_v58 = vld [vmem:[%s5440_s23 + $0x24] sm:$0x1]  ;;  %v309_v8 = vunpack.c.l.bf16 %v291_v50  ;;  %v347_v28 = vmul.f32 0.2, %v311_v10  ;;  %v1117_v50 = vrot.slane %v1115_v44, 4  ;;  %v5264_v44 = vld [vmem:[%s6646_s4 + $0x2a8] sm:$0xff]  }
  0x48   : > { %4949 = vmatpush3.bf16.msra.mxu0 %v5254_v34  ;;  %4758 = vmatprep.subr.bf16.mxu1 %v5255_v7  ;;  %v1065_v34 = vor.u32 %v5546_v39, %v5542_v37  ;;  %v4390_v43 = vpack.c.bf16 %v359_v49, %v359_v49  ;;  %v1369_v37 = vor.u32 %v5629_v51, %v5626_v41 }
  0x49   : > { %4950 = vmatprep.subr.bf16.mxu0 %v5256_v18  ;;  %4752 = vmatprep.mubr.bf16.mxu1 %v4387_v23  ;;  %v313_v23 = vunpack.c.l.bf16 %v295_v58  ;;  %vm327_vm7 = vcmp.gt.f32.partialorder %v309_v8, 0.0  ;;  %v345_v27 = vmul.f32 0.2, %v309_v8  ;;  %v365_v49 = vsel %vm329_vm8, %v311_v10, %v347_v28 }
  0x4a   : > { %4944 = vmatprep.mubr.bf16.mxu0 %v4467_v19  ;;  %v1026_v19 = vshll.u32 %v4390_v43, 16  ;;  %v5741_v58 = vrot.slane %v2776_v16, 4  ;;  %v1408_v10 = vshll.u32 %v5661_v9, 16  ;;  %v5266_v16 = vld [vmem:[%s6646_s4 + $0x2b0] sm:$0xff]   ;;  %v5277_v9 = vld [vmem:[%s6646_s4 + $0xe0] sm:$0xff]  }
  0x4b   : > { %4759 = vmatpush3.bf16.msra.mxu1 %v5255_v7  ;;  %v1040_v7 = vshll.u32 %v4392_v24, 16  ;;  %vm331_vm9 = vcmp.gt.f32.partialorder %v313_v23, 0.0  ;;  %v349_v52 = vmul.f32 0.2, %v313_v23 }
  0x4c   : > { %4951 = vmatpush3.bf16.msra.mxu0 %v5256_v18  ;;  %4760 = vmatprep.subr.bf16.mxu1 %v5257_v30  ;;  %v5261_v18 = vld [vmem:[%s6646_s4 + $0xa0] sm:$0xff]   ;;  %v1028_v26 = vrot.slane %v1026_v19, 5 }
  0x4d   : > { %4952 = vmatprep.subr.bf16.mxu0 %v5258_v25  ;;  %v1042_v63 = vrot.slane %v1040_v7, 5  ;;  %v367_v40 = vsel %vm331_vm9, %v313_v23, %v349_v52  ;;  %v1355_v23 = vor.u32 %v5610_v21, %v5594_v14  ;;  %v4471_v14 = vpack.c.bf16 %v5695_v32, %v5695_v32 }
  0x4e   : > { %4753 = vmatmul.mubr.bf16.gmra.mrb[4].mxu1 %v4388_v47  ;;  %v1029_v46 = vsel %vm5717_vm6, %v1024_v17, %v1028_v26  ;;  %v363_v47 = vsel %vm327_vm7, %v309_v8, %v345_v27  ;;  %v4398_v1 = vpack.c.bf16 %v367_v40, %v367_v40  ;;  %v1341_v8 = vor.u32 %v5592_v13, %v5583_v2  ;;  %v5278_v2 = vld [vmem:[%s6646_s4 + $0x2e0] sm:$0xff]  }
  0x4f   : > { %4945 = vmatmul.mubr.bf16.gmra.mrb[4].mxu0 %v4468_v61  ;;  %4761 = vmatpush3.bf16.msra.mxu1 %v5257_v30  ;;  %v1043_v31 = vsel %vm5717_vm6, %v1038_v38, %v1042_v63  ;;  %v4394_v30 = vpack.c.bf16 %v363_v47, %v363_v47  ;;  %v5743_v61 = vrot.slane %v2779_v20, 5  ;;  %v1327_v38 = vor.u32 %v5511_v6, %v5506_v3  ;;  %v297_v20 = vld [vmem:[%s5440_s23 + $0x2c] sm:$0x1]  ;;  %v301_v63 = vld [vmem:[%s5440_s23 + $0x3c] sm:$0x1] }
  0x50   : > { %4953 = vmatpush3.bf16.msra.mxu0 %v5258_v25  ;;  %4762 = vmatprep.subr.bf16.mxu1 %v5259_v59  ;;  %v4396_v25 = vpack.c.bf16 %v365_v49, %v365_v49  ;;  %v3938_v36 = vcombine.low %v1029_v46, %v1043_v31  ;;  %v1082_v24 = vshll.u32 %v4398_v1, 16  ;;  %v1066_v17 = vrot.slane %v1065_v34, 4  ;;  %v303_v47 = vld [vmem:[%s5440_s23 + $0x44] sm:$0x1]  ;;  %v5267_v49 = vld [vmem:[%s6646_s4 + $0xb8] sm:$0xff]  }
  0x51   : > { %4954 = vmatprep.subr.bf16.mxu0 %v5260_v60  ;;  %v1054_v62 = vshll.u32 %v4394_v30, 16  ;;  %v1080_v26 = vrot.slane %v1079_v42, 4  ;;  %v315_v28 = vunpack.c.l.bf16 %v297_v20  ;;  %v321_v30 = vunpack.c.l.bf16 %v303_v47 }
  0x52   : > { %v1068_v43 = vshll.u32 %v4396_v25, 16  ;;  %4772 = vmatprep.mubr.bf16.mxu1 %v3938_v36  ;;  %v1084_v27 = vrot.slane %v1082_v24, 5  ;;  %v5268_v25 = vld [vmem:[%s6646_s4 + $0x2b8] sm:$0xff]   ;;  %v5847_v3 = vrot.slane %v1394_v22, 5 }
  0x53   : > { %4763 = vmatpush3.bf16.msra.mxu1 %v5259_v59  ;;  %v1056_v59 = vrot.slane %v1054_v62, 5  ;;  %vm333_vm10 = vcmp.gt.f32.partialorder %v315_v28, 0.0  ;;  %v351_v34 = vmul.f32 0.2, %v315_v28  ;;  %vm339_vm13 = vcmp.gt.f32.partialorder %v321_v30, 0.0  ;;  %v5270_v62 = vld [vmem:[%s6646_s4 + $0x2c0] sm:$0xff]  }
  0x54   : > { %4955 = vmatpush3.bf16.msra.mxu0 %v5260_v60  ;;  %4764 = vmatprep.subr.bf16.mxu1 %v5261_v18  ;;  %v1093_v60 = vor.u32 %v5655_v35, %v5651_v5  ;;  %v1070_v19 = vrot.slane %v1068_v43, 5  ;;  %v1107_v5 = vor.u32 %v5670_v11, %v5657_v48  ;;  %v1121_v35 = vor.u32 %v1120_v54, %v1117_v50  ;;  %v299_v48 = vld [vmem:[%s5440_s23 + $0x34] sm:$0x1] }
  0x55   : > { %4956 = vmatprep.subr.bf16.mxu0 %v5262_v15  ;;  %v5771_v7 = vsel %vm5717_vm6, %v1052_v45, %v1056_v59  ;;  %v2782_v11 = vor.u32 %v5743_v61, %v5741_v58  ;;  %v319_v45 = vunpack.c.l.bf16 %v301_v63  ;;  %v5797_v50 = vsel %vm5717_vm6, %v1080_v26, %v1084_v27  ;;  %v5269_v61 = vld [vmem:[%s6646_s4 + $0xc0] sm:$0xff]  }
  0x56   : > { %v4212_v39 = vcombine.low %v1043_v31, %v5771_v7  ;;  %v5782_v42 = vsel %vm5717_vm6, %v1066_v17, %v1070_v19  ;;  %v5784_v52 = vrot.slane %v1107_v5, 4  ;;  %v5786_v46 = vrot.slane %v1121_v35, 4  ;;  %v388_v17 = vld [vmem:[%s5434_s20 + $0xc] sm:$0x1] }
  0x57   : > { %4765 = vmatpush3.bf16.msra.mxu1 %v5261_v18  ;;  %v1094_v18 = vrot.slane %v1093_v60, 4  ;;  %v369_v31 = vsel %vm333_vm10, %v315_v28, %v351_v34  ;;  %vm337_vm12 = vcmp.gt.f32.partialorder %v319_v45, 0.0  ;;  %v3939_v36 = vcombine.low %v5771_v7, %v5782_v42  ;;  %v386_v60 = vld [vmem:[%s5434_s20 + $0x4] sm:$0x1]  ;;  %v390_v7 = vld [vmem:[%s5434_s20 + $0x14] sm:$0x1] }
  0x58   : > { %4957 = vmatpush3.bf16.msra.mxu0 %v5262_v15  ;;  %4766 = vmatprep.subr.bf16.mxu1 %v5263_v29  ;;  %v317_v15 = vunpack.c.l.bf16 %v299_v48  ;;  %v4400_v54 = vpack.c.bf16 %v369_v31, %v369_v31  ;;  %v357_v58 = vmul.f32 0.2, %v321_v30  ;;  %v2783_v59 = vrot.slane %v2782_v11, 4  ;;  %v392_v48 = vld [vmem:[%s5434_s20 + $0x1c] sm:$0x1] }
  0x59   : > { %4958 = vmatprep.subr.bf16.mxu0 %v5264_v44  ;;  %4964 = vmatprep.mubr.bf16.mxu0 %v4212_v39  ;;  %v404_v5 = vunpack.c.l.bf16 %v386_v60  ;;  %v406_v35 = vunpack.c.l.bf16 %v388_v17  ;;  %v4213_v26 = vcombine.low %v5782_v42, %v5797_v50  ;;  %v394_v11 = vld [vmem:[%s5434_s20 + $0x24] sm:$0x1]  ;;  %v5271_v42 = vld [vmem:[%s6646_s4 + $0xc8] sm:$0xff]   ;;  %v5273_v60 = vld [vmem:[%s6646_s4 + $0xd0] sm:$0xff]  }
  0x5a   : > { %vm335_vm11 = vcmp.gt.f32.partialorder %v317_v15, 0.0  ;;  %v353_v40 = vmul.f32 0.2, %v317_v15  ;;  %v1096_v43 = vshll.u32 %v4400_v54, 16  ;;  %v375_v20 = vsel %vm339_vm13, %v321_v30, %v357_v58  ;;  %v5272_v54 = vld [vmem:[%s6646_s4 + $0x2c8] sm:$0xff]  }
  0x5b   : > { %4767 = vmatpush3.bf16.msra.mxu1 %v5263_v29  ;;  %v355_v29 = vmul.f32 0.2, %v319_v45  ;;  %v4470_v39 = vpack.c.bf16 %v375_v20, %v375_v20  ;;  %vm422_vm14 = vcmp.gt.f32.partialorder %v404_v5, 0.0  ;;  %vm424_vm15 = vcmp.gt.f32.partialorder %v406_v35, 0.0 }
  0x5c   : > { %4959 = vmatpush3.bf16.msra.mxu0 %v5264_v44  ;;  %4768 = vmatprep.subr.bf16.mxu1 %v5265_v12  ;;  %v371_v1 = vsel %vm335_vm11, %v317_v15, %v353_v40  ;;  %v1098_v27 = vrot.slane %v1096_v43, 5  ;;  %v408_v40 = vunpack.c.l.bf16 %v390_v7  ;;  %v410_v30 = vunpack.c.l.bf16 %v392_v48 }
  0x5d   : > { %4960 = vmatprep.subr.bf16.mxu0 %v5266_v16  ;;  %v4402_v44 = vpack.c.bf16 %v371_v1, %v371_v1  ;;  %v373_v24 = vsel %vm337_vm12, %v319_v45, %v355_v29  ;;  %v2785_v63 = vshll.u32 %v4470_v39, 16  ;;  %v442_v45 = vmul.f32 0.2, %v406_v35 }
  0x5e   : > { %v4404_v19 = vpack.c.bf16 %v373_v24, %v373_v24  ;;  %v5829_v24 = vrot.slane %v1391_v55, 4  ;;  %v5274_v55 = vld [vmem:[%s6646_s4 + $0x2d0] sm:$0xff]   ;;  %vm426_vm0 = vcmp.gt.f32.partialorder %v408_v40, 0.0  ;;  %vm428_vm1 = vcmp.gt.f32.partialorder %v410_v30, 0.0 }
  0x5f   : > { %4769 = vmatpush3.bf16.msra.mxu1 %v5265_v12  ;;  %v1110_v28 = vshll.u32 %v4402_v44, 16  ;;  %v440_v12 = vmul.f32 0.2, %v404_v5  ;;  %v412_v44 = vunpack.c.l.bf16 %v394_v11  ;;  %v444_v20 = vmul.f32 0.2, %v408_v40 }
  0x60   : > { %4961 = vmatpush3.bf16.msra.mxu0 %v5266_v16  ;;  %4770 = vmatprep.subr.bf16.mxu1 %v5267_v49  ;;  %v1124_v34 = vshll.u32 %v4404_v19, 16  ;;  %v1099_v16 = vsel %vm5717_vm6, %v1094_v18, %v1098_v27 }
  0x61   : > { %4962 = vmatprep.subr.bf16.mxu0 %v5268_v25  ;;  %v1112_v15 = vrot.slane %v1110_v28, 5  ;;  %v458_v31 = vsel %vm422_vm14, %v404_v5, %v440_v12  ;;  %v3940_v1 = vcombine.low %v5797_v50, %v1099_v16  ;;  %v1328_v50 = vrot.slane %v1327_v38, 4 }
  0x62   : > { %v1126_v47 = vrot.slane %v1124_v34, 5  ;;  %v4406_v29 = vpack.c.bf16 %v458_v31, %v458_v31  ;;  %vm430_vm2 = vcmp.gt.f32.partialorder %v412_v44, 0.0  ;;  %v446_v5 = vmul.f32 0.2, %v410_v30  ;;  %v400_v31 = vld [vmem:[%s5434_s20 + $0x3c] sm:$0x1] }
  0x63   : > { %4771 = vmatpush3.bf16.msra.mxu1 %v5267_v49  ;;  %v1113_v18 = vsel %vm5717_vm6, %v5784_v52, %v1112_v15  ;;  %v2787_v49 = vrot.slane %v2785_v63, 5  ;;  %v5866_v28 = vrot.slane %v1408_v10, 5  ;;  %v1342_v34 = vrot.slane %v1341_v8, 4  ;;  %v396_v8 = vld [vmem:[%s5434_s20 + $0x2c] sm:$0x1] }
  0x64   : > { %4963 = vmatpush3.bf16.msra.mxu0 %v5268_v25  ;;  %4780 = vmatprep.subr.bf16.mxu1 %v5269_v61  ;;  %v460_v25 = vsel %vm424_vm15, %v406_v35, %v442_v45  ;;  %v4214_v58 = vcombine.low %v1099_v16, %v1113_v18  ;;  %v1127_v52 = vsel %vm5717_vm6, %v5786_v46, %v1126_v47  ;;  %v1316_v17 = vshll.u32 %v4406_v29, 16  ;;  %v398_v45 = vld [vmem:[%s5434_s20 + $0x34] sm:$0x1] }
  0x65   : > { %4972 = vmatprep.subr.bf16.mxu0 %v5270_v62  ;;  %v4408_v43 = vpack.c.bf16 %v460_v25, %v460_v25  ;;  %v3941_v6 = vcombine.low %v1113_v18, %v1127_v52  ;;  %v462_v35 = vsel %vm426_vm0, %v408_v40, %v444_v20  ;;  %v464_v7 = vsel %vm428_vm1, %v410_v30, %v446_v5  ;;  %v402_v40 = vld [vmem:[%s5434_s20 + $0x44] sm:$0x1]  ;;  %v5280_v25 = vld [vmem:[%s6646_s4 + $0x2e8] sm:$0xff]  }
  0x66   : > { %4773 = vmatmul.mubr.bf16.vlgmr.msra.gmra.mrb[0].mxu1 %v3939_v36  ;;  %v2788_v36 = vsel %vm5717_vm6, %v2783_v59, %v2787_v49  ;;  %v1318_v46 = vrot.slane %v1316_v17, 5  ;;  %v4412_v48 = vpack.c.bf16 %v464_v7, %v464_v7  ;;  %v1356_v10 = vrot.slane %v1355_v23, 4  ;;  %v5279_v49 = vld [vmem:[%s6646_s4 + $0xe8] sm:$0xff]  }
  0x67   : > { %4965 = vmatmul.mubr.bf16.vlgmr.msra.gmra.mrb[0].mxu0 %v4213_v26  ;;  %4781 = vmatpush3.bf16.msra.mxu1 %v5269_v61  ;;  %v1330_v19 = vshll.u32 %v4408_v43, 16  ;;  %v448_v61 = vmul.f32 0.2, %v412_v44  ;;  %v5856_v26 = vrot.slane %v1405_v56, 4  ;;  %v5276_v56 = vld [vmem:[%s6646_s4 + $0x2d8] sm:$0xff]   ;;  %v1370_v15 = vrot.slane %v1369_v37, 4 }
  0x68   : > { %4973 = vmatpush3.bf16.msra.mxu0 %v5270_v62  ;;  %4782 = vmatprep.subr.bf16.mxu1 %v5271_v42  ;;  %v4215_v62 = vcombine.low %v1127_v52, %v2788_v36  ;;  %v1319_v59 = vsel %vm5717_vm6, %v5538_v33, %v1318_v46  ;;  %v4410_v33 = vpack.c.bf16 %v462_v35, %v462_v35  ;;  %v1358_v16 = vshll.u32 %v4412_v48, 16  ;;  %v5282_v46 = vld [vmem:[%s6646_s4 + $0x2f0] sm:$0xff]  }
  0x69   : > { %4974 = vmatprep.subr.bf16.mxu0 %v5272_v54  ;;  %4776 = vmatprep.mubr.bf16.mxu1 %v3940_v1  ;;  %v1332_v38 = vrot.slane %v1330_v19, 5  ;;  %v466_v27 = vsel %vm430_vm2, %v412_v44, %v448_v61  ;;  %v414_v51 = vunpack.c.l.bf16 %v396_v8  ;;  %v1383_v37 = vor.u32 %v5649_v4, %v5631_v53  ;;  %v5281_v19 = vld [vmem:[%s6646_s4 + $0xf0] sm:$0xff]  }
  0x6a   : > { %4968 = vmatprep.mubr.bf16.mxu0 %v4214_v58  ;;  %v4414_v11 = vpack.c.bf16 %v466_v27, %v466_v27  ;;  %v1344_v12 = vshll.u32 %v4410_v33, 16  ;;  %v1360_v21 = vrot.slane %v1358_v16, 5  ;;  %v2940_v18 = vshrl.u32 %v4471_v14, 16 }
  0x6b   : > { %4783 = vmatpush3.bf16.msra.mxu1 %v5271_v42  ;;  %v1333_v22 = vsel %vm5717_vm6, %v1328_v50, %v1332_v38  ;;  %vm432_vm3 = vcmp.gt.f32.partialorder %v414_v51, 0.0  ;;  %v450_v4 = vmul.f32 0.2, %v414_v51  ;;  %v1397_v29 = vor.u32 %v5847_v3, %v5829_v24  ;;  %v484_v50 = vld [vmem:[%s5915_s16] ss:$8 sps:$4 sm:$0xff]  }
  0x6c   : > { %4975 = vmatpush3.bf16.msra.mxu0 %v5272_v54  ;;  %4784 = vmatprep.subr.bf16.mxu1 %v5273_v60  ;;  %v3982_v39 = vcombine.low %v1319_v59, %v1333_v22  ;;  %v1372_v63 = vshll.u32 %v4414_v11, 16  ;;  %v1346_v13 = vrot.slane %v1344_v12, 5  ;;  %v5898_v42 = vsel %vm5717_vm6, %v1356_v10, %v1360_v21  ;;  %v5286_v21 = vld [vmem:[%s6646_s4 + $0x300] sm:$0xff]  }
  0x6d   : > { %4976 = vmatprep.subr.bf16.mxu0 %v5274_v55  ;;  %v416_v54 = vunpack.c.l.bf16 %v398_v45  ;;  %v418_v1 = vunpack.c.l.bf16 %v400_v31  ;;  %v420_v58 = vunpack.c.l.bf16 %v402_v40  ;;  %v2943_v43 = vshll.u32 %v4471_v14, 16 }
  0x6e   : > { %4777 = vmatmul.mubr.bf16.gmra.mrb[4].mxu1 %v3941_v6  ;;  %v1374_v41 = vrot.slane %v1372_v63, 5  ;;  %v5891_v23 = vsel %vm5717_vm6, %v1342_v34, %v1346_v13  ;;  %v468_v44 = vsel %vm432_vm3, %v414_v51, %v450_v4  ;;  %v1411_v36 = vor.u32 %v5866_v28, %v5856_v26  ;;  %v5285_v63 = vld [vmem:[%s6646_s4 + $0x100] sm:$0xff]   ;;  %v5287_v51 = vld [vmem:[%s6646_s4 + $0x108] sm:$0xff]  }
  0x6f   : > { %4969 = vmatmul.mubr.bf16.gmra.mrb[4].mxu0 %v4215_v62  ;;  %4785 = vmatpush3.bf16.msra.mxu1 %v5273_v60  ;;  %v4242_v47 = vcombine.low %v1333_v22, %v5891_v23  ;;  %v3983_v30 = vcombine.low %v5891_v23, %v5898_v42  ;;  %vm434_vm4 = vcmp.gt.f32.partialorder %v416_v54, 0.0  ;;  %v452_v60 = vmul.f32 0.2, %v416_v54  ;;  %v5283_v22 = vld [vmem:[%s6646_s4 + $0xf8] sm:$0xff]  }
  0x70   : > { %4977 = vmatpush3.bf16.msra.mxu0 %v5274_v55  ;;  %4786 = vmatprep.subr.bf16.mxu1 %v5275_v57  ;;  %v5902_v32 = vsel %vm5717_vm6, %v1370_v15, %v1374_v41  ;;  %v4416_v52 = vpack.c.bf16 %v468_v44, %v468_v44  ;;  %vm436_vm5 = vcmp.gt.f32.partialorder %v418_v1, 0.0  ;;  %v454_v17 = vmul.f32 0.2, %v418_v1  ;;  %v496_v44 = vld [vmem:[%s5915_s16 + $0x30] ss:$8 sps:$4 sm:$0xff]  }
  0x71   : > { %4978 = vmatprep.subr.bf16.mxu0 %v5276_v56  ;;  %4796 = vmatprep.mubr.bf16.mxu1 %v3982_v39  ;;  %v4243_v53 = vcombine.low %v5898_v42, %v5902_v32  ;;  %vm438_vm7 = vcmp.gt.f32.partialorder %v420_v58, 0.0  ;;  %v470_v55 = vsel %vm434_vm4, %v416_v54, %v452_v60  ;;  %v456_v24 = vmul.f32 0.2, %v420_v58  ;;  %v5284_v39 = vld [vmem:[%s6646_s4 + $0x2f8] sm:$0xff]   ;;  %v5288_v54 = vld [vmem:[%s6646_s4 + $0x308] sm:$0xff]  }
  0x72   : > { %4988 = vmatprep.mubr.bf16.mxu0 %v4242_v47  ;;  %v1384_v20 = vrot.slane %v1383_v37, 4  ;;  %v1386_v5 = vshll.u32 %v4416_v52, 16  ;;  %v4418_v3 = vpack.c.bf16 %v470_v55, %v470_v55  ;;  %v472_v6 = vsel %vm436_vm5, %v418_v1, %v454_v17  ;;  %v492_v42 = vld [vmem:[%s5915_s16 + $0x20] ss:$8 sps:$4 sm:$0xff]   ;;  %v5291_v17 = vld [vmem:[%s6646_s4 + $0x118] sm:$0xff]  }
  0x73   : > { %4787 = vmatpush3.bf16.msra.mxu1 %v5275_v57  ;;  %v2942_v38 = vrot.slane %v2940_v18, 4  ;;  %v4420_v61 = vpack.c.bf16 %v472_v6, %v472_v6  ;;  %v474_v62 = vsel %vm438_vm7, %v420_v58, %v456_v24  ;;  %v502_v59 = vunpack.c.l.bf16 %v484_v50  ;;  %v5292_v24 = vld [vmem:[%s6646_s4 + $0x318] sm:$0xff]  }
  0x74   : > { %4979 = vmatpush3.bf16.msra.mxu0 %v5276_v56  ;;  %4788 = vmatprep.subr.bf16.mxu1 %v5277_v9  ;;  %v2945_v35 = vrot.slane %v2943_v43, 5  ;;  %v1388_v7 = vrot.slane %v1386_v5, 5  ;;  %v1398_v26 = vrot.slane %v1397_v29, 4  ;;  %v1400_v57 = vshll.u32 %v4418_v3, 16  ;;  %v5290_v29 = vld [vmem:[%s6646_s4 + $0x310] sm:$0xff]  }
  0x75   : > { %4980 = vmatprep.subr.bf16.mxu0 %v5278_v2  ;;  %v1412_v27 = vrot.slane %v1411_v36, 4  ;;  %v1414_v33 = vshll.u32 %v4420_v61, 16  ;;  %v4472_v28 = vpack.c.bf16 %v474_v62, %v474_v62  ;;  %v504_v56 = vunpack.c.h.bf16 %v484_v50  ;;  %v500_v3 = vld [vmem:[%s5915_s16 + $0x40] sm:$0xf] }
  0x76   : > { %v1389_v48 = vsel %vm5717_vm6, %v1384_v20, %v1388_v7  ;;  %v1402_v11 = vrot.slane %v1400_v57, 5  ;;  %vm520_vm8 = vcmp.gt.f32.partialorder %v502_v59, 0.0  ;;  %v2946_v16 = vor.u32 %v2945_v35, %v2942_v38  ;;  %v5293_v62 = vld [vmem:[%s6646_s4 + $0x120] sm:$0xff]  }
  0x77   : > { %4789 = vmatpush3.bf16.msra.mxu1 %v5277_v9  ;;  %v3984_v34 = vcombine.low %v5902_v32, %v1389_v48  ;;  %v1416_v12 = vrot.slane %v1414_v33, 5  ;;  %v488_v9 = vld [vmem:[%s5915_s16 + $0x10] ss:$8 sps:$4 sm:$0xff]   ;;  %v538_v15 = vmul.f32 0.2, %v502_v59  ;;  %v2949_v8 = vshll.u32 %v4472_v28, 16 }
  0x78   : > { %4981 = vmatpush3.bf16.msra.mxu0 %v5278_v2  ;;  %4790 = vmatprep.subr.bf16.mxu1 %v5279_v49  ;;  %v5949_v10 = vsel %vm5717_vm6, %v1398_v26, %v1402_v11  ;;  %v540_v14 = vmul.f32 0.2, %v504_v56  ;;  %vm522_vm9 = vcmp.gt.f32.partialorder %v504_v56, 0.0  ;;  %v506_v45 = vunpack.c.l.bf16 %v488_v9  ;;  %v5294_v57 = vld [vmem:[%s6646_s4 + $0x320] sm:$0xff]  }
  0x79   : > { %4982 = vmatprep.subr.bf16.mxu0 %v5280_v25  ;;  %v4244_v2 = vcombine.low %v1389_v48, %v5949_v10  ;;  %v5957_v13 = vsel %vm5717_vm6, %v1412_v27, %v1416_v12  ;;  %v5968_v37 = vsel %vm520_vm8, %v502_v59, %v538_v15  ;;  %v2947_v47 = vrot.slane %v2946_v16, 4  ;;  %v5296_v16 = vld [vmem:[%s6646_s4 + $0x328] sm:$0xff]  }
  0x7a   : > { %v3985_v41 = vcombine.low %v5949_v10, %v5957_v13  ;;  %v2951_v31 = vrot.slane %v2949_v8, 5  ;;  %v5970_v40 = vsel %vm522_vm9, %v504_v56, %v540_v14  ;;  %v4429_v4 = vpack.c.bf16 %v5968_v37, %v5968_v37  ;;  %v583_v56 = vld [vmem:[%s6025_s6] ss:$8 sps:$4 sm:$0xff]  }
  0x7b   : > { %4791 = vmatpush3.bf16.msra.mxu1 %v5279_v49  ;;  %v4431_v18 = vpack.c.bf16 %v5970_v40, %v5970_v40  ;;  %v5289_v49 = vld [vmem:[%s6646_s4 + $0x110] sm:$0xff]   ;;  %vm524_vm10 = vcmp.gt.f32.partialorder %v506_v45, 0.0  ;;  %v5994_v58 = vunpack.c.h.bf16 %v488_v9  ;;  %v512_v43 = vunpack.c.h.bf16 %v492_v42  ;;  %v5295_v10 = vld [vmem:[%s6646_s4 + $0x128] sm:$0xff]  }
  0x7c   : > { %4983 = vmatpush3.bf16.msra.mxu0 %v5280_v25  ;;  %4792 = vmatprep.subr.bf16.mxu1 %v5281_v19  ;;  %v542_v25 = vmul.f32 0.2, %v506_v45  ;;  %v2952_v23 = vsel %vm5717_vm6, %v2947_v47, %v2951_v31  ;;  %v1924_v1 = vshll.u32 %v4429_v4, 16  ;;  %v4421_v50 = vpack.c.bf16 %v5970_v40, %v5968_v37  ;;  %v5297_v37 = vld [vmem:[%s6646_s4 + $0x130] sm:$0xff]  }
  0x7d   : > { %4984 = vmatprep.subr.bf16.mxu0 %v5282_v46  ;;  %v1935_v32 = vshrl.u32 %v4431_v18, 16  ;;  %v4245_v60 = vcombine.low %v5957_v13, %v2952_v23  ;;  %v514_v36 = vunpack.c.l.bf16 %v496_v44  ;;  %v6012_v6 = vmul.f32 0.2, %v5994_v58 }
  0x7e   : > { %v5998_v52 = vsel %vm524_vm10, %v506_v45, %v542_v25  ;;  %vm530_vm11 = vcmp.gt.f32.partialorder %v512_v43, 0.0  ;;  %v516_v61 = vunpack.c.h.bf16 %v496_v44  ;;  %v6019_v59 = vunpack.c.l.bf16 %v492_v42  ;;  %v5298_v45 = vld [vmem:[%s6646_s4 + $0x330] sm:$0xff]  }
  0x7f   : > { %4793 = vmatpush3.bf16.msra.mxu1 %v5281_v19  ;;  %v1926_v19 = vrot.slane %v1924_v1, 5  ;;  %v4433_v5 = vpack.c.bf16 %v5998_v52, %v5998_v52  ;;  %v4473_v38 = vpack.c.bf16 %v5998_v52, %v5970_v40  ;;  %v548_v35 = vmul.f32 0.2, %v512_v43 }
  0x80   : > { %4985 = vmatpush3.bf16.msra.mxu0 %v5282_v46  ;;  %4794 = vmatprep.subr.bf16.mxu1 %v5283_v22  ;;  %v1937_v46 = vrot.slane %v1935_v32, 4  ;;  %v550_v7 = vmul.f32 0.2, %v514_v36  ;;  %v518_v26 = vunpack.c.l.bf16 %v500_v3  ;;  %vm526_vm12 = vcmp.gt.f32.partialorder %v5994_v58, 0.0 }
  0x81   : > { %4986 = vmatprep.subr.bf16.mxu0 %v5284_v39  ;;  %v1952_v27 = vshll.u32 %v4433_v5, 16  ;;  %vm532_vm13 = vcmp.gt.f32.partialorder %v514_v36, 0.0  ;;  %v552_v28 = vmul.f32 0.2, %v516_v61  ;;  %vm528_vm14 = vcmp.gt.f32.partialorder %v6019_v59, 0.0 }
  0x82   : > { %vm534_vm15 = vcmp.gt.f32.partialorder %v516_v61, 0.0  ;;  %v546_v11 = vmul.f32 0.2, %v6019_v59  ;;  %v6039_v12 = vsel %vm532_vm13, %v514_v36, %v550_v7  ;;  %v554_v9 = vmul.f32 0.2, %v518_v26 }
  0x83   : > { %4795 = vmatpush3.bf16.msra.mxu1 %v5283_v22  ;;  %v1949_v22 = vshrl.u32 %v4433_v5, 16  ;;  %v4441_v15 = vpack.c.bf16 %v6039_v12, %v6039_v12  ;;  %vm536_vm0 = vcmp.gt.f32.partialorder %v518_v26, 0.0  ;;  %v6054_v14 = vrot.slane %v1952_v27, 5 }
  0x84   : > { %4987 = vmatpush3.bf16.msra.mxu0 %v5284_v39  ;;  %4804 = vmatprep.subr.bf16.mxu1 %v5285_v63  ;;  %v6034_v39 = vsel %vm530_vm11, %v512_v43, %v548_v35  ;;  %v6067_v31 = vsel %vm536_vm0, %v518_v26, %v554_v9  ;;  %v562_v42 = vsel %vm526_vm12, %v5994_v58, %v6012_v6  ;;  %v5300_v43 = vld [vmem:[%s6646_s4 + $0x338] sm:$0xff]  }
  0x85   : > { %4996 = vmatprep.subr.bf16.mxu0 %v5286_v21  ;;  %v6052_v8 = vrot.slane %v1949_v22, 4  ;;  %v6083_v32 = vsel %vm528_vm14, %v6019_v59, %v546_v11  ;;  %v4422_v59 = vpack.c.bf16 %v562_v42, %v5998_v52  ;;  %v5304_v52 = vld [vmem:[%s6646_s4 + $0x348] sm:$0xff]  }
  0x86   : > { %4797 = vmatmul.mubr.bf16.vlgmr.msra.gmra.mrb[0].mxu1 %v3983_v30  ;;  %v1921_v30 = vshrl.u32 %v4429_v4, 16  ;;  %v4423_v9 = vpack.c.bf16 %v6034_v39, %v6083_v32 }
  0x87   : > { %4989 = vmatmul.mubr.bf16.vlgmr.msra.gmra.mrb[0].mxu0 %v4243_v53  ;;  %4805 = vmatpush3.bf16.msra.mxu1 %v5285_v63  ;;  %v1938_v53 = vshll.u32 %v4431_v18, 16  ;;  %v601_v63 = vunpack.c.l.bf16 %v583_v56  ;;  %v2005_v18 = vshrl.u32 %v4441_v15, 16 }
  0x88   : > { %4997 = vmatpush3.bf16.msra.mxu0 %v5286_v21  ;;  %4806 = vmatprep.subr.bf16.mxu1 %v5287_v51  ;;  %v1923_v55 = vrot.slane %v1921_v30, 4  ;;  %v6057_v21 = vsel %vm534_vm15, %v516_v61, %v552_v28  ;;  %v5299_v30 = vld [vmem:[%s6646_s4 + $0x138] sm:$0xff]   ;;  %v5303_v28 = vld [vmem:[%s6646_s4 + $0x148] sm:$0xff]  }
  0x89   : > { %4998 = vmatprep.subr.bf16.mxu0 %v5288_v54  ;;  %4800 = vmatprep.mubr.bf16.mxu1 %v3984_v34  ;;  %v1940_v20 = vrot.slane %v1938_v53, 5  ;;  %v4439_v34 = vpack.c.bf16 %v6034_v39, %v6034_v39  ;;  %v637_v25 = vmul.f32 0.2, %v601_v63  ;;  %vm619_vm1 = vcmp.gt.f32.partialorder %v601_v63, 0.0 }
  0x8a   : > { %4992 = vmatprep.mubr.bf16.mxu0 %v4244_v2  ;;  %v1927_v33 = vor.u32 %v1926_v19, %v1923_v55  ;;  %v587_v2 = vld [vmem:[%s6025_s6 + $0x10] ss:$8 sps:$4 sm:$0xff]   ;;  %v5301_v19 = vld [vmem:[%s6646_s4 + $0x140] sm:$0xff]  }
  0x8b   : > { %4807 = vmatpush3.bf16.msra.mxu1 %v5287_v51  ;;  %v1941_v48 = vor.u32 %v1940_v20, %v1937_v46  ;;  %v4443_v51 = vpack.c.bf16 %v6057_v21, %v6057_v21  ;;  %v1991_v47 = vshrl.u32 %v4439_v34, 16  ;;  %v605_v40 = vunpack.c.l.bf16 %v587_v2  ;;  %v5302_v46 = vld [vmem:[%s6646_s4 + $0x340] sm:$0xff]  }
  0x8c   : > { %4999 = vmatpush3.bf16.msra.mxu0 %v5288_v54  ;;  %4808 = vmatprep.subr.bf16.mxu1 %v5289_v49  ;;  %v6050_v13 = vrot.slane %v1927_v33, 4  ;;  %v1994_v54 = vshll.u32 %v4439_v34, 16  ;;  %v6105_v20 = vrot.slane %v2005_v18, 4  ;;  %v607_v6 = vunpack.c.h.bf16 %v587_v2  ;;  %v599_v18 = vld [vmem:[%s6025_s6 + $0x40] sm:$0xf] }
  0x8d   : > { %5000 = vmatprep.subr.bf16.mxu0 %v5290_v29  ;;  %v6069_v4 = vrot.slane %v1941_v48, 4  ;;  %v2019_v1 = vshrl.u32 %v4443_v51, 16  ;;  %v641_v53 = vmul.f32 0.2, %v605_v40  ;;  %v2022_v44 = vshll.u32 %v4443_v51, 16 }
  0x8e   : > { %4801 = vmatmul.mubr.bf16.gmra.mrb[4].mxu1 %v3985_v41  ;;  %v603_v41 = vunpack.c.h.bf16 %v583_v56  ;;  %vm623_vm3 = vcmp.gt.f32.partialorder %v605_v40, 0.0  ;;  %v6092_v58 = vrot.slane %v1994_v54, 5  ;;  %vm625_vm4 = vcmp.gt.f32.partialorder %v607_v6, 0.0 }
  0x8f   : > { %4993 = vmatmul.mubr.bf16.gmra.mrb[4].mxu0 %v4245_v60  ;;  %4809 = vmatpush3.bf16.msra.mxu1 %v5289_v49  ;;  %v4481_v49 = vpack.c.bf16 %v6067_v31, %v6067_v31  ;;  %v6111_v61 = vrot.slane %v2019_v1, 4  ;;  %v6117_v35 = vrot.slane %v2022_v44, 5  ;;  %v6134_v34 = vpack.c.bf16 %v562_v42, %v562_v42 }
  0x90   : > { %5001 = vmatpush3.bf16.msra.mxu0 %v5290_v29  ;;  %4810 = vmatprep.subr.bf16.mxu1 %v5291_v17  ;;  %v2008_v29 = vshll.u32 %v4441_v15, 16  ;;  %v639_v23 = vmul.f32 0.2, %v603_v41  ;;  %vm621_vm2 = vcmp.gt.f32.partialorder %v603_v41, 0.0  ;;  %v4475_v15 = vpack.c.bf16 %v6039_v12, %v6034_v39  ;;  %v5305_v39 = vld [vmem:[%s6646_s4 + $0x150] sm:$0xff]  }
  0x91   : > { %5002 = vmatprep.subr.bf16.mxu0 %v5292_v24  ;;  %4820 = vmatprep.mubr.bf16.mxu1 %v4421_v50  ;;  %v3400_v60 = vshrl.u32 %v4481_v49, 16  ;;  %v6090_v50 = vrot.slane %v1991_v47, 4  ;;  %v3403_v5 = vshll.u32 %v4481_v49, 16  ;;  %v6161_v49 = vpack.c.bf16 %v6083_v32, %v6083_v32 }
  0x92   : > { %5012 = vmatprep.mubr.bf16.mxu0 %v4473_v38  ;;  %v6094_v55 = vsel %vm621_vm2, %v603_v41, %v639_v23  ;;  %v6109_v38 = vrot.slane %v2008_v29, 5  ;;  %v1955_v41 = vor.u32 %v6054_v14, %v6052_v8  ;;  %v485_v23 = vld [vmem:[%s5915_s16 + $0x4] sm:$0x1] }
  0x93   : > { %4811 = vmatpush3.bf16.msra.mxu1 %v5291_v17  ;;  %v6088_v17 = vsel %vm619_vm1, %v601_v63, %v637_v25  ;;  %v4447_v3 = vpack.c.bf16 %v6094_v55, %v6094_v55  ;;  %v6119_v7 = vrot.slane %v3400_v60, 4  ;;  %v6132_v56 = vrot.slane %v3403_v5, 5 }
  0x94   : > { %5003 = vmatpush3.bf16.msra.mxu0 %v5292_v24  ;;  %4812 = vmatprep.subr.bf16.mxu1 %v5293_v62  ;;  %v4445_v36 = vpack.c.bf16 %v6088_v17, %v6088_v17  ;;  %v591_v24 = vld [vmem:[%s6025_s6 + $0x20] ss:$8 sps:$4 sm:$0xff]   ;;  %v4424_v25 = vpack.c.bf16 %v6057_v21, %v6039_v12  ;;  %v6180_v12 = vunpack.c.l.bf16 %v599_v18  ;;  %v503_v44 = vunpack.c.l.bf16 %v485_v23 }
  0x95   : > { %5004 = vmatprep.subr.bf16.mxu0 %v5294_v57  ;;  %v6124_v33 = vunpack.c.l.bf16 %v591_v24  ;;  %v2225_v48 = vshrl.u32 %v4447_v3, 16  ;;  %v611_v11 = vunpack.c.h.bf16 %v591_v24  ;;  %v2228_v63 = vshll.u32 %v4447_v3, 16  ;;  %v5311_v18 = vld [vmem:[%s6646_s4 + $0x168] sm:$0xff]  }
  0x96   : > { %v2211_v22 = vshrl.u32 %v4445_v36, 16  ;;  %v2214_v27 = vshll.u32 %v4445_v36, 16  ;;  %v6182_v60 = vrot.slane %v1955_v41, 4  ;;  %vm521_vm9 = vcmp.gt.f32.partialorder %v503_v44, 0.0 }
  0x97   : > { %4813 = vmatpush3.bf16.msra.mxu1 %v5293_v62  ;;  %v6114_v62 = vsel %vm623_vm3, %v605_v40, %v641_v53  ;;  %v6148_v47 = vmul.f32 0.2, %v6124_v33  ;;  %v5306_v40 = vld [vmem:[%s6646_s4 + $0x350] sm:$0xff]   ;;  %v6156_v8 = vrot.slane %v2225_v48, 4  ;;  %vm629_vm5 = vcmp.gt.f32.partialorder %v611_v11, 0.0 }
  0x98   : > { %5005 = vmatpush3.bf16.msra.mxu0 %v5294_v57  ;;  %4814 = vmatprep.subr.bf16.mxu1 %v5295_v10  ;;  %v4449_v26 = vpack.c.bf16 %v6114_v62, %v6114_v62  ;;  %v4474_v57 = vpack.c.bf16 %v6083_v32, %v562_v42  ;;  %v6143_v51 = vrot.slane %v2211_v22, 4  ;;  %v647_v14 = vmul.f32 0.2, %v611_v11  ;;  %v487_v32 = vld [vmem:[%s5915_s16 + $0xc] sm:$0x1] }
  0x99   : > { %5006 = vmatprep.subr.bf16.mxu0 %v5296_v16  ;;  %v6170_v1 = vrot.slane %v2228_v63, 5  ;;  %v505_v3 = vunpack.c.l.bf16 %v487_v32  ;;  %v539_v48 = vmul.f32 0.2, %v503_v44  ;;  %vm627_vm10 = vcmp.gt.f32.partialorder %v6124_v33, 0.0 }
  0x9a   : > { %v2239_v2 = vshrl.u32 %v4449_v26, 16  ;;  %v6191_v36 = vsel %vm629_vm5, %v611_v11, %v647_v14  ;;  %v493_v11 = vld [vmem:[%s5915_s16 + $0x24] sm:$0x1]  ;;  %vm635_vm12 = vcmp.gt.f32.partialorder %v6180_v12, 0.0 }
  0x9b   : > { %4815 = vmatpush3.bf16.msra.mxu1 %v5295_v10  ;;  %v643_v10 = vmul.f32 0.2, %v607_v6  ;;  %v6197_v5 = vpack.c.bf16 %v6191_v36, %v6191_v36  ;;  %vm523_vm11 = vcmp.gt.f32.partialorder %v505_v3, 0.0 }
  0x9c   : > { %5007 = vmatpush3.bf16.msra.mxu0 %v5296_v16  ;;  %4816 = vmatprep.subr.bf16.mxu1 %v5297_v37  ;;  %v595_v16 = vld [vmem:[%s6025_s6 + $0x30] ss:$8 sps:$4 sm:$0xff]   ;;  %v6175_v53 = vrot.slane %v2239_v2, 4 }
  0x9d   : > { %5008 = vmatprep.subr.bf16.mxu0 %v5298_v45  ;;  %v613_v54 = vunpack.c.l.bf16 %v595_v16  ;;  %v6165_v29 = vunpack.c.h.bf16 %v595_v16  ;;  %v6173_v42 = vsel %vm625_vm4, %v607_v6, %v643_v10  ;;  %v489_v6 = vld [vmem:[%s5915_s16 + $0x14] sm:$0x1]  ;;  %v5310_v10 = vld [vmem:[%s6646_s4 + $0x360] sm:$0xff]   ;;  %v2281_v63 = vshrl.u32 %v6197_v5, 16 }
  0x9e   : > { %v2284_v23 = vshll.u32 %v6197_v5, 16 }
  0x9f   : > { %4817 = vmatpush3.bf16.msra.mxu1 %v5297_v37  ;;  %v6145_v37 = vrot.slane %v2214_v27, 5  ;;  %v649_v24 = vmul.f32 0.2, %v613_v54  ;;  %vm631_vm7 = vcmp.gt.f32.partialorder %v613_v54, 0.0  ;;  %vm633_vm8 = vcmp.gt.f32.partialorder %v6165_v29, 0.0 }
  0xa0   : > { %5009 = vmatpush3.bf16.msra.mxu0 %v5298_v45  ;;  %4818 = vmatprep.subr.bf16.mxu1 %v5299_v30  ;;  %v2242_v45 = vshll.u32 %v4449_v26, 16  ;;  %v4426_v26 = vpack.c.bf16 %v6173_v42, %v6114_v62  ;;  %v651_v22 = vmul.f32 0.2, %v6165_v29  ;;  %v491_v27 = vld [vmem:[%s5915_s16 + $0x1c] sm:$0x1] }
  0xa1   : > { %5010 = vmatprep.subr.bf16.mxu0 %v5300_v43  ;;  %v6224_v16 = vsel %vm631_vm7, %v613_v54, %v649_v24  ;;  %v509_v41 = vunpack.c.l.bf16 %v491_v27  ;;  %v5313_v27 = vld [vmem:[%s6646_s4 + $0x170] sm:$0xff]  }
  0xa2   : > { %v4457_v2 = vpack.c.bf16 %v6224_v16, %v6224_v16 }
  0xa3   : > { %4819 = vmatpush3.bf16.msra.mxu1 %v5299_v30  ;;  %v4476_v30 = vpack.c.bf16 %v6067_v31, %v6057_v21  ;;  %v5307_v21 = vld [vmem:[%s6646_s4 + $0x158] sm:$0xff]   ;;  %vm527_vm14 = vcmp.gt.f32.partialorder %v509_v41, 0.0  ;;  %v545_v54 = vmul.f32 0.2, %v509_v41 }
  0xa4   : > { %5011 = vmatpush3.bf16.msra.mxu0 %v5300_v43  ;;  %4828 = vmatprep.subr.bf16.mxu1 %v5301_v19  ;;  %v6178_v43 = vrot.slane %v2242_v45, 5  ;;  %v5308_v31 = vld [vmem:[%s6646_s4 + $0x358] sm:$0xff]   ;;  %v511_v45 = vunpack.c.l.bf16 %v493_v11  ;;  %v2298_v24 = vshll.u32 %v4457_v2, 16 }
  0xa5   : > { %5020 = vmatprep.subr.bf16.mxu0 %v5302_v46 }
  0xa6   : > { %4821 = vmatmul.mubr.bf16.vlgmr.msra.gmra.mrb[0].mxu1 %v4422_v59  ;;  %v4425_v59 = vpack.c.bf16 %v6094_v55, %v6088_v17  ;;  %v1997_v17 = vor.u32 %v6092_v58, %v6090_v50  ;;  %vm529_vm15 = vcmp.gt.f32.partialorder %v511_v45, 0.0 }
  0xa7   : > { %5013 = vmatmul.mubr.bf16.vlgmr.msra.gmra.mrb[0].mxu0 %v4474_v57  ;;  %4829 = vmatpush3.bf16.msra.mxu1 %v5301_v19  ;;  %v1963_v19 = vshrl.u32 %v6134_v34, 16  ;;  %v6207_v57 = vpack.c.bf16 %v6173_v42, %v6173_v42 }
  0xa8   : > { %5021 = vmatpush3.bf16.msra.mxu0 %v5302_v46  ;;  %4830 = vmatprep.subr.bf16.mxu1 %v5303_v28  ;;  %v1966_v46 = vshll.u32 %v6134_v34, 16 }
  0xa9   : > { %5022 = vmatprep.subr.bf16.mxu0 %v5304_v52  ;;  %4824 = vmatprep.mubr.bf16.mxu1 %v4423_v9  ;;  %v5309_v9 = vld [vmem:[%s6646_s4 + $0x160] sm:$0xff]   ;;  %v1965_v32 = vrot.slane %v1963_v19, 4 }
  0xaa   : > { %5016 = vmatprep.mubr.bf16.mxu0 %v4475_v15  ;;  %v507_v15 = vunpack.c.l.bf16 %v489_v6 }
  0xab   : > { %4831 = vmatpush3.bf16.msra.mxu1 %v5303_v28  ;;  %v4477_v28 = vpack.c.bf16 %v6114_v62, %v6094_v55  ;;  %v541_v55 = vmul.f32 0.2, %v505_v3 }
  0xac   : > { %5023 = vmatpush3.bf16.msra.mxu0 %v5304_v52  ;;  %4832 = vmatprep.subr.bf16.mxu1 %v5305_v39  ;;  %v653_v52 = vmul.f32 0.2, %v6180_v12  ;;  %vm525_vm13 = vcmp.gt.f32.partialorder %v507_v15, 0.0  ;;  %v543_v14 = vmul.f32 0.2, %v507_v15 }
  0xad   : > { %5024 = vmatprep.subr.bf16.mxu0 %v5306_v40 }
  0xae   : > { %4825 = vmatmul.mubr.bf16.gmra.mrb[4].mxu1 %v4424_v25  ;;  %v5312_v25 = vld [vmem:[%s6646_s4 + $0x368] sm:$0xff]   ;;  %v6250_v6 = vsel %vm635_vm12, %v6180_v12, %v653_v52  ;;  %v1968_v12 = vrot.slane %v1966_v46, 5  ;;  %v6268_v52 = vrot.slane %v2284_v23, 5 }
  0xaf   : > { %5017 = vmatmul.mubr.bf16.gmra.mrb[4].mxu0 %v4476_v30  ;;  %4833 = vmatpush3.bf16.msra.mxu1 %v5305_v39  ;;  %v6234_v39 = vsel %vm633_vm8, %v6165_v29, %v651_v22  ;;  %v559_v29 = vsel %vm523_vm11, %v505_v3, %v541_v55  ;;  %v6255_v5 = vpack.c.bf16 %v6250_v6, %v6250_v6  ;;  %v547_v3 = vmul.f32 0.2, %v511_v45 }
  0xb0   : > { %5025 = vmatpush3.bf16.msra.mxu0 %v5306_v40  ;;  %4834 = vmatprep.subr.bf16.mxu1 %v5307_v21  ;;  %v557_v40 = vsel %vm521_vm9, %v503_v44, %v539_v48  ;;  %v4459_v30 = vpack.c.bf16 %v6234_v39, %v6234_v39  ;;  %v2295_v44 = vshrl.u32 %v4457_v2, 16  ;;  %v4432_v19 = vpack.c.bf16 %v559_v29, %v559_v29 }
  0xb1   : > { %5026 = vmatprep.subr.bf16.mxu0 %v5308_v31  ;;  %4844 = vmatprep.mubr.bf16.mxu1 %v4425_v59  ;;  %v561_v59 = vsel %vm525_vm13, %v507_v15, %v543_v14  ;;  %v4430_v22 = vpack.c.bf16 %v557_v40, %v557_v40  ;;  %v3564_v2 = vshrl.u32 %v6255_v5, 16  ;;  %v565_v14 = vsel %vm529_vm15, %v511_v45, %v547_v3  ;;  %v5316_v45 = vld [vmem:[%s6646_s4 + $0x378] sm:$0xff]  }
  0xb2   : > { %5036 = vmatprep.mubr.bf16.mxu0 %v4477_v28  ;;  %v5314_v28 = vld [vmem:[%s6646_s4 + $0x370] sm:$0xff]   ;;  %v2309_v48 = vshrl.u32 %v4459_v30, 16  ;;  %v2312_v11 = vshll.u32 %v4459_v30, 16  ;;  %v4434_v55 = vpack.c.bf16 %v561_v59, %v561_v59  ;;  %v6270_v15 = vrot.slane %v2295_v44, 4  ;;  %v5315_v30 = vld [vmem:[%s6646_s4 + $0x178] sm:$0xff]  }
  0xb3   : > { %4835 = vmatpush3.bf16.msra.mxu1 %v5307_v21  ;;  %v563_v21 = vsel %vm527_vm14, %v509_v41, %v545_v54  ;;  %v1930_v41 = vshll.u32 %v4430_v22, 16  ;;  %v1977_v54 = vshrl.u32 %v6161_v49, 16  ;;  %v6293_v29 = vsel %vm627_vm10, %v6124_v33, %v6148_v47  ;;  %v5317_v33 = vld [vmem:[%s6646_s4 + $0x180] sm:$0xff]  }
  0xb4   : > { %5027 = vmatpush3.bf16.msra.mxu0 %v5308_v31  ;;  %4836 = vmatprep.subr.bf16.mxu1 %v5309_v9  ;;  %v6258_v31 = vrot.slane %v2281_v63, 4  ;;  %v6272_v63 = vrot.slane %v2298_v24, 5  ;;  %v4436_v34 = vpack.c.bf16 %v563_v21, %v563_v21  ;;  %v1980_v44 = vshll.u32 %v6161_v49, 16  ;;  %v495_v21 = vld [vmem:[%s5915_s16 + $0x2c] sm:$0x1]  ;;  %v5318_v24 = vld [vmem:[%s6646_s4 + $0x380] sm:$0xff]  }
  0xb5   : > { %5028 = vmatprep.subr.bf16.mxu0 %v5310_v10  ;;  %v3567_v59 = vshll.u32 %v6255_v5, 16  ;;  %v4438_v22 = vpack.c.bf16 %v565_v14, %v565_v14  ;;  %v6309_v47 = vpack.c.bf16 %v6293_v29, %v6293_v29  ;;  %v6311_v49 = vrot.slane %v2309_v48, 4  ;;  %v499_v5 = vld [vmem:[%s5915_s16 + $0x3c] sm:$0x1] }
  0xb6   : > { %v6301_v3 = vshll.u32 %v4436_v34, 16  ;;  %v1979_v23 = vrot.slane %v1977_v54, 4  ;;  %v517_v40 = vunpack.c.l.bf16 %v499_v5  ;;  %v4427_v46 = vpack.c.bf16 %v6191_v36, %v6293_v29 }
  0xb7   : > { %4837 = vmatpush3.bf16.msra.mxu1 %v5309_v9  ;;  %v1944_v9 = vshll.u32 %v4432_v19, 16  ;;  %v497_v19 = vld [vmem:[%s5915_s16 + $0x34] sm:$0x1]  ;;  %v4479_v54 = vpack.c.bf16 %v6224_v16, %v6191_v36  ;;  %v6349_v5 = vrot.slane %v3567_v59, 5 }
  0xb8   : > { %5029 = vmatpush3.bf16.msra.mxu0 %v5310_v10  ;;  %4838 = vmatprep.subr.bf16.mxu1 %v5311_v18  ;;  %v1969_v10 = vor.u32 %v1968_v12, %v1965_v32  ;;  %v6295_v32 = vshll.u32 %v4434_v55, 16  ;;  %v1932_v12 = vrot.slane %v1930_v41, 5  ;;  %v515_v14 = vunpack.c.l.bf16 %v497_v19  ;;  %v501_v19 = vld [vmem:[%s5915_s16 + $0x44] sm:$0x1] }
  0xb9   : > { %5030 = vmatprep.subr.bf16.mxu0 %v5312_v25  ;;  %v1946_v55 = vrot.slane %v1944_v9, 5  ;;  %v4478_v41 = vpack.c.bf16 %v6293_v29, %v6173_v42  ;;  %v1974_v9 = vrot.slane %v6301_v3, 5  ;;  %v553_v36 = vmul.f32 0.2, %v517_v40  ;;  %v5321_v42 = vld [vmem:[%s6646_s4 + $0x190] sm:$0xff]  }
  0xba   : > { %v1970_v34 = vrot.slane %v1969_v10, 4  ;;  %v1960_v48 = vrot.slane %v6295_v32, 5  ;;  %v6326_v10 = vshll.u32 %v4438_v22, 16  ;;  %v6340_v32 = vsel %vm5717_vm6, %v6050_v13, %v1932_v12 }
  0xbb   : > { %4839 = vmatpush3.bf16.msra.mxu1 %v5311_v18  ;;  %v6313_v18 = vrot.slane %v2312_v11, 5  ;;  %v1982_v11 = vrot.slane %v1980_v44, 5  ;;  %v6345_v44 = vsel %vm5717_vm6, %v6069_v4, %v1946_v55  ;;  %v551_v29 = vmul.f32 0.2, %v515_v14  ;;  %v5319_v4 = vld [vmem:[%s6646_s4 + $0x188] sm:$0xff]  }
  0xbc   : > { %5031 = vmatpush3.bf16.msra.mxu0 %v5312_v25  ;;  %4840 = vmatprep.subr.bf16.mxu1 %v5313_v27  ;;  %v513_v25 = vunpack.c.l.bf16 %v495_v21  ;;  %vm533_vm1 = vcmp.gt.f32.partialorder %v515_v14, 0.0  ;;  %v6347_v3 = vrot.slane %v3564_v2, 4  ;;  %vm535_vm2 = vcmp.gt.f32.partialorder %v517_v40, 0.0  ;;  %v588_v2 = vld [vmem:[%s6025_s6 + $0x14] sm:$0x1] }
  0xbd   : > { %5032 = vmatprep.subr.bf16.mxu0 %v5314_v28  ;;  %v1983_v22 = vor.u32 %v1982_v11, %v1979_v23  ;;  %v519_v13 = vunpack.c.l.bf16 %v501_v19  ;;  %v5320_v23 = vld [vmem:[%s6646_s4 + $0x388] sm:$0xff]   ;;  %v4082_v12 = vcombine.low %v6340_v32, %v6345_v44  ;;  %v6369_v55 = vsel %vm5717_vm6, %v6182_v60, %v1960_v48  ;;  %v590_v19 = vld [vmem:[%s6025_s6 + $0x1c] sm:$0x1]  ;;  %v592_v48 = vld [vmem:[%s6025_s6 + $0x24] sm:$0x1] }
  0xbe   : > { %v549_v21 = vmul.f32 0.2, %v513_v25  ;;  %vm531_vm0 = vcmp.gt.f32.partialorder %v513_v25, 0.0  ;;  %v6379_v59 = vsel %vm5717_vm6, %v1970_v34, %v1974_v9  ;;  %v571_v60 = vsel %vm535_vm2, %v517_v40, %v553_v36  ;;  %v586_v36 = vld [vmem:[%s6025_s6 + $0xc] sm:$0x1] }
  0xbf   : > { %4841 = vmatpush3.bf16.msra.mxu1 %v5313_v27  ;;  %v1988_v27 = vrot.slane %v6326_v10, 5  ;;  %v3570_v62 = vor.u32 %v6349_v5, %v6347_v3  ;;  %vm537_vm3 = vcmp.gt.f32.partialorder %v519_v13, 0.0  ;;  %v4083_v34 = vcombine.low %v6369_v55, %v6379_v59 }
  0xc0   : > { %5033 = vmatpush3.bf16.msra.mxu0 %v5314_v28  ;;  %4842 = vmatprep.subr.bf16.mxu1 %v5315_v30  ;;  %v4428_v28 = vpack.c.bf16 %v6234_v39, %v6224_v16  ;;  %v567_v11 = vsel %vm531_vm0, %v513_v25, %v549_v21  ;;  %v555_v25 = vmul.f32 0.2, %v519_v13  ;;  %v2315_v21 = vor.u32 %v6313_v18, %v6311_v49  ;;  %v5333_v49 = vld [vmem:[%s6646_s4 + $0x1c0] sm:$0xff]  }
  0xc1   : > { %5034 = vmatprep.subr.bf16.mxu0 %v5316_v45  ;;  %v4440_v40 = vpack.c.bf16 %v567_v11, %v567_v11  ;;  %v6401_v9 = vrot.slane %v1997_v17, 4  ;;  %v4444_v10 = vpack.c.bf16 %v571_v60, %v571_v60  ;;  %v604_v60 = vunpack.c.l.bf16 %v586_v36  ;;  %v5334_v18 = vld [vmem:[%s6646_s4 + $0x3c0] sm:$0xff]  }
  0xc2   : > { %v6415_v50 = vsel %vm537_vm3, %v519_v13, %v555_v25 }
  0xc3   : > { %4843 = vmatpush3.bf16.msra.mxu1 %v5315_v30  ;;  %v4480_v30 = vpack.c.bf16 %v6250_v6, %v6234_v39  ;;  %v569_v6 = vsel %vm533_vm1, %v515_v14, %v551_v29  ;;  %v606_v14 = vunpack.c.l.bf16 %v588_v2  ;;  %v584_v29 = vld [vmem:[%s6025_s6 + $0x4] sm:$0x1]  ;;  %v610_v2 = vunpack.c.l.bf16 %v592_v48 }
  0xc4   : > { %5035 = vmatpush3.bf16.msra.mxu0 %v5316_v45  ;;  %4852 = vmatprep.subr.bf16.mxu1 %v5317_v33  ;;  %v1984_v45 = vrot.slane %v1983_v22, 4  ;;  %v6427_v13 = vshll.u32 %v4444_v10, 16  ;;  %v2253_v39 = vshrl.u32 %v6207_v57, 16  ;;  %v6651_v10 = vor.u32 %v6178_v43, %v6175_v53  ;;  %v5327_v53 = vld [vmem:[%s6646_s4 + $0x1a8] sm:$0xff]  }
  0xc5   : > { %5044 = vmatprep.subr.bf16.mxu0 %v5318_v24  ;;  %vm624_vm4 = vcmp.gt.f32.partialorder %v606_v14, 0.0  ;;  %v642_v58 = vmul.f32 0.2, %v606_v14  ;;  %vm628_vm7 = vcmp.gt.f32.partialorder %v610_v2, 0.0  ;;  %v5328_v43 = vld [vmem:[%s6646_s4 + $0x3a8] sm:$0xff]   ;;  %vm622_vm9 = vcmp.gt.f32.partialorder %v604_v60, 0.0 }
  0xc6   : > { %4845 = vmatmul.mubr.bf16.vlgmr.msra.gmra.mrb[0].mxu1 %v4426_v26  ;;  %v5322_v26 = vld [vmem:[%s6646_s4 + $0x390] sm:$0xff]   ;;  %v6406_v22 = vsel %vm5717_vm6, %v1984_v45, %v1988_v27  ;;  %v5323_v27 = vld [vmem:[%s6646_s4 + $0x198] sm:$0xff]   ;;  %v646_v45 = vmul.f32 0.2, %v610_v2 }
  0xc7   : > { %5037 = vmatmul.mubr.bf16.vlgmr.msra.gmra.mrb[0].mxu0 %v4478_v41  ;;  %4853 = vmatpush3.bf16.msra.mxu1 %v5317_v33  ;;  %v608_v33 = vunpack.c.l.bf16 %v590_v19  ;;  %v4328_v41 = vcombine.low %v6345_v44, %v6369_v55  ;;  %v660_v11 = vsel %vm624_vm4, %v606_v14, %v642_v58  ;;  %v4482_v19 = vpack.c.bf16 %v6415_v50, %v6415_v50  ;;  %v5326_v14 = vld [vmem:[%s6646_s4 + $0x3a0] sm:$0xff]  }
  0xc8   : > { %5045 = vmatpush3.bf16.msra.mxu0 %v5318_v24  ;;  %4854 = vmatprep.subr.bf16.mxu1 %v5319_v4  ;;  %v4442_v24 = vpack.c.bf16 %v569_v6, %v569_v6  ;;  %v4450_v25 = vpack.c.bf16 %v660_v11, %v660_v11  ;;  %v664_v16 = vsel %vm628_vm7, %v610_v2, %v646_v45  ;;  %v596_v2 = vld [vmem:[%s6025_s6 + $0x34] sm:$0x1]  ;;  %v2270_v45 = vshll.u32 %v6309_v47, 16 }
  0xc9   : > { %5046 = vmatprep.subr.bf16.mxu0 %v5320_v23  ;;  %4848 = vmatprep.mubr.bf16.mxu1 %v4427_v46  ;;  %v6650_v46 = vor.u32 %v6109_v38, %v6105_v20  ;;  %vm626_vm5 = vcmp.gt.f32.partialorder %v608_v33, 0.0  ;;  %v644_v17 = vmul.f32 0.2, %v608_v33  ;;  %v5324_v20 = vld [vmem:[%s6646_s4 + $0x398] sm:$0xff]   ;;  %v6423_v38 = vshll.u32 %v4440_v40, 16  ;;  %v5325_v40 = vld [vmem:[%s6646_s4 + $0x1a0] sm:$0xff]  }
  0xca   : > { %5040 = vmatprep.mubr.bf16.mxu0 %v4479_v54 }
  0xcb   : > { %v6411_v54 = vrot.slane %v6650_v46, 4  ;;  %4855 = vmatpush3.bf16.msra.mxu1 %v5319_v4  ;;  %v6425_v4 = vshll.u32 %v4442_v24, 16  ;;  %v662_v6 = vsel %vm626_vm5, %v608_v33, %v644_v17  ;;  %v2248_v24 = vshll.u32 %v4450_v25, 16  ;;  %v594_v33 = vld [vmem:[%s6025_s6 + $0x2c] sm:$0x1] }
  0xcc   : > { %5047 = vmatpush3.bf16.msra.mxu0 %v5320_v23  ;;  %4856 = vmatprep.subr.bf16.mxu1 %v5321_v42  ;;  %v602_v23 = vunpack.c.l.bf16 %v584_v29  ;;  %v4452_v48 = vpack.c.bf16 %v662_v6, %v662_v6  ;;  %v2246_v29 = vrot.slane %v6651_v10, 4  ;;  %v2255_v46 = vrot.slane %v2253_v39, 4  ;;  %v5329_v10 = vld [vmem:[%s6646_s4 + $0x1b0] sm:$0xff]  }
  0xcd   : > { %5048 = vmatprep.subr.bf16.mxu0 %v5322_v26  ;;  %v2250_v58 = vrot.slane %v2248_v24, 5  ;;  %v640_v6 = vmul.f32 0.2, %v604_v60 }
  0xce   : > { %4849 = vmatmul.mubr.bf16.gmra.mrb[4].mxu1 %v4428_v28  ;;  %v2256_v28 = vshll.u32 %v6207_v57, 16  ;;  %vm620_vm8 = vcmp.gt.f32.partialorder %v602_v23, 0.0  ;;  %v2262_v36 = vshll.u32 %v4452_v48, 16 }
  0xcf   : > { %5041 = vmatmul.mubr.bf16.gmra.mrb[4].mxu0 %v4480_v30  ;;  %4857 = vmatpush3.bf16.msra.mxu1 %v5321_v42  ;;  %v2267_v30 = vshrl.u32 %v6309_v47, 16  ;;  %v638_v42 = vmul.f32 0.2, %v602_v23  ;;  %v6465_v25 = vsel %vm5717_vm6, %v2246_v29, %v2250_v58  ;;  %v5330_v29 = vld [vmem:[%s6646_s4 + $0x3b0] sm:$0xff]  }
  0xd0   : > { %5049 = vmatpush3.bf16.msra.mxu0 %v5322_v26  ;;  %4858 = vmatprep.subr.bf16.mxu1 %v5323_v27  ;;  %v4454_v26 = vpack.c.bf16 %v664_v16, %v664_v16  ;;  %v2258_v57 = vrot.slane %v2256_v28, 5  ;;  %v2264_v44 = vrot.slane %v2262_v36, 5 }
  0xd1   : > { %5050 = vmatprep.subr.bf16.mxu0 %v5324_v20  ;;  %4868 = vmatprep.mubr.bf16.mxu1 %v4082_v12  ;;  %v2269_v17 = vrot.slane %v2267_v30, 4  ;;  %v612_v12 = vunpack.c.l.bf16 %v594_v33  ;;  %v6460_v47 = vsel %vm620_vm8, %v602_v23, %v638_v42  ;;  %v658_v23 = vsel %vm622_vm9, %v604_v60, %v640_v6 }
  0xd2   : > { %5060 = vmatprep.mubr.bf16.mxu0 %v4328_v41  ;;  %v2276_v11 = vshll.u32 %v4454_v26, 16  ;;  %v2259_v32 = vor.u32 %v2258_v57, %v2255_v46  ;;  %v2272_v41 = vrot.slane %v2270_v45, 5  ;;  %v600_v26 = vld [vmem:[%s6025_s6 + $0x44] sm:$0x1]  ;;  %v6653_v6 = vor.u32 %v6272_v63, %v6270_v15 }
  0xd3   : > { %4859 = vmatpush3.bf16.msra.mxu1 %v5323_v27  ;;  %v614_v27 = vunpack.c.l.bf16 %v596_v2  ;;  %vm630_vm10 = vcmp.gt.f32.partialorder %v612_v12, 0.0  ;;  %v648_v16 = vmul.f32 0.2, %v612_v12  ;;  %v618_v2 = vunpack.c.l.bf16 %v600_v26 }
  0xd4   : > { %5051 = vmatpush3.bf16.msra.mxu0 %v5324_v20  ;;  %4860 = vmatprep.subr.bf16.mxu1 %v5325_v40  ;;  %v598_v20 = vld [vmem:[%s6025_s6 + $0x3c] sm:$0x1]  ;;  %v2260_v48 = vrot.slane %v2259_v32, 4  ;;  %v2273_v39 = vor.u32 %v2272_v41, %v2269_v17  ;;  %v2278_v28 = vrot.slane %v2276_v11, 5  ;;  %v6652_v17 = vor.u32 %v6268_v52, %v6258_v31 }
  0xd5   : > { %5052 = vmatprep.subr.bf16.mxu0 %v5326_v14  ;;  %vm632_vm11 = vcmp.gt.f32.partialorder %v614_v27, 0.0  ;;  %v650_v30 = vmul.f32 0.2, %v614_v27  ;;  %v666_v24 = vsel %vm630_vm10, %v612_v12, %v648_v16  ;;  %v616_v33 = vunpack.c.l.bf16 %v598_v20  ;;  %v5331_v31 = vld [vmem:[%s6646_s4 + $0x1b8] sm:$0xff]  }
  0xd6   : > { %v6471_v42 = vsel %vm5717_vm6, %v2260_v48, %v2264_v44  ;;  %v2288_v45 = vrot.slane %v6652_v17, 4  ;;  %v2302_v32 = vrot.slane %v6653_v6, 4  ;;  %vm636_vm13 = vcmp.gt.f32.partialorder %v618_v2, 0.0  ;;  %v5332_v52 = vld [vmem:[%s6646_s4 + $0x3b8] sm:$0xff]  }
  0xd7   : > { %4861 = vmatpush3.bf16.msra.mxu1 %v5325_v40  ;;  %v2274_v40 = vrot.slane %v2273_v39, 4  ;;  %v4127_v60 = vcombine.low %v6465_v25, %v6471_v42  ;;  %v668_v46 = vsel %vm632_vm11, %v614_v27, %v650_v30  ;;  %vm634_vm12 = vcmp.gt.f32.partialorder %v616_v33, 0.0 }
  0xd8   : > { %5053 = vmatpush3.bf16.msra.mxu0 %v5326_v14  ;;  %4862 = vmatprep.subr.bf16.mxu1 %v5327_v53  ;;  %v4456_v14 = vpack.c.bf16 %v666_v24, %v666_v24  ;;  %v4458_v57 = vpack.c.bf16 %v668_v46, %v668_v46  ;;  %v652_v36 = vmul.f32 0.2, %v616_v33  ;;  %v2002_v15 = vrot.slane %v6423_v38, 5 }
  0xd9   : > { %5054 = vmatprep.subr.bf16.mxu0 %v5328_v43  ;;  %v6484_v58 = vsel %vm5717_vm6, %v2274_v40, %v2278_v28  ;;  %v2016_v27 = vrot.slane %v6425_v4, 5  ;;  %v4446_v20 = vpack.c.bf16 %v6460_v47, %v6460_v47  ;;  %v4448_v48 = vpack.c.bf16 %v658_v23, %v658_v23 }
  0xda   : > { %v2290_v11 = vshll.u32 %v4456_v14, 16  ;;  %v4359_v44 = vcombine.low %v6471_v42, %v6484_v58  ;;  %v2304_v12 = vshll.u32 %v4458_v57, 16  ;;  %v670_v41 = vsel %vm634_vm12, %v616_v33, %v652_v36 }
  0xdb   : > { %4863 = vmatpush3.bf16.msra.mxu1 %v5327_v53  ;;  %v4460_v53 = vpack.c.bf16 %v670_v41, %v670_v41  ;;  %v2316_v28 = vrot.slane %v2315_v21, 4  ;;  %v3409_v4 = vshll.u32 %v4482_v19, 16  ;;  %v6654_v21 = vor.u32 %v6117_v35, %v6111_v61 }
  0xdc   : > { %5055 = vmatpush3.bf16.msra.mxu0 %v5328_v43  ;;  %4864 = vmatprep.subr.bf16.mxu1 %v5329_v10  ;;  %v2292_v63 = vrot.slane %v2290_v11, 5  ;;  %v654_v43 = vmul.f32 0.2, %v618_v2  ;;  %v2306_v16 = vrot.slane %v2304_v12, 5  ;;  %v6655_v19 = vor.u32 %v6132_v56, %v6119_v7 }
  0xdd   : > { %5056 = vmatprep.subr.bf16.mxu0 %v5330_v29  ;;  %v2318_v30 = vshll.u32 %v4460_v53, 16  ;;  %v2026_v50 = vrot.slane %v6654_v21, 4  ;;  %v2003_v40 = vsel %vm5717_vm6, %v6401_v9, %v2002_v15  ;;  %v3571_v61 = vrot.slane %v3570_v62, 4  ;;  %v5335_v62 = vld [vmem:[%s6646_s4 + $0x1c8] sm:$0xff]   ;;  %v5342_v53 = vld [vmem:[%s6646_s4 + $0x3e0] sm:$0xff]  }
  0xde   : > { %v6506_v39 = vsel %vm5717_vm6, %v2288_v45, %v2292_v63  ;;  %v672_v38 = vsel %vm636_vm13, %v618_v2, %v654_v43  ;;  %v6519_v26 = vsel %vm5717_vm6, %v2302_v32, %v2306_v16  ;;  %v3407_v24 = vrot.slane %v6655_v19, 4  ;;  %v5343_v43 = vld [vmem:[%s6646_s4 + $0x1e8] sm:$0xff]   ;;  %v5347_v16 = vld [vmem:[%s6646_s4 + $0x1f8] sm:$0xff]  }
  0xdf   : > { %4865 = vmatpush3.bf16.msra.mxu1 %v5329_v10  ;;  %v4128_v47 = vcombine.low %v6484_v58, %v6506_v39  ;;  %v4484_v23 = vpack.c.bf16 %v672_v38, %v672_v38  ;;  %v4360_v33 = vcombine.low %v6506_v39, %v6519_v26  ;;  %v2320_v10 = vrot.slane %v2318_v30, 5 }
  0xe0   : > { %5057 = vmatpush3.bf16.msra.mxu0 %v5330_v29  ;;  %4866 = vmatprep.subr.bf16.mxu1 %v5331_v31  ;;  %v4329_v29 = vcombine.low %v6379_v59, %v6406_v22  ;;  %v2017_v7 = vsel %vm5717_vm6, %v6411_v54, %v2016_v27  ;;  %v2220_v56 = vshll.u32 %v4446_v20, 16  ;;  %v2234_v14 = vshll.u32 %v4448_v48, 16  ;;  %v5336_v54 = vld [vmem:[%s6646_s4 + $0x3c8] sm:$0xff]   ;;  %v5337_v59 = vld [vmem:[%s6646_s4 + $0x1d0] sm:$0xff]  }
  0xe1   : > { %5058 = vmatprep.subr.bf16.mxu0 %v5332_v52  ;;  %v3573_v35 = vshll.u32 %v4484_v23, 16  ;;  %v6548_v46 = vsel %vm5717_vm6, %v2316_v28, %v2320_v10  ;;  %v2030_v57 = vrot.slane %v6427_v13, 5  ;;  %v3411_v9 = vrot.slane %v3409_v4, 5  ;;  %v5344_v27 = vld [vmem:[%s6646_s4 + $0x3e8] sm:$0xff]   ;;  %v5345_v20 = vld [vmem:[%s6646_s4 + $0x1f0] sm:$0xff]   ;;  %v5348_v28 = vld [vmem:[%s6646_s4 + $0x3f8] sm:$0xff]  }
  0xe2   : > { %v4129_v3 = vcombine.low %v6519_v26, %v6548_v46  ;;  %v4084_v36 = vcombine.low %v6406_v22, %v2003_v40  ;;  %v4330_v2 = vcombine.low %v2003_v40, %v2017_v7  ;;  %v6656_v13 = vor.u32 %v6145_v37, %v6143_v51  ;;  %v5346_v48 = vld [vmem:[%s6646_s4 + $0x3f0] sm:$0xff]  }
  0xe3   : > { %4867 = vmatpush3.bf16.msra.mxu1 %v5331_v31  ;;  %v3575_v5 = vrot.slane %v3573_v35, 5  ;;  %v2222_v11 = vrot.slane %v2220_v56, 5  ;;  %v6657_v6 = vor.u32 %v6170_v1, %v6156_v8  ;;  %v2236_v22 = vrot.slane %v2234_v14, 5  ;;  %v5338_v8 = vld [vmem:[%s6646_s4 + $0x3d0] sm:$0xff]   ;;  %v5339_v31 = vld [vmem:[%s6646_s4 + $0x1d8] sm:$0xff]  }
  0xe4   : > { %5059 = vmatpush3.bf16.msra.mxu0 %v5332_v52  ;;  %4876 = vmatprep.subr.bf16.mxu1 %v5333_v49  ;;  %v2218_v17 = vrot.slane %v6656_v13, 4  ;;  %v2031_v51 = vsel %vm5717_vm6, %v2026_v50, %v2030_v57  ;;  %v3412_v37 = vsel %vm5717_vm6, %v3407_v24, %v3411_v9  ;;  %v5340_v52 = vld [vmem:[%s6646_s4 + $0x3d8] sm:$0xff]  }
  0xe5   : > { %5068 = vmatprep.subr.bf16.mxu0 %v5334_v18  ;;  %v6565_v45 = vsel %vm5717_vm6, %v3571_v61, %v3575_v5  ;;  %v2232_v32 = vrot.slane %v6657_v6, 4  ;;  %v4085_v1 = vcombine.low %v2017_v7, %v2031_v51  ;;  %v4331_v55 = vcombine.low %v2031_v51, %v3412_v37 }
  0xe6   : > { %4869 = vmatmul.mubr.bf16.vlgmr.msra.gmra.mrb[0].mxu1 %v4083_v34  ;;  %v4361_v12 = vcombine.low %v6548_v46, %v6565_v45  ;;  %v2223_v34 = vsel %vm5717_vm6, %v2218_v17, %v2222_v11 }
  0xe7   : > { %5061 = vmatmul.mubr.bf16.vlgmr.msra.gmra.mrb[0].mxu0 %v4329_v29  ;;  %4877 = vmatpush3.bf16.msra.mxu1 %v5333_v49  ;;  %v2237_v41 = vsel %vm5717_vm6, %v2232_v32, %v2236_v22 }
  0xe8   : > { %5069 = vmatpush3.bf16.msra.mxu0 %v5334_v18  ;;  %4878 = vmatprep.subr.bf16.mxu1 %v5335_v62  ;;  %v4126_v15 = vcombine.low %v2223_v34, %v2237_v41  ;;  %v4358_v63 = vcombine.low %v2237_v41, %v6465_v25 }
  0xe9   : > { %5070 = vmatprep.subr.bf16.mxu0 %v5336_v54  ;;  %4872 = vmatprep.mubr.bf16.mxu1 %v4084_v36 }
  0xea   : > { %5064 = vmatprep.mubr.bf16.mxu0 %v4330_v2 }
  0xeb   : > { %4879 = vmatpush3.bf16.msra.mxu1 %v5335_v62 }
  0xec   : > { %5071 = vmatpush3.bf16.msra.mxu0 %v5336_v54  ;;  %4880 = vmatprep.subr.bf16.mxu1 %v5337_v59 }
  0xed   : > { %5072 = vmatprep.subr.bf16.mxu0 %v5338_v8 }
  0xee   : > { %4873 = vmatmul.mubr.bf16.gmra.mrb[4].mxu1 %v4085_v1 }
  0xef   : > { %5065 = vmatmul.mubr.bf16.gmra.mrb[4].mxu0 %v4331_v55  ;;  %4881 = vmatpush3.bf16.msra.mxu1 %v5337_v59 }
  0xf0   : > { %5073 = vmatpush3.bf16.msra.mxu0 %v5338_v8  ;;  %4882 = vmatprep.subr.bf16.mxu1 %v5339_v31 }
  0xf1   : > { %5074 = vmatprep.subr.bf16.mxu0 %v5340_v52  ;;  %4892 = vmatprep.mubr.bf16.mxu1 %v4126_v15 }
  0xf2   : > { %5084 = vmatprep.mubr.bf16.mxu0 %v4358_v63 }
  0xf3   : > { %4883 = vmatpush3.bf16.msra.mxu1 %v5339_v31 }
  0xf4   : > { %5075 = vmatpush3.bf16.msra.mxu0 %v5340_v52  ;;  %4884 = vmatprep.subr.bf16.mxu1 %v5341_v0 }
  0xf5   : > { %5076 = vmatprep.subr.bf16.mxu0 %v5342_v53 }
  0xf7   : > { %4885 = vmatpush3.bf16.msra.mxu1 %v5341_v0 }
  0xf8   : > { %5077 = vmatpush3.bf16.msra.mxu0 %v5342_v53  ;;  %4886 = vmatprep.subr.bf16.mxu1 %v5343_v43 }
  0xf9   : > { %5078 = vmatprep.subr.bf16.mxu0 %v5344_v27 }
  0xfb   : > { %4887 = vmatpush3.bf16.msra.mxu1 %v5343_v43 }
  0xfc   : > { %5079 = vmatpush3.bf16.msra.mxu0 %v5344_v27  ;;  %4888 = vmatprep.subr.bf16.mxu1 %v5345_v20 }
  0xfd   : > { %5080 = vmatprep.subr.bf16.mxu0 %v5346_v48 }
  0xff   : > { %4889 = vmatpush3.bf16.msra.mxu1 %v5345_v20 }
 0x100   : > { %5081 = vmatpush3.bf16.msra.mxu0 %v5346_v48  ;;  %4890 = vmatprep.subr.bf16.mxu1 %v5347_v16 }
 0x101   : > { %5082 = vmatprep.subr.bf16.mxu0 %v5348_v28 }
 0x103   : > { %4891 = vmatpush3.bf16.msra.mxu1 %v5347_v16 }
 0x104   : > { %5083 = vmatpush3.bf16.msra.mxu0 %v5348_v28 }
 0x106   : > { %4893 = vmatmul.mubr.bf16.vlgmr.msra.gmra.mrb[0].mxu1 %v4127_v60 }
 0x107   : > { %5085 = vmatmul.mubr.bf16.vlgmr.msra.gmra.mrb[0].mxu0 %v4359_v44  ;;  %4896 = vmatprep.mubr.bf16.mxu1 %v4128_v47 }
 0x108   : > { %5088 = vmatprep.mubr.bf16.mxu0 %v4360_v33 }
 0x10e   : > { %4897 = vmatmul.mubr.bf16.gmra.mrb[4].mxu1 %v4129_v3 }
 0x10f   : > { %5089 = vmatmul.mubr.bf16.gmra.mrb[4].mxu0 %v4361_v12 }
 0x1d9   : > { %v4894_v30 = vpop.f32.mrb[0].mxu1 }
 0x1da   : > { %v5086_v25 = vpop.f32.mrb[0].mxu0  ;;  %v2437_v38 = vpop.f32.mrb[1].mxu1 }
 0x1db   : > { %v5092_v60 = vadd.f32 %v5086_v25, %v4894_v30  ;;  %v3685_v4 = vpop.f32.mrb[1].mxu0  ;;  %v4895_v44 = vpop.f32.mrb[2].mxu1 }
 0x1dc   : > { %v5093_v42 = vadd.f32 %v3685_v4, %v2437_v38  ;;  %v5087_v23 = vpop.f32.mrb[2].mxu0  ;;  %v2440_v47 = vpop.f32.mrb[3].mxu1 }
 0x1dd   : > { %v5094_v58 = vadd.f32 %v5087_v23, %v4895_v44  ;;  %v3688_v49 = vpop.f32.mrb[3].mxu0 }
 0x1de   : > { %v5095_v39 = vadd.f32 %v3688_v49, %v2440_v47 }
 0x1df   : > { %v4501_v26 = vpack.c.bf16 %v5094_v58, %v5092_v60 }
 0x1e0   : > { %v4496_v18 = vpack.c.bf16 %v5095_v39, %v5093_v42 }
 0x1e1   : > { %4513 = vst [vmem:[%s284_s9 + $0x8] sm:$0xff] %v4501_v26   ;;  %v4898_v21 = vpop.f32.mrb[4].mxu1 }
 0x1e2   : > { %4497 = vst [vmem:[%s284_s9] sm:$0xff] %v4496_v18   ;;  %v5090_v50 = vpop.f32.mrb[4].mxu0  ;;  %v2453_v24 = vpop.f32.mrb[5].mxu1 }
 0x1e3   : > { %v5096_v19 = vadd.f32 %v5090_v50, %v4898_v21  ;;  %v3701_v33 = vpop.f32.mrb[5].mxu0  ;;  %v4899_v29 = vpop.f32.mrb[6].mxu1 }
 0x1e4   : > { %v5097_v10 = vadd.f32 %v3701_v33, %v2453_v24  ;;  %v5091_v40 = vpop.f32.mrb[6].mxu0  ;;  %v2456_v35 = vpop.f32.mrb[7].mxu1 }
 0x1e5   : > { %v5098_v61 = vadd.f32 %v5091_v40, %v4899_v29  ;;  %v3704_v7 = vpop.f32.mrb[7].mxu0 }
 0x1e6   : > { %v5099_v56 = vadd.f32 %v3704_v7, %v2456_v35 }
 0x1e7   : > { %v4511_v14 = vpack.c.bf16 %v5098_v61, %v5096_v19 }
 0x1e8   : > { %v4506_v46 = vpack.c.bf16 %v5099_v56, %v5097_v10 }
 0x1e9   : > { %4515 = vst [vmem:[%s284_s9 + $0x18] sm:$0xff] %v4511_v14  }
 0x1ea   : > { %4514 = vst [vmem:[%s284_s9 + $0x10] sm:$0xff] %v4506_v46  }
 0x1eb PF: > { %s15_s18 = sadd.s32 1, %s5355_s18  }
 0x1ec   : > { %p12_p4 = scmp.ge.s32.totalorder %s15_s18, 4  }
 0x1ee   :  { %14 = sbr.rel (!%p12_p4) target bundleno = 1 (0x1), region = 94 }

</bundles_post_ra>
